<compile_context>
chip_gen: v5e
topology: v5e:2x2
jax: 0.10.0
libtpu: 0.0.40
codegen_flags: <defaults>
</compile_context>

<pallas_src>
import jax
import jax.numpy as jnp
from jax import lax
from jax.experimental import pallas as pl
from jax.experimental.pallas import tpu as pltpu


def _basic_block_kernel(x_ref, w1_ref, w2_ref, s1_ref, b1_ref, s2_ref, b2_ref,
                        out_ref, xpad_ref, h1pad_ref):
    # x_ref    : (1, H, W, Cin)    unpadded NHWC input block (also the identity branch)
    # w1_ref   : (3, 3*Cin,  Cout) bf16 conv1 weights, rows ordered [dx=0|dx=1|dx=2]*Cin
    # w2_ref   : (3, 3*Cout, Cout) bf16 conv2 weights
    # s*/b*    : (1, Cout) f32     folded BatchNorm scale / bias
    # out_ref  : (1, H, W, Cout)
    # xpad_ref : VMEM (H+2, W+2, Cin)  f32 scratch (halo-padded input)
    # h1pad_ref: VMEM (H+2, W+2, Cout) f32 scratch (halo-padded hidden activation)
    H, W, Cin = x_ref.shape[1], x_ref.shape[2], x_ref.shape[3]
    Cout = out_ref.shape[3]

    x = x_ref[0]                                   # (H, W, Cin) f32, DMA'd once

    # Zero only the 1-pixel halo borders (cheap strips, not the full tensors);
    # the interiors are fully overwritten every step.
    for ref, c in ((xpad_ref, Cin), (h1pad_ref, Cout)):
        ref[0:1, :, :] = jnp.zeros((1, W + 2, c), jnp.float32)
        ref[H + 1:H + 2, :, :] = jnp.zeros((1, W + 2, c), jnp.float32)
        ref[:, 0:1, :] = jnp.zeros((H + 2, 1, c), jnp.float32)
        ref[:, W + 1:W + 2, :] = jnp.zeros((H + 2, 1, c), jnp.float32)

    xpad_ref[1:H + 1, 1:W + 1, :] = x

    def conv3x3(pad_ref, w_ref, cin, cout):
        # 3x3 conv as 3 MXU matmuls (one per ky) with K = 3*cin: the three
        # dx-shifted windows are stacked along the channel (lane) axis.
        acc = jnp.zeros((H * W, cout), jnp.float32)
        for dy in range(3):
            rows = pad_ref[dy:dy + H]              # (H, W+2, cin)
            lhs = jnp.concatenate(
                [rows[:, 0:W, :], rows[:, 1:W + 1, :], rows[:, 2:W + 2, :]],
                axis=-1).reshape(H * W, 3 * cin)
            acc = acc + jnp.dot(lhs.astype(jnp.bfloat16), w_ref[dy],
                                preferred_element_type=jnp.float32)
        return acc

    # ---- conv1 -> bn1 -> relu ----
    h1 = jnp.maximum(
        conv3x3(xpad_ref, w1_ref, Cin, Cout) * s1_ref[...] + b1_ref[...], 0.0)
    h1pad_ref[1:H + 1, 1:W + 1, :] = h1.reshape(H, W, Cout)

    # ---- conv2 -> bn2 -> + identity -> relu ----
    acc2 = conv3x3(h1pad_ref, w2_ref, Cout, Cout)
    identity = x.reshape(H * W, Cin)
    out = jnp.maximum(acc2 * s2_ref[...] + b2_ref[...] + identity, 0.0)
    out_ref[0] = out.reshape(H, W, Cout).astype(out_ref.dtype)


def basic_block_pallas(x_nchw, w1_oihw, w2_oihw, bn1, bn2, eps=1e-5):
    """BasicBlock forward. x_nchw: (N, C, H, W) float32. Returns NCHW."""
    x = jnp.transpose(x_nchw, (0, 2, 3, 1))        # NCHW -> NHWC (channels on lanes)
    N, H, W, Cin = x.shape
    Cout = w1_oihw.shape[0]
    assert Cout == Cin, "stride=1 / no-downsample BasicBlock requires planes == inplanes"

    # OIHW -> (ky, kx, Cin, Cout) -> (3, 3*Cin, Cout); bf16 for the MXU.
    w1 = jnp.transpose(w1_oihw, (2, 3, 1, 0)).reshape(3, 3 * Cin, Cout).astype(jnp.bfloat16)
    w2 = jnp.transpose(w2_oihw, (2, 3, 1, 0)).reshape(3, 3 * Cout, Cout).astype(jnp.bfloat16)

    def fold(bn):
        gamma, beta, mean, var = bn
        scale = gamma / jnp.sqrt(var + eps)
        bias = beta - mean * scale
        return (scale.reshape(1, Cout).astype(jnp.float32),
                bias.reshape(1, Cout).astype(jnp.float32))

    s1, b1 = fold(bn1)
    s2, b2 = fold(bn2)

    out_nhwc = pl.pallas_call(
        _basic_block_kernel,
        out_shape=jax.ShapeDtypeStruct((N, H, W, Cout), x.dtype),
        grid=(N,),
        in_specs=[
            pl.BlockSpec((1, H, W, Cin), lambda n: (n, 0, 0, 0)),
            pl.BlockSpec((3, 3 * Cin, Cout), lambda n: (0, 0, 0)),
            pl.BlockSpec((3, 3 * Cout, Cout), lambda n: (0, 0, 0)),
            pl.BlockSpec((1, Cout), lambda n: (0, 0)),
            pl.BlockSpec((1, Cout), lambda n: (0, 0)),
            pl.BlockSpec((1, Cout), lambda n: (0, 0)),
            pl.BlockSpec((1, Cout), lambda n: (0, 0)),
        ],
        out_specs=pl.BlockSpec((1, H, W, Cout), lambda n: (n, 0, 0, 0)),
        scratch_shapes=[
            pltpu.VMEM((H + 2, W + 2, Cin), jnp.float32),
            pltpu.VMEM((H + 2, W + 2, Cout), jnp.float32),
        ],
        compiler_params=pltpu.CompilerParams(
            dimension_semantics=("parallel",),
            vmem_limit_bytes=48 * 1024 * 1024,
        ),
    )(x, w1, w2, s1, b1, s2, b2)

    return jnp.transpose(out_nhwc, (0, 3, 1, 2))   # NHWC -> NCHW


def _reference(x_nchw, w1, w2, bn1, bn2, eps=1e-5):
    """Pure-JAX f32 reference using lax.conv (NCHW / OIHW) for verification."""
    def conv(x, w):
        return lax.conv_general_dilated(
            x, w, window_strides=(1, 1), padding=((1, 1), (1, 1)),
            dimension_numbers=("NCHW", "OIHW", "NCHW"))

    def bn(x, p):
        gamma, beta, mean, var = p
        s = gamma / jnp.sqrt(var + eps)
        b = beta - mean * s
        return x * s[None, :, None, None] + b[None, :, None, None]

    out = jax.nn.relu(bn(conv(x_nchw, w1), bn1))
    out = bn(conv(out, w2), bn2)
    return jax.nn.relu(out + x_nchw)


if __name__ == "__main__":
    # Small shapes consistent with BasicBlock(inplanes=4, planes=4, stride=1).
    N, C, H, W = 2, 4, 16, 16
    key = jax.random.PRNGKey(0)
    kx, k1, k2, kg1, kb1, km1, kv1, kg2, kb2, km2, kv2 = jax.random.split(key, 11)

    x = jax.random.normal(kx, (N, C, H, W), jnp.float32)

    # Conv weights, PyTorch OIHW convention (Cout, Cin, 3, 3), no bias.
    w1 = jax.random.normal(k1, (C, C, 3, 3), jnp.float32) * 0.1
    w2 = jax.random.normal(k2, (C, C, 3, 3), jnp.float32) * 0.1

    # BatchNorm params (gamma, beta, running_mean, running_var), eval-mode semantics.
    bn1 = (1.0 + 0.1 * jax.random.normal(kg1, (C,), jnp.float32),
           0.1 * jax.random.normal(kb1, (C,), jnp.float32),
           0.1 * jax.random.normal(km1, (C,), jnp.float32),
           1.0 + 0.1 * jax.nn.softplus(jax.random.normal(kv1, (C,), jnp.float32)))
    bn2 = (1.0 + 0.1 * jax.random.normal(kg2, (C,), jnp.float32),
           0.1 * jax.random.normal(kb2, (C,), jnp.float32),
           0.1 * jax.random.normal(km2, (C,), jnp.float32),
           1.0 + 0.1 * jax.nn.softplus(jax.random.normal(kv2, (C,), jnp.float32)))

    out = jax.block_until_ready(basic_block_pallas(x, w1, w2, bn1, bn2))
    ref = jax.block_until_ready(_reference(x, w1, w2, bn1, bn2))

    assert out.shape == (N, C, H, W)
    # Matmuls run in bf16 (f32 accumulation) per the TPU perf guidance, so allow
    # bf16-level tolerance vs. the pure-f32 reference; structural errors would be
    # orders of magnitude larger.
    max_err = float(jnp.max(jnp.abs(out - ref)))
    assert max_err < 1e-1, f"mismatch vs reference: max abs err = {max_err}"
    print("KERNEL_OK")
</pallas_src>

<mosaic_0001>
module attributes {stable_mosaic.version = 11 : i64} {
  func.func @_basic_block_kernel(%arg0: i32, %arg1: memref<1x16x16x4xf32, #tpu.memory_space<vmem>>, %arg2: memref<3x12x4xbf16, #tpu.memory_space<vmem>>, %arg3: memref<3x12x4xbf16, #tpu.memory_space<vmem>>, %arg4: memref<1x4xf32, #tpu.memory_space<vmem>>, %arg5: memref<1x4xf32, #tpu.memory_space<vmem>>, %arg6: memref<1x4xf32, #tpu.memory_space<vmem>>, %arg7: memref<1x4xf32, #tpu.memory_space<vmem>>, %arg8: memref<1x16x16x4xf32, #tpu.memory_space<vmem>>, %arg9: memref<18x18x4xf32, #tpu.memory_space<vmem>>, %arg10: memref<18x18x4xf32, #tpu.memory_space<vmem>>) attributes {dimension_semantics = [#tpu.dimension_semantics<parallel>], iteration_bounds = array<i64: 2>, scalar_prefetch = 0 : i64, scratch_operands = 2 : i64, tpu.core_type = #tpu.core_type<tc>, window_params = [{transform_indices = @transform_0, window_bounds = array<i64: 1, 16, 16, 4>}, {pipeline_mode = #tpu.pipeline_mode<synchronous>, transform_indices = @transform_1, window_bounds = array<i64: 3, 12, 4>}, {pipeline_mode = #tpu.pipeline_mode<synchronous>, transform_indices = @transform_2, window_bounds = array<i64: 3, 12, 4>}, {pipeline_mode = #tpu.pipeline_mode<synchronous>, transform_indices = @transform_3, window_bounds = array<i64: 1, 4>}, {pipeline_mode = #tpu.pipeline_mode<synchronous>, transform_indices = @transform_4, window_bounds = array<i64: 1, 4>}, {pipeline_mode = #tpu.pipeline_mode<synchronous>, transform_indices = @transform_5, window_bounds = array<i64: 1, 4>}, {pipeline_mode = #tpu.pipeline_mode<synchronous>, transform_indices = @transform_6, window_bounds = array<i64: 1, 4>}, {transform_indices = @transform_7, window_bounds = array<i64: 1, 16, 16, 4>}]} {
    %c0 = arith.constant 0 : index
    %c0_0 = arith.constant 0 : index
    %c0_1 = arith.constant 0 : index
    %c0_2 = arith.constant 0 : index
    %0 = vector.load %arg1[%c0, %c0_0, %c0_1, %c0_2] : memref<1x16x16x4xf32, #tpu.memory_space<vmem>>, vector<1x16x16x4xf32>
    %1 = vector.shape_cast %0 : vector<1x16x16x4xf32> to vector<16x16x4xf32>
    %cst = arith.constant 0.000000e+00 : f32
    %2 = vector.broadcast %cst : f32 to vector<1x18x4xf32>
    %c0_3 = arith.constant 0 : index
    %c0_4 = arith.constant 0 : index
    %c0_5 = arith.constant 0 : index
    %3 = vector.load %arg9[%c0_3, %c0_4, %c0_5] : memref<18x18x4xf32, #tpu.memory_space<vmem>>, vector<1x18x4xf32>
    tpu.vector_store %arg9[%c0_3, %c0_4, %c0_5], %2 {strides = array<i32>} : memref<18x18x4xf32, #tpu.memory_space<vmem>>, vector<1x18x4xf32>,
    %cst_6 = arith.constant 0.000000e+00 : f32
    %4 = vector.broadcast %cst_6 : f32 to vector<1x18x4xf32>
    %c17 = arith.constant 17 : index
    %c0_7 = arith.constant 0 : index
    %c0_8 = arith.constant 0 : index
    %5 = vector.load %arg9[%c17, %c0_7, %c0_8] : memref<18x18x4xf32, #tpu.memory_space<vmem>>, vector<1x18x4xf32>
    tpu.vector_store %arg9[%c17, %c0_7, %c0_8], %4 {strides = array<i32>} : memref<18x18x4xf32, #tpu.memory_space<vmem>>, vector<1x18x4xf32>,
    %cst_9 = arith.constant 0.000000e+00 : f32
    %6 = vector.broadcast %cst_9 : f32 to vector<18x1x4xf32>
    %c0_10 = arith.constant 0 : index
    %c0_11 = arith.constant 0 : index
    %c0_12 = arith.constant 0 : index
    %7 = vector.load %arg9[%c0_10, %c0_11, %c0_12] : memref<18x18x4xf32, #tpu.memory_space<vmem>>, vector<18x1x4xf32>
    tpu.vector_store %arg9[%c0_10, %c0_11, %c0_12], %6 {strides = array<i32>} : memref<18x18x4xf32, #tpu.memory_space<vmem>>, vector<18x1x4xf32>,
    %cst_13 = arith.constant 0.000000e+00 : f32
    %8 = vector.broadcast %cst_13 : f32 to vector<18x1x4xf32>
    %c0_14 = arith.constant 0 : index
    %c17_15 = arith.constant 17 : index
    %c0_16 = arith.constant 0 : index
    %9 = vector.load %arg9[%c0_14, %c17_15, %c0_16] : memref<18x18x4xf32, #tpu.memory_space<vmem>>, vector<18x1x4xf32>
    tpu.vector_store %arg9[%c0_14, %c17_15, %c0_16], %8 {strides = array<i32>} : memref<18x18x4xf32, #tpu.memory_space<vmem>>, vector<18x1x4xf32>,
    %cst_17 = arith.constant 0.000000e+00 : f32
    %10 = vector.broadcast %cst_17 : f32 to vector<1x18x4xf32>
    %c0_18 = arith.constant 0 : index
    %c0_19 = arith.constant 0 : index
    %c0_20 = arith.constant 0 : index
    %11 = vector.load %arg10[%c0_18, %c0_19, %c0_20] : memref<18x18x4xf32, #tpu.memory_space<vmem>>, vector<1x18x4xf32>
    tpu.vector_store %arg10[%c0_18, %c0_19, %c0_20], %10 {strides = array<i32>} : memref<18x18x4xf32, #tpu.memory_space<vmem>>, vector<1x18x4xf32>,
    %cst_21 = arith.constant 0.000000e+00 : f32
    %12 = vector.broadcast %cst_21 : f32 to vector<1x18x4xf32>
    %c17_22 = arith.constant 17 : index
    %c0_23 = arith.constant 0 : index
    %c0_24 = arith.constant 0 : index
    %13 = vector.load %arg10[%c17_22, %c0_23, %c0_24] : memref<18x18x4xf32, #tpu.memory_space<vmem>>, vector<1x18x4xf32>
    tpu.vector_store %arg10[%c17_22, %c0_23, %c0_24], %12 {strides = array<i32>} : memref<18x18x4xf32, #tpu.memory_space<vmem>>, vector<1x18x4xf32>,
    %cst_25 = arith.constant 0.000000e+00 : f32
    %14 = vector.broadcast %cst_25 : f32 to vector<18x1x4xf32>
    %c0_26 = arith.constant 0 : index
    %c0_27 = arith.constant 0 : index
    %c0_28 = arith.constant 0 : index
    %15 = vector.load %arg10[%c0_26, %c0_27, %c0_28] : memref<18x18x4xf32, #tpu.memory_space<vmem>>, vector<18x1x4xf32>
    tpu.vector_store %arg10[%c0_26, %c0_27, %c0_28], %14 {strides = array<i32>} : memref<18x18x4xf32, #tpu.memory_space<vmem>>, vector<18x1x4xf32>,
    %cst_29 = arith.constant 0.000000e+00 : f32
    %16 = vector.broadcast %cst_29 : f32 to vector<18x1x4xf32>
    %c0_30 = arith.constant 0 : index
    %c17_31 = arith.constant 17 : index
    %c0_32 = arith.constant 0 : index
    %17 = vector.load %arg10[%c0_30, %c17_31, %c0_32] : memref<18x18x4xf32, #tpu.memory_space<vmem>>, vector<18x1x4xf32>
    tpu.vector_store %arg10[%c0_30, %c17_31, %c0_32], %16 {strides = array<i32>} : memref<18x18x4xf32, #tpu.memory_space<vmem>>, vector<18x1x4xf32>,
    %c1 = arith.constant 1 : index
    %c1_33 = arith.constant 1 : index
    %c0_34 = arith.constant 0 : index
    %18 = vector.load %arg9[%c1, %c1_33, %c0_34] : memref<18x18x4xf32, #tpu.memory_space<vmem>>, vector<16x16x4xf32>
    tpu.vector_store %arg9[%c1, %c1_33, %c0_34], %1 {strides = array<i32>} : memref<18x18x4xf32, #tpu.memory_space<vmem>>, vector<16x16x4xf32>,
    %cst_35 = arith.constant 0.000000e+00 : f32
    %19 = vector.broadcast %cst_35 : f32 to vector<256x4xf32>
    %c0_36 = arith.constant 0 : index
    %c0_37 = arith.constant 0 : index
    %c0_38 = arith.constant 0 : index
    %20 = vector.load %arg9[%c0_36, %c0_37, %c0_38] : memref<18x18x4xf32, #tpu.memory_space<vmem>>, vector<16x18x4xf32>
    %21 = vector.extract_strided_slice %20 {offsets = [0, 0, 0], sizes = [16, 16, 4], strides = [1, 1, 1]} : vector<16x18x4xf32> to vector<16x16x4xf32>
    %22 = vector.extract_strided_slice %20 {offsets = [0, 1, 0], sizes = [16, 16, 4], strides = [1, 1, 1]} : vector<16x18x4xf32> to vector<16x16x4xf32>
    %23 = vector.extract_strided_slice %20 {offsets = [0, 2, 0], sizes = [16, 16, 4], strides = [1, 1, 1]} : vector<16x18x4xf32> to vector<16x16x4xf32>
    %24 = tpu.concatenate %21, %22, %23 in 2 : vector<16x16x4xf32>, vector<16x16x4xf32>, vector<16x16x4xf32> -> vector<16x16x12xf32>
    %25 = vector.shape_cast %24 : vector<16x16x12xf32> to vector<256x12xf32>
    %26 = arith.truncf %25 : vector<256x12xf32> to vector<256x12xbf16>
    %c0_39 = arith.constant 0 : index
    %c0_40 = arith.constant 0 : index
    %c0_41 = arith.constant 0 : index
    %27 = vector.load %arg2[%c0_39, %c0_40, %c0_41] : memref<3x12x4xbf16, #tpu.memory_space<vmem>>, vector<1x12x4xbf16>
    %28 = vector.shape_cast %27 : vector<1x12x4xbf16> to vector<12x4xbf16>
    %cst_42 = arith.constant dense<0.000000e+00> : vector<256x4xf32>
    %29 = tpu.matmul %26, %28, %cst_42 {dimension_numbers = #tpu.dot_dimension_numbers<[1], [0], [0], [1], [0, 0, 1, 1], [], []>} : vector<256x12xbf16>, vector<12x4xbf16>, vector<256x4xf32> -> vector<256x4xf32>
    %30 = arith.addf %19, %29 : vector<256x4xf32>
    %c1_43 = arith.constant 1 : index
    %c0_44 = arith.constant 0 : index
    %c0_45 = arith.constant 0 : index
    %31 = vector.load %arg9[%c1_43, %c0_44, %c0_45] : memref<18x18x4xf32, #tpu.memory_space<vmem>>, vector<16x18x4xf32>
    %32 = vector.extract_strided_slice %31 {offsets = [0, 0, 0], sizes = [16, 16, 4], strides = [1, 1, 1]} : vector<16x18x4xf32> to vector<16x16x4xf32>
    %33 = vector.extract_strided_slice %31 {offsets = [0, 1, 0], sizes = [16, 16, 4], strides = [1, 1, 1]} : vector<16x18x4xf32> to vector<16x16x4xf32>
    %34 = vector.extract_strided_slice %31 {offsets = [0, 2, 0], sizes = [16, 16, 4], strides = [1, 1, 1]} : vector<16x18x4xf32> to vector<16x16x4xf32>
    %35 = tpu.concatenate %32, %33, %34 in 2 : vector<16x16x4xf32>, vector<16x16x4xf32>, vector<16x16x4xf32> -> vector<16x16x12xf32>
    %36 = vector.shape_cast %35 : vector<16x16x12xf32> to vector<256x12xf32>
    %37 = arith.truncf %36 : vector<256x12xf32> to vector<256x12xbf16>
    %c1_46 = arith.constant 1 : index
    %c0_47 = arith.constant 0 : index
    %c0_48 = arith.constant 0 : index
    %38 = vector.load %arg2[%c1_46, %c0_47, %c0_48] : memref<3x12x4xbf16, #tpu.memory_space<vmem>>, vector<1x12x4xbf16>
    %39 = vector.shape_cast %38 : vector<1x12x4xbf16> to vector<12x4xbf16>
    %cst_49 = arith.constant dense<0.000000e+00> : vector<256x4xf32>
    %40 = tpu.matmul %37, %39, %cst_49 {dimension_numbers = #tpu.dot_dimension_numbers<[1], [0], [0], [1], [0, 0, 1, 1], [], []>} : vector<256x12xbf16>, vector<12x4xbf16>, vector<256x4xf32> -> vector<256x4xf32>
    %41 = arith.addf %30, %40 : vector<256x4xf32>
    %c2 = arith.constant 2 : index
    %c0_50 = arith.constant 0 : index
    %c0_51 = arith.constant 0 : index
    %42 = vector.load %arg9[%c2, %c0_50, %c0_51] : memref<18x18x4xf32, #tpu.memory_space<vmem>>, vector<16x18x4xf32>
    %43 = vector.extract_strided_slice %42 {offsets = [0, 0, 0], sizes = [16, 16, 4], strides = [1, 1, 1]} : vector<16x18x4xf32> to vector<16x16x4xf32>
    %44 = vector.extract_strided_slice %42 {offsets = [0, 1, 0], sizes = [16, 16, 4], strides = [1, 1, 1]} : vector<16x18x4xf32> to vector<16x16x4xf32>
    %45 = vector.extract_strided_slice %42 {offsets = [0, 2, 0], sizes = [16, 16, 4], strides = [1, 1, 1]} : vector<16x18x4xf32> to vector<16x16x4xf32>
    %46 = tpu.concatenate %43, %44, %45 in 2 : vector<16x16x4xf32>, vector<16x16x4xf32>, vector<16x16x4xf32> -> vector<16x16x12xf32>
    %47 = vector.shape_cast %46 : vector<16x16x12xf32> to vector<256x12xf32>
    %48 = arith.truncf %47 : vector<256x12xf32> to vector<256x12xbf16>
    %c2_52 = arith.constant 2 : index
    %c0_53 = arith.constant 0 : index
    %c0_54 = arith.constant 0 : index
    %49 = vector.load %arg2[%c2_52, %c0_53, %c0_54] : memref<3x12x4xbf16, #tpu.memory_space<vmem>>, vector<1x12x4xbf16>
    %50 = vector.shape_cast %49 : vector<1x12x4xbf16> to vector<12x4xbf16>
    %cst_55 = arith.constant dense<0.000000e+00> : vector<256x4xf32>
    %51 = tpu.matmul %48, %50, %cst_55 {dimension_numbers = #tpu.dot_dimension_numbers<[1], [0], [0], [1], [0, 0, 1, 1], [], []>} : vector<256x12xbf16>, vector<12x4xbf16>, vector<256x4xf32> -> vector<256x4xf32>
    %52 = arith.addf %41, %51 : vector<256x4xf32>
    %c0_56 = arith.constant 0 : index
    %c0_57 = arith.constant 0 : index
    %53 = vector.load %arg4[%c0_56, %c0_57] : memref<1x4xf32, #tpu.memory_space<vmem>>, vector<1x4xf32>
    %54 = vector.broadcast %53 : vector<1x4xf32> to vector<256x4xf32>
    %55 = arith.mulf %52, %54 : vector<256x4xf32>
    %c0_58 = arith.constant 0 : index
    %c0_59 = arith.constant 0 : index
    %56 = vector.load %arg5[%c0_58, %c0_59] : memref<1x4xf32, #tpu.memory_space<vmem>>, vector<1x4xf32>
    %57 = vector.broadcast %56 : vector<1x4xf32> to vector<256x4xf32>
    %58 = arith.addf %55, %57 : vector<256x4xf32>
    %cst_60 = arith.constant 0.000000e+00 : f32
    %59 = vector.broadcast %cst_60 : f32 to vector<256x4xf32>
    %60 = arith.maximumf %58, %59 : vector<256x4xf32>
    %61 = vector.shape_cast %60 : vector<256x4xf32> to vector<16x16x4xf32>
    %c1_61 = arith.constant 1 : index
    %c1_62 = arith.constant 1 : index
    %c0_63 = arith.constant 0 : index
    %62 = vector.load %arg10[%c1_61, %c1_62, %c0_63] : memref<18x18x4xf32, #tpu.memory_space<vmem>>, vector<16x16x4xf32>
    tpu.vector_store %arg10[%c1_61, %c1_62, %c0_63], %61 {strides = array<i32>} : memref<18x18x4xf32, #tpu.memory_space<vmem>>, vector<16x16x4xf32>,
    %cst_64 = arith.constant 0.000000e+00 : f32
    %63 = vector.broadcast %cst_64 : f32 to vector<256x4xf32>
    %c0_65 = arith.constant 0 : index
    %c0_66 = arith.constant 0 : index
    %c0_67 = arith.constant 0 : index
    %64 = vector.load %arg10[%c0_65, %c0_66, %c0_67] : memref<18x18x4xf32, #tpu.memory_space<vmem>>, vector<16x18x4xf32>
    %65 = vector.extract_strided_slice %64 {offsets = [0, 0, 0], sizes = [16, 16, 4], strides = [1, 1, 1]} : vector<16x18x4xf32> to vector<16x16x4xf32>
    %66 = vector.extract_strided_slice %64 {offsets = [0, 1, 0], sizes = [16, 16, 4], strides = [1, 1, 1]} : vector<16x18x4xf32> to vector<16x16x4xf32>
    %67 = vector.extract_strided_slice %64 {offsets = [0, 2, 0], sizes = [16, 16, 4], strides = [1, 1, 1]} : vector<16x18x4xf32> to vector<16x16x4xf32>
    %68 = tpu.concatenate %65, %66, %67 in 2 : vector<16x16x4xf32>, vector<16x16x4xf32>, vector<16x16x4xf32> -> vector<16x16x12xf32>
    %69 = vector.shape_cast %68 : vector<16x16x12xf32> to vector<256x12xf32>
    %70 = arith.truncf %69 : vector<256x12xf32> to vector<256x12xbf16>
    %c0_68 = arith.constant 0 : index
    %c0_69 = arith.constant 0 : index
    %c0_70 = arith.constant 0 : index
    %71 = vector.load %arg3[%c0_68, %c0_69, %c0_70] : memref<3x12x4xbf16, #tpu.memory_space<vmem>>, vector<1x12x4xbf16>
    %72 = vector.shape_cast %71 : vector<1x12x4xbf16> to vector<12x4xbf16>
    %cst_71 = arith.constant dense<0.000000e+00> : vector<256x4xf32>
    %73 = tpu.matmul %70, %72, %cst_71 {dimension_numbers = #tpu.dot_dimension_numbers<[1], [0], [0], [1], [0, 0, 1, 1], [], []>} : vector<256x12xbf16>, vector<12x4xbf16>, vector<256x4xf32> -> vector<256x4xf32>
    %74 = arith.addf %63, %73 : vector<256x4xf32>
    %c1_72 = arith.constant 1 : index
    %c0_73 = arith.constant 0 : index
    %c0_74 = arith.constant 0 : index
    %75 = vector.load %arg10[%c1_72, %c0_73, %c0_74] : memref<18x18x4xf32, #tpu.memory_space<vmem>>, vector<16x18x4xf32>
    %76 = vector.extract_strided_slice %75 {offsets = [0, 0, 0], sizes = [16, 16, 4], strides = [1, 1, 1]} : vector<16x18x4xf32> to vector<16x16x4xf32>
    %77 = vector.extract_strided_slice %75 {offsets = [0, 1, 0], sizes = [16, 16, 4], strides = [1, 1, 1]} : vector<16x18x4xf32> to vector<16x16x4xf32>
    %78 = vector.extract_strided_slice %75 {offsets = [0, 2, 0], sizes = [16, 16, 4], strides = [1, 1, 1]} : vector<16x18x4xf32> to vector<16x16x4xf32>
    %79 = tpu.concatenate %76, %77, %78 in 2 : vector<16x16x4xf32>, vector<16x16x4xf32>, vector<16x16x4xf32> -> vector<16x16x12xf32>
    %80 = vector.shape_cast %79 : vector<16x16x12xf32> to vector<256x12xf32>
    %81 = arith.truncf %80 : vector<256x12xf32> to vector<256x12xbf16>
    %c1_75 = arith.constant 1 : index
    %c0_76 = arith.constant 0 : index
    %c0_77 = arith.constant 0 : index
    %82 = vector.load %arg3[%c1_75, %c0_76, %c0_77] : memref<3x12x4xbf16, #tpu.memory_space<vmem>>, vector<1x12x4xbf16>
    %83 = vector.shape_cast %82 : vector<1x12x4xbf16> to vector<12x4xbf16>
    %cst_78 = arith.constant dense<0.000000e+00> : vector<256x4xf32>
    %84 = tpu.matmul %81, %83, %cst_78 {dimension_numbers = #tpu.dot_dimension_numbers<[1], [0], [0], [1], [0, 0, 1, 1], [], []>} : vector<256x12xbf16>, vector<12x4xbf16>, vector<256x4xf32> -> vector<256x4xf32>
    %85 = arith.addf %74, %84 : vector<256x4xf32>
    %c2_79 = arith.constant 2 : index
    %c0_80 = arith.constant 0 : index
    %c0_81 = arith.constant 0 : index
    %86 = vector.load %arg10[%c2_79, %c0_80, %c0_81] : memref<18x18x4xf32, #tpu.memory_space<vmem>>, vector<16x18x4xf32>
    %87 = vector.extract_strided_slice %86 {offsets = [0, 0, 0], sizes = [16, 16, 4], strides = [1, 1, 1]} : vector<16x18x4xf32> to vector<16x16x4xf32>
    %88 = vector.extract_strided_slice %86 {offsets = [0, 1, 0], sizes = [16, 16, 4], strides = [1, 1, 1]} : vector<16x18x4xf32> to vector<16x16x4xf32>
    %89 = vector.extract_strided_slice %86 {offsets = [0, 2, 0], sizes = [16, 16, 4], strides = [1, 1, 1]} : vector<16x18x4xf32> to vector<16x16x4xf32>
    %90 = tpu.concatenate %87, %88, %89 in 2 : vector<16x16x4xf32>, vector<16x16x4xf32>, vector<16x16x4xf32> -> vector<16x16x12xf32>
    %91 = vector.shape_cast %90 : vector<16x16x12xf32> to vector<256x12xf32>
    %92 = arith.truncf %91 : vector<256x12xf32> to vector<256x12xbf16>
    %c2_82 = arith.constant 2 : index
    %c0_83 = arith.constant 0 : index
    %c0_84 = arith.constant 0 : index
    %93 = vector.load %arg3[%c2_82, %c0_83, %c0_84] : memref<3x12x4xbf16, #tpu.memory_space<vmem>>, vector<1x12x4xbf16>
    %94 = vector.shape_cast %93 : vector<1x12x4xbf16> to vector<12x4xbf16>
    %cst_85 = arith.constant dense<0.000000e+00> : vector<256x4xf32>
    %95 = tpu.matmul %92, %94, %cst_85 {dimension_numbers = #tpu.dot_dimension_numbers<[1], [0], [0], [1], [0, 0, 1, 1], [], []>} : vector<256x12xbf16>, vector<12x4xbf16>, vector<256x4xf32> -> vector<256x4xf32>
    %96 = arith.addf %85, %95 : vector<256x4xf32>
    %97 = vector.shape_cast %1 : vector<16x16x4xf32> to vector<256x4xf32>
    %c0_86 = arith.constant 0 : index
    %c0_87 = arith.constant 0 : index
    %98 = vector.load %arg6[%c0_86, %c0_87] : memref<1x4xf32, #tpu.memory_space<vmem>>, vector<1x4xf32>
    %99 = vector.broadcast %98 : vector<1x4xf32> to vector<256x4xf32>
    %100 = arith.mulf %96, %99 : vector<256x4xf32>
    %c0_88 = arith.constant 0 : index
    %c0_89 = arith.constant 0 : index
    %101 = vector.load %arg7[%c0_88, %c0_89] : memref<1x4xf32, #tpu.memory_space<vmem>>, vector<1x4xf32>
    %102 = vector.broadcast %101 : vector<1x4xf32> to vector<256x4xf32>
    %103 = arith.addf %100, %102 : vector<256x4xf32>
    %104 = arith.addf %103, %97 : vector<256x4xf32>
    %cst_90 = arith.constant 0.000000e+00 : f32
    %105 = vector.broadcast %cst_90 : f32 to vector<256x4xf32>
    %106 = arith.maximumf %104, %105 : vector<256x4xf32>
    %107 = vector.shape_cast %106 : vector<256x4xf32> to vector<16x16x4xf32>
    %c0_91 = arith.constant 0 : index
    %c0_92 = arith.constant 0 : index
    %c0_93 = arith.constant 0 : index
    %c0_94 = arith.constant 0 : index
    %108 = vector.load %arg8[%c0_91, %c0_92, %c0_93, %c0_94] : memref<1x16x16x4xf32, #tpu.memory_space<vmem>>, vector<1x16x16x4xf32>
    %109 = vector.shape_cast %108 : vector<1x16x16x4xf32> to vector<16x16x4xf32>
    %110 = vector.shape_cast %107 : vector<16x16x4xf32> to vector<1x16x16x4xf32>
    tpu.vector_store %arg8[%c0_91, %c0_92, %c0_93, %c0_94], %110 {strides = array<i32>} : memref<1x16x16x4xf32, #tpu.memory_space<vmem>>, vector<1x16x16x4xf32>,
    return
  }
  func.func @transform_0(%arg0: i32) -> (i32, i32, i32, i32) {
    %c0_i32 = arith.constant 0 : i32
    %c0_i32_0 = arith.constant 0 : i32
    %c0_i32_1 = arith.constant 0 : i32
    %c0_i32_2 = arith.constant 0 : i32
    return %arg0, %c0_i32, %c0_i32_0, %c0_i32_1 : i32, i32, i32, i32
  }
  func.func @transform_1(%arg0: i32) -> (i32, i32, i32) {
    %c0_i32 = arith.constant 0 : i32
    %c0_i32_0 = arith.constant 0 : i32
    %c0_i32_1 = arith.constant 0 : i32
    %c0_i32_2 = arith.constant 0 : i32
    return %c0_i32, %c0_i32_0, %c0_i32_1 : i32, i32, i32
  }
  func.func @transform_2(%arg0: i32) -> (i32, i32, i32) {
    %c0_i32 = arith.constant 0 : i32
    %c0_i32_0 = arith.constant 0 : i32
    %c0_i32_1 = arith.constant 0 : i32
    %c0_i32_2 = arith.constant 0 : i32
    return %c0_i32, %c0_i32_0, %c0_i32_1 : i32, i32, i32
  }
  func.func @transform_3(%arg0: i32) -> (i32, i32) {
    %c0_i32 = arith.constant 0 : i32
    %c0_i32_0 = arith.constant 0 : i32
    %c0_i32_1 = arith.constant 0 : i32
    return %c0_i32, %c0_i32_0 : i32, i32
  }
  func.func @transform_4(%arg0: i32) -> (i32, i32) {
    %c0_i32 = arith.constant 0 : i32
    %c0_i32_0 = arith.constant 0 : i32
    %c0_i32_1 = arith.constant 0 : i32
    return %c0_i32, %c0_i32_0 : i32, i32
  }
  func.func @transform_5(%arg0: i32) -> (i32, i32) {
    %c0_i32 = arith.constant 0 : i32
    %c0_i32_0 = arith.constant 0 : i32
    %c0_i32_1 = arith.constant 0 : i32
    return %c0_i32, %c0_i32_0 : i32, i32
  }
  func.func @transform_6(%arg0: i32) -> (i32, i32) {
    %c0_i32 = arith.constant 0 : i32
    %c0_i32_0 = arith.constant 0 : i32
    %c0_i32_1 = arith.constant 0 : i32
    return %c0_i32, %c0_i32_0 : i32, i32
  }
  func.func @transform_7(%arg0: i32) -> (i32, i32, i32, i32) {
    %c0_i32 = arith.constant 0 : i32
    %c0_i32_0 = arith.constant 0 : i32
    %c0_i32_1 = arith.constant 0 : i32
    %c0_i32_2 = arith.constant 0 : i32
    return %arg0, %c0_i32, %c0_i32_0, %c0_i32_1 : i32, i32, i32, i32
  }
}

</mosaic_0001>

<bundles_post_ra>
// kernel: tpu_custom_call.1
= control target key start
LH: loop header
LB: loop body
LE: loop exit
PB: predicated region body
PF: predicated region fallthrough
CT: control target
= control target key end

     0   :  { %s6190_s24 = smov 0   ;;  %s9835_s0 = inlined_call_operand.vmem [shape: f32[2,16,16,4], index: 0, kind: input, shape index: {}]   ;;  %s9836_s1 = inlined_call_operand.vmem [shape: bf16[3,12,4], index: 1, kind: input, shape index: {}]   ;;  %s9837_s2 = inlined_call_operand.vmem [shape: bf16[3,12,4], index: 2, kind: input, shape index: {}]   ;;  %s9838_s3 = inlined_call_operand.vmem [shape: f32[1,4], index: 3, kind: input, shape index: {}]   ;;  %s9839_s4 = inlined_call_operand.vmem [shape: f32[1,4], index: 4, kind: input, shape index: {}]   ;;  %s9840_s5 = inlined_call_operand.vmem [shape: f32[1,4], index: 5, kind: input, shape index: {}]   ;;  %s9841_s6 = inlined_call_operand.vmem [shape: f32[1,4], index: 6, kind: input, shape index: {}]   ;;  %s9842_s7 = inlined_call_operand.vmem [shape: f32[2,16,16,4], index: 7, kind: output, shape index: {}]  }
   0x1 LB: > { %s4918_s25 = sadd.s32 4294967295, %s6145_s24   ;;  %p4922_p0 = scmp.ge.s32.totalorder %s6145_s24, 1  ;;  %s6145_s24 = sphi %s6190_s24, %s17_s24  }
   0x2   : > { %p237_p1 = scmp.lt.s32.totalorder %s6145_s24, 3 }
   0x4   : > { %p238_p2 = pnand %p4922_p0, %p237_p1 }
   0x6   : > { %241 = sbr.rel (%p238_p2) target bundleno = 1276 (0x4fc), region = 48 }
   0xb   : > { %vm312_vm0 = vcmask 31744   ;;  %vm315_vm1 = vcmask 25600   ;;  %v6147_v0 = vmov 0.0   ;;  %vm321_vm2 = vcmask 24576   ;;  %s6148_s26 = smov 4   ;;  %p269_p3 = scmp.lt.s32.totalorder %s4918_s25, 1 }
   0xc   : > { %313 = vst.msk [vmem:[#allocation2] sm:$0xff] %vm312_vm0, %v6147_v0  ;;  %vm530_vm3 = vcmask 1046528   ;;  %vm707_vm4 = vcmask 1045504   ;;  %s6149_s8 = smov 8   ;;  %vm916_vm5 = vcmask 64512   ;;  %vm1503_vm6 = vcmask 97280  }
   0xd   : > { %314 = vst.msk [vmem:[#allocation2 + $0x8] sm:$0xff] %vm312_vm0, %v6147_v0  ;;  %s10190_s25 = smov (!%p269_p3, %s4918_s25), 1 }
   0xe   : > { %316 = vst.msk [vmem:[#allocation2 + $0x10] sm:$0x3] %vm315_vm1, %v6147_v0  ;;  %s5057_s27 = sshll.u32 %s10190_s25, 8 }
   0xf   : > { %322 = vst.msk [vmem:[#allocation2] sm:$0x1] %vm321_vm2, %v6147_v0  ;;  %s6368_s30 = scalar_lea.vmem %s9835_s0, %s5057_s27  ;;  %s9487_s13 = scalar_lea.vmem %s9842_s7, %s5057_s27 }
  0x10   : > { %340 = vst.msk [vmem:[#allocation2 + $0x11] sm:$0x1] %vm321_vm2, %v6147_v0  ;;  %v6377_v10 = vld [vmem:[%s6368_s30 + $0x30] sm:$0xff]  ;;  %v6382_v11 = vld [vmem:[%s6368_s30 + $0x38] sm:$0xff]  ;;  %v6411_v15 = vld [vmem:[%s6368_s30] sm:$0xff] }
  0x11   : > { %318 = vst.msk [vmem:[#allocation2 + $0x198] sm:$0xff] %vm312_vm0, %v6147_v0  ;;  %v6399_v12 = vld [vmem:[%s6368_s30 + $0x10] sm:$0xff]  ;;  %v6404_v13 = vld [vmem:[%s6368_s30 + $0x18] sm:$0xff]  ;;  %v6421_v19 = vld [vmem:[%s6368_s30 + $0x8] sm:$0xff] }
  0x12   : > { %319 = vst.msk [vmem:[#allocation2 + $0x1a0] sm:$0xff] %vm312_vm0, %v6147_v0  ;;  %v6430_v22 = vld [vmem:[%s6368_s30 + $0x40] sm:$0xff]  ;;  %v6435_v23 = vld [vmem:[%s6368_s30 + $0x48] sm:$0xff]  ;;  %v6457_v29 = vld [vmem:[%s6368_s30 + $0x50] sm:$0xff] }
  0x13   : > { %320 = vst.msk [vmem:[#allocation2 + $0x1a8] sm:$0x3] %vm315_vm1, %v6147_v0  ;;  %v6446_v26 = vld [vmem:[%s6368_s30 + $0x20] sm:$0xff]  ;;  %v6452_v28 = vld [vmem:[%s6368_s30 + $0x28] sm:$0xff]  ;;  %v6463_v30 = vld [vmem:[%s6368_s30 + $0x58] sm:$0xff] }
  0x14   : > { %v6214_v1 = vld [vmem:[#allocation2 + $0x8] sm:$0xff]  ;;  %323 = vst.msk [vmem:[#allocation2 + $0x18] sm:$0x1] %vm321_vm2, %v6147_v0  ;;  %v6470_v32 = vld [vmem:[%s6368_s30 + $0x70] sm:$0xff]  ;;  %v6480_v36 = vld [vmem:[%s6368_s30 + $0x78] sm:$0xff] }
  0x15   : > { %v532_v2 = vrot.slane %v6214_v1, 1  ;;  %324 = vst.msk [vmem:[#allocation2 + $0x30] sm:$0x1] %vm321_vm2, %v6147_v0  ;;  %v6491_v40 = vld [vmem:[%s6368_s30 + $0x60] sm:$0xff]  ;;  %v6501_v44 = vld [vmem:[%s6368_s30 + $0x68] sm:$0xff] }
  0x16   : > { %v6221_v3 = vld [vmem:[#allocation2] sm:$0xff]  ;;  %325 = vst.msk [vmem:[#allocation2 + $0x48] sm:$0x1] %vm321_vm2, %v6147_v0  ;;  %v6529_v55 = vld [vmem:[%s6368_s30 + $0x88] sm:$0xff] }
  0x17   : > { %v6225_v4 = vld [vmem:[#allocation2 + $0x10] sm:$0x3]  ;;  %v531_v5 = vrot.slane %v6221_v3, 1  ;;  %326 = vst.msk [vmem:[#allocation2 + $0x60] sm:$0x1] %vm321_vm2, %v6147_v0  ;;  %v6518_v50 = vld [vmem:[%s6368_s30 + $0x80] sm:$0xff] }
  0x18   : > { %v534_v6 = vrot.slane %v6225_v4, 1  ;;  %327 = vst.msk [vmem:[#allocation2 + $0x78] sm:$0x1] %vm321_vm2, %v6147_v0  ;;  %v6546_v61 = vld [vmem:[%s6368_s30 + $0xa0] sm:$0xff] }
  0x19   : > { %v533_v7 = vsel %vm530_vm3, %v531_v5, %v532_v2  ;;  %328 = vst.msk [vmem:[#allocation2 + $0x90] sm:$0x1] %vm321_vm2, %v6147_v0  ;;  %v6558_v5 = vld [vmem:[%s6368_s30 + $0xa8] sm:$0xff] }
  0x1a   : > { %v535_v8 = vsel %vm530_vm3, %v532_v2, %v534_v6  ;;  %329 = vst.msk [vmem:[#allocation2 + $0xa8] sm:$0x1] %vm321_vm2, %v6147_v0 }
  0x1b   : > { %v5078_v9 = vpack.i.bf16 %v535_v8, %v533_v7  ;;  %330 = vst.msk [vmem:[#allocation2 + $0xc0] sm:$0x1] %vm321_vm2, %v6147_v0 }
  0x1c   : > { %331 = vst.msk [vmem:[#allocation2 + $0xd8] sm:$0x1] %vm321_vm2, %v6147_v0 }
  0x1d   : > { %5079 = vrot.lane.b32.xlu0 %v5078_v9, %s6148_s26  ;;  %332 = vst.msk [vmem:[#allocation2 + $0xf0] sm:$0x1] %vm321_vm2, %v6147_v0 }
  0x1e   : > { %333 = vst.msk [vmem:[#allocation2 + $0x108] sm:$0x1] %vm321_vm2, %v6147_v0 }
  0x1f   : > { %334 = vst.msk [vmem:[#allocation2 + $0x120] sm:$0x1] %vm321_vm2, %v6147_v0 }
  0x20   : > { %335 = vst.msk [vmem:[#allocation2 + $0x138] sm:$0x1] %vm321_vm2, %v6147_v0 }
  0x21   : > { %336 = vst.msk [vmem:[#allocation2 + $0x150] sm:$0x1] %vm321_vm2, %v6147_v0 }
  0x22   : > { %337 = vst.msk [vmem:[#allocation2 + $0x168] sm:$0x1] %vm321_vm2, %v6147_v0 }
  0x23   : > { %338 = vst.msk [vmem:[#allocation2 + $0x180] sm:$0x1] %vm321_vm2, %v6147_v0 }
  0x24   : > { %341 = vst.msk [vmem:[#allocation2 + $0x29] sm:$0x1] %vm321_vm2, %v6147_v0 }
  0x25   : > { %342 = vst.msk [vmem:[#allocation2 + $0x41] sm:$0x1] %vm321_vm2, %v6147_v0 }
  0x26   : > { %343 = vst.msk [vmem:[#allocation2 + $0x59] sm:$0x1] %vm321_vm2, %v6147_v0 }
  0x27   : > { %344 = vst.msk [vmem:[#allocation2 + $0x71] sm:$0x1] %vm321_vm2, %v6147_v0 }
  0x28   : > { %345 = vst.msk [vmem:[#allocation2 + $0x89] sm:$0x1] %vm321_vm2, %v6147_v0 }
  0x29   : > { %346 = vst.msk [vmem:[#allocation2 + $0xa1] sm:$0x1] %vm321_vm2, %v6147_v0 }
  0x2a   : > { %347 = vst.msk [vmem:[#allocation2 + $0xb9] sm:$0x1] %vm321_vm2, %v6147_v0 }
  0x2b   : > { %348 = vst.msk [vmem:[#allocation2 + $0xd1] sm:$0x1] %vm321_vm2, %v6147_v0 }
  0x2c   : > { %349 = vst.msk [vmem:[#allocation2 + $0xe9] sm:$0x1] %vm321_vm2, %v6147_v0 }
  0x2d   : > { %350 = vst.msk [vmem:[#allocation2 + $0x101] sm:$0x1] %vm321_vm2, %v6147_v0 }
  0x2e   : > { %351 = vst.msk [vmem:[#allocation2 + $0x119] sm:$0x1] %vm321_vm2, %v6147_v0 }
  0x2f   : > { %352 = vst.msk [vmem:[#allocation2 + $0x131] sm:$0x1] %vm321_vm2, %v6147_v0 }
  0x30   : > { %353 = vst.msk [vmem:[#allocation2 + $0x149] sm:$0x1] %vm321_vm2, %v6147_v0 }
  0x31   : > { %354 = vst.msk [vmem:[#allocation2 + $0x161] sm:$0x1] %vm321_vm2, %v6147_v0 }
  0x32   : > { %355 = vst.msk [vmem:[#allocation2 + $0x179] sm:$0x1] %vm321_vm2, %v6147_v0 }
  0x33   : > { %356 = vst.msk [vmem:[#allocation2 + $0x191] sm:$0x1] %vm321_vm2, %v6147_v0 }
  0x34   : > { %358 = vst.msk [vmem:[#allocation3] sm:$0xff] %vm312_vm0, %v6147_v0 }
  0x35   : > { %359 = vst.msk [vmem:[#allocation3 + $0x8] sm:$0xff] %vm312_vm0, %v6147_v0 }
  0x36   : > { %360 = vst.msk [vmem:[#allocation3 + $0x10] sm:$0x3] %vm315_vm1, %v6147_v0 }
  0x37   : > { %362 = vst.msk [vmem:[#allocation3 + $0x198] sm:$0xff] %vm312_vm0, %v6147_v0 }
  0x38   : > { %363 = vst.msk [vmem:[#allocation3 + $0x1a0] sm:$0xff] %vm312_vm0, %v6147_v0 }
  0x39   : > { %364 = vst.msk [vmem:[#allocation3 + $0x1a8] sm:$0x3] %vm315_vm1, %v6147_v0 }
  0x3a   : > { %366 = vst.msk [vmem:[#allocation3 + $0x18] sm:$0x1] %vm321_vm2, %v6147_v0 }
  0x3b   : > { %367 = vst.msk [vmem:[#allocation3 + $0x30] sm:$0x1] %vm321_vm2, %v6147_v0 }
  0x3c   : > { %368 = vst.msk [vmem:[#allocation3 + $0x48] sm:$0x1] %vm321_vm2, %v6147_v0 }
  0x3d   : > { %369 = vst.msk [vmem:[#allocation3 + $0x60] sm:$0x1] %vm321_vm2, %v6147_v0 }
  0x3e   : > { %370 = vst.msk [vmem:[#allocation3 + $0x78] sm:$0x1] %vm321_vm2, %v6147_v0 }
  0x3f   : > { %371 = vst.msk [vmem:[#allocation3 + $0x90] sm:$0x1] %vm321_vm2, %v6147_v0 }
  0x40   : > { %372 = vst.msk [vmem:[#allocation3 + $0xa8] sm:$0x1] %vm321_vm2, %v6147_v0 }
  0x41   : > { %373 = vst.msk [vmem:[#allocation3 + $0xc0] sm:$0x1] %vm321_vm2, %v6147_v0 }
  0x42   : > { %374 = vst.msk [vmem:[#allocation3 + $0xd8] sm:$0x1] %vm321_vm2, %v6147_v0 }
  0x43   : > { %375 = vst.msk [vmem:[#allocation3 + $0xf0] sm:$0x1] %vm321_vm2, %v6147_v0 }
  0x44   : > { %376 = vst.msk [vmem:[#allocation3 + $0x108] sm:$0x1] %vm321_vm2, %v6147_v0 }
  0x45   : > { %377 = vst.msk [vmem:[#allocation3 + $0x120] sm:$0x1] %vm321_vm2, %v6147_v0 }
  0x46   : > { %378 = vst.msk [vmem:[#allocation3 + $0x138] sm:$0x1] %vm321_vm2, %v6147_v0 }
  0x47   : > { %379 = vst.msk [vmem:[#allocation3 + $0x150] sm:$0x1] %vm321_vm2, %v6147_v0 }
  0x48   : > { %380 = vst.msk [vmem:[#allocation3 + $0x168] sm:$0x1] %vm321_vm2, %v6147_v0 }
  0x49   : > { %381 = vst.msk [vmem:[#allocation3 + $0x180] sm:$0x1] %vm321_vm2, %v6147_v0 }
  0x4a   : > { %384 = vst.msk [vmem:[#allocation3 + $0x29] sm:$0x1] %vm321_vm2, %v6147_v0 }
  0x4b   : > { %385 = vst.msk [vmem:[#allocation3 + $0x41] sm:$0x1] %vm321_vm2, %v6147_v0 }
  0x4c   : > { %386 = vst.msk [vmem:[#allocation3 + $0x59] sm:$0x1] %vm321_vm2, %v6147_v0 }
  0x4d   : > { %387 = vst.msk [vmem:[#allocation3 + $0x71] sm:$0x1] %vm321_vm2, %v6147_v0 }
  0x4e   : > { %388 = vst.msk [vmem:[#allocation3 + $0x89] sm:$0x1] %vm321_vm2, %v6147_v0 }
  0x4f   : > { %389 = vst.msk [vmem:[#allocation3 + $0xa1] sm:$0x1] %vm321_vm2, %v6147_v0 }
  0x50   : > { %390 = vst.msk [vmem:[#allocation3 + $0xb9] sm:$0x1] %vm321_vm2, %v6147_v0 }
  0x51   : > { %391 = vst.msk [vmem:[#allocation3 + $0xd1] sm:$0x1] %vm321_vm2, %v6147_v0 }
  0x52   : > { %392 = vst.msk [vmem:[#allocation3 + $0xe9] sm:$0x1] %vm321_vm2, %v6147_v0 }
  0x53   : > { %393 = vst.msk [vmem:[#allocation3 + $0x101] sm:$0x1] %vm321_vm2, %v6147_v0 }
  0x54   : > { %394 = vst.msk [vmem:[#allocation3 + $0x119] sm:$0x1] %vm321_vm2, %v6147_v0 }
  0x55   : > { %395 = vst.msk [vmem:[#allocation3 + $0x131] sm:$0x1] %vm321_vm2, %v6147_v0 }
  0x56   : > { %396 = vst.msk [vmem:[#allocation3 + $0x149] sm:$0x1] %vm321_vm2, %v6147_v0 }
  0x57   : > { %397 = vst.msk [vmem:[#allocation3 + $0x161] sm:$0x1] %vm321_vm2, %v6147_v0 }
  0x58   : > { %9958 = vst [vmem:[#allocation4_spill] sm:$0xff] %v6377_v10 }
  0x59   : > { %398 = vst.msk [vmem:[#allocation3 + $0x179] sm:$0x1] %vm321_vm2, %v6147_v0 }
  0x5a   : > { %9959 = vst [vmem:[#allocation5_spill] sm:$0xff] %v6382_v11 }
  0x5b   : > { %399 = vst.msk [vmem:[#allocation3 + $0x191] sm:$0x1] %vm321_vm2, %v6147_v0 }
  0x5c   : > { %408 = vst.msk [vmem:[#allocation2 + $0x61] sm:$0xff] %vm312_vm0, %v6377_v10 }
  0x5d   : > { %409 = vst.msk [vmem:[#allocation2 + $0x69] sm:$0xff] %vm312_vm0, %v6382_v11  ;;  %v6673_v11 = vld [vmem:[%s6368_s30 + $0xc8] sm:$0xff] }
  0x5e   : > { %339 = vst.msk [vmem:[#allocation2 + $0x198] sm:$0x1] %vm321_vm2, %v6147_v0 }
  0x5f   : > { %357 = vst.msk [vmem:[#allocation2 + $0x1a9] sm:$0x1] %vm321_vm2, %v6147_v0 }
  0x60   : > { %365 = vst.msk [vmem:[#allocation3] sm:$0x1] %vm321_vm2, %v6147_v0 }
  0x61   : > { %382 = vst.msk [vmem:[#allocation3 + $0x198] sm:$0x1] %vm321_vm2, %v6147_v0 }
  0x62   : > { %9960 = vst [vmem:[#allocation6_spill] sm:$0xff] %v6399_v12 }
  0x63   : > { %383 = vst.msk [vmem:[#allocation3 + $0x11] sm:$0x1] %vm321_vm2, %v6147_v0  ;;  %v6406_v14 = vld [vmem:[#allocation2 + $0x60] sm:$0xff] }
  0x64   : > { %9961 = vst [vmem:[#allocation7_spill] sm:$0xff] %v6404_v13  ;;  %v6413_v16 = vld [vmem:[#allocation2 + $0x68] sm:$0xff]  ;;  %v6415_v17 = vld [vmem:[#allocation2 + $0x70] sm:$0x3]  ;;  %v551_v18 = vrot.slane %v6406_v14, 1 }
  0x65   : > { %400 = vst.msk [vmem:[#allocation3 + $0x1a9] sm:$0x1] %vm321_vm2, %v6147_v0  ;;  %v6424_v20 = vrot.slane %v6413_v16, 1  ;;  %v554_v21 = vrot.slane %v6415_v17, 1 }
  0x66   : > { %9962 = vst [vmem:[#allocation8_spill] sm:$0xff] %v6411_v15 }
  0x67   : > { %404 = vst.msk [vmem:[#allocation2 + $0x31] sm:$0xff] %vm312_vm0, %v6399_v12  ;;  %v6439_v24 = vsel %vm530_vm3, %v551_v18, %v6424_v20  ;;  %v555_v25 = vsel %vm530_vm3, %v6424_v20, %v554_v21  ;;  %v6575_v21 = vld [vmem:[%s6368_s30 + $0x90] sm:$0xff] }
  0x68   : > { %9963 = vst [vmem:[#allocation9_spill] sm:$0xff] %v6421_v19  ;;  %v5098_v27 = vpack.i.bf16 %v555_v25, %v6439_v24 }
  0x69   : > { %405 = vst.msk [vmem:[#allocation2 + $0x39] sm:$0xff] %vm312_vm0, %v6404_v13  ;;  %v6701_v13 = vld [vmem:[%s6368_s30 + $0xe8] sm:$0xff] }
  0x6a   : > { %9964 = vst [vmem:[#allocation10_spill] sm:$0xff] %v6430_v22  ;;  %5099 = vrot.lane.b32.xlu2 %v5098_v27, %s6148_s26 }
  0x6b   : > { %402 = vst.msk [vmem:[#allocation2 + $0x19] sm:$0xff] %vm312_vm0, %v6411_v15 }
  0x6c   : > { %9965 = vst [vmem:[#allocation11_spill] sm:$0xff] %v6435_v23 }
  0x6d   : > { %403 = vst.msk [vmem:[#allocation2 + $0x21] sm:$0xff] %vm312_vm0, %v6421_v19 }
  0x6e   : > { %9966 = vst [vmem:[#allocation12_spill] sm:$0xff] %v6446_v26  ;;  %v6465_v31 = vld [vmem:[#allocation2 + $0x30] sm:$0xff] }
  0x6f   : > { %410 = vst.msk [vmem:[#allocation2 + $0x79] sm:$0xff] %vm312_vm0, %v6430_v22  ;;  %v541_v35 = vrot.slane %v6465_v31, 1 }
  0x70   : > { %9967 = vst [vmem:[#allocation13_spill] sm:$0xff] %v6452_v28  ;;  %v6472_v33 = vld [vmem:[#allocation2 + $0x38] sm:$0xff]  ;;  %v6474_v34 = vld [vmem:[#allocation2 + $0x40] sm:$0x3] }
  0x71   : > { %411 = vst.msk [vmem:[#allocation2 + $0x81] sm:$0xff] %vm312_vm0, %v6435_v23  ;;  %v6483_v37 = vrot.slane %v6472_v33, 1  ;;  %v544_v38 = vrot.slane %v6474_v34, 1 }
  0x72   : > { %9968 = vst [vmem:[#allocation14_spill] sm:$0xff] %v6457_v29  ;;  %v6486_v39 = vld [vmem:[#allocation2 + $0x18] sm:$0xff] }
  0x73   : > { %406 = vst.msk [vmem:[#allocation2 + $0x49] sm:$0xff] %vm312_vm0, %v6446_v26  ;;  %v536_v43 = vrot.slane %v6486_v39, 1  ;;  %v6505_v45 = vsel %vm530_vm3, %v541_v35, %v6483_v37  ;;  %v545_v46 = vsel %vm530_vm3, %v6483_v37, %v544_v38 }
  0x74   : > { %9969 = vst [vmem:[#allocation15_spill] sm:$0xff] %v6463_v30  ;;  %v6493_v41 = vld [vmem:[#allocation2 + $0x20] sm:$0xff]  ;;  %v6495_v42 = vld [vmem:[#allocation2 + $0x28] sm:$0x3]  ;;  %v5088_v51 = vpack.i.bf16 %v545_v46, %v6505_v45 }
  0x75   : > { %407 = vst.msk [vmem:[#allocation2 + $0x51] sm:$0xff] %vm312_vm0, %v6452_v28  ;;  %v6510_v47 = vrot.slane %v6493_v41, 1  ;;  %v539_v48 = vrot.slane %v6495_v42, 1 }
  0x76   : > { %9970 = vst [vmem:[#allocation16_spill] sm:$0xff] %v6470_v32  ;;  %v6513_v49 = vld [vmem:[#allocation2 + $0x78] sm:$0xff]  ;;  %5089 = vrot.lane.b32.xlu1 %v5088_v51, %s6148_s26 }
  0x77   : > { %412 = vst.msk [vmem:[#allocation2 + $0x91] sm:$0xff] %vm312_vm0, %v6457_v29  ;;  %v556_v54 = vrot.slane %v6513_v49, 1  ;;  %v6533_v56 = vsel %vm530_vm3, %v536_v43, %v6510_v47  ;;  %v540_v57 = vsel %vm530_vm3, %v6510_v47, %v539_v48  ;;  %v6587_v43 = vld [vmem:[%s6368_s30 + $0x98] sm:$0xff] }
  0x78   : > { %9971 = vst [vmem:[#allocation17_spill] sm:$0xff] %v6480_v36  ;;  %v6521_v52 = vld [vmem:[#allocation2 + $0x80] sm:$0xff]  ;;  %v6523_v53 = vld [vmem:[#allocation2 + $0x88] sm:$0x3]  ;;  %v5083_v62 = vpack.i.bf16 %v540_v57, %v6533_v56 }
  0x79   : > { %413 = vst.msk [vmem:[#allocation2 + $0x99] sm:$0xff] %vm312_vm0, %v6463_v30  ;;  %v6538_v58 = vrot.slane %v6521_v52, 1  ;;  %v559_v59 = vrot.slane %v6523_v53, 1 }
  0x7a   : > { %9972 = vst [vmem:[#allocation18_spill] sm:$0xff] %v6491_v40  ;;  %v6541_v60 = vld [vmem:[#allocation2 + $0x48] sm:$0xff]  ;;  %5084 = vrot.lane.b32.xlu0 %v5083_v62, %s6148_s26 }
  0x7b   : > { %416 = vst.msk [vmem:[#allocation2 + $0xc1] sm:$0xff] %vm312_vm0, %v6470_v32  ;;  %v546_v2 = vrot.slane %v6541_v60, 1  ;;  %v6562_v6 = vsel %vm530_vm3, %v556_v54, %v6538_v58  ;;  %v560_v7 = vsel %vm530_vm3, %v6538_v58, %v559_v59  ;;  %v6604_v59 = vld [vmem:[%s6368_s30 + $0xb0] sm:$0xff] }
  0x7c   : > { %9973 = vst [vmem:[#allocation19_spill] sm:$0xff] %v6501_v44  ;;  %v6550_v63 = vld [vmem:[#allocation2 + $0x50] sm:$0xff]  ;;  %v6552_v0 = vld [vmem:[#allocation2 + $0x58] sm:$0x3]  ;;  %v5103_v25 = vpack.i.bf16 %v560_v7, %v6562_v6 }
  0x7d   : > { %417 = vst.msk [vmem:[#allocation2 + $0xc9] sm:$0xff] %vm312_vm0, %v6480_v36  ;;  %v6567_v8 = vrot.slane %v6550_v63, 1  ;;  %v549_v9 = vrot.slane %v6552_v0, 1 }
  0x7e   : > { %9974 = vst [vmem:[#allocation20_spill] sm:$0xff] %v6518_v50  ;;  %v6570_v18 = vld [vmem:[#allocation2 + $0x90] sm:$0xff]  ;;  %5104 = vrot.lane.b32.xlu2 %v5103_v25, %s6148_s26 }
  0x7f   : > { %414 = vst.msk [vmem:[#allocation2 + $0xa9] sm:$0xff] %vm312_vm0, %v6491_v40  ;;  %v561_v38 = vrot.slane %v6570_v18, 1  ;;  %v6591_v46 = vsel %vm530_vm3, %v546_v2, %v6567_v8  ;;  %v550_v48 = vsel %vm530_vm3, %v6567_v8, %v549_v9 }
  0x80   : > { %9975 = vst [vmem:[#allocation21_spill] sm:$0xff] %v6529_v55  ;;  %v6579_v27 = vld [vmem:[#allocation2 + $0x98] sm:$0xff]  ;;  %v6581_v35 = vld [vmem:[#allocation2 + $0xa0] sm:$0x3]  ;;  %v5093_v62 = vpack.i.bf16 %v550_v48, %v6591_v46 }
  0x81   : > { %9976 = vst [vmem:[#allocation22_spill] sm:$0xff] %v6538_v58  ;;  %v6596_v51 = vrot.slane %v6579_v27, 1  ;;  %v564_v54 = vrot.slane %v6581_v35, 1 }
  0x82   : > { %415 = vst.msk [vmem:[#allocation2 + $0xb1] sm:$0xff] %vm312_vm0, %v6501_v44  ;;  %v6599_v57 = vld [vmem:[#allocation2 + $0xc0] sm:$0xff]  ;;  %v6644_v44 = vld [vmem:[%s6368_s30 + $0xd8] sm:$0xff]  ;;  %5094 = vrot.lane.b32.xlu1 %v5093_v62, %s6148_s26 }
  0x83   : > { %9977 = vst [vmem:[#allocation23_spill] sm:$0xff] %v6546_v61  ;;  %v571_v9 = vrot.slane %v6599_v57, 1  ;;  %v565_v25 = vsel %vm530_vm3, %v6596_v51, %v564_v54 }
  0x84   : > { %418 = vst.msk [vmem:[#allocation2 + $0xd9] sm:$0xff] %vm312_vm0, %v6518_v50  ;;  %v6608_v2 = vld [vmem:[#allocation2 + $0xc8] sm:$0xff]  ;;  %v6610_v7 = vld [vmem:[#allocation2 + $0xd0] sm:$0x3] }
  0x85   : > { %9978 = vst [vmem:[#allocation24_spill] sm:$0xff] %v6558_v5  ;;  %v6625_v48 = vrot.slane %v6608_v2, 1 }
  0x86   : > { %9979 = vst [vmem:[#allocation25_spill] sm:$0xff] %v6562_v6  ;;  %v6628_v50 = vld [vmem:[#allocation2 + $0xa8] sm:$0xff] }
  0x87   : > { %419 = vst.msk [vmem:[#allocation2 + $0xe1] sm:$0xff] %vm312_vm0, %v6529_v55  ;;  %v574_v55 = vrot.slane %v6610_v7, 1  ;;  %v566_v54 = vrot.slane %v6628_v50, 1  ;;  %v6648_v40 = vsel %vm530_vm3, %v571_v9, %v6625_v48 }
  0x88   : > { %9980 = vst [vmem:[#allocation26_spill] sm:$0xff] %v6575_v21 }
  0x89   : > { %422 = vst.msk [vmem:[#allocation2 + $0x109] sm:$0xff] %vm312_vm0, %v6546_v61  ;;  %v6616_v61 = vld [vmem:[%s6368_s30 + $0xb8] sm:$0xff] }
  0x8a   : > { %9981 = vst [vmem:[#allocation27_spill] sm:$0xff] %v6587_v43  ;;  %v6638_v32 = vld [vmem:[#allocation2 + $0xb8] sm:$0x3] }
  0x8b   : > { %9982 = vst [vmem:[#allocation28_spill] sm:$0xff] %v6596_v51  ;;  %v569_v30 = vrot.slane %v6638_v32, 1  ;;  %v6656_v29 = vld [vmem:[#allocation2 + $0xd8] sm:$0xff] }
  0x8c   : > { %9983 = vst [vmem:[#allocation29_spill] sm:$0xff] %v6599_v57  ;;  %v576_v22 = vrot.slane %v6656_v29, 1 }
  0x8d   : > { %423 = vst.msk [vmem:[#allocation2 + $0x111] sm:$0xff] %vm312_vm0, %v6558_v5  ;;  %v6620_v5 = vsel %vm530_vm3, %v561_v38, %v6596_v51  ;;  %v6636_v38 = vld [vmem:[#allocation2 + $0xb0] sm:$0xff] }
  0x8e   : > { %9984 = vst [vmem:[#allocation30_spill] sm:$0xff] %v6604_v59  ;;  %v5108_v36 = vpack.i.bf16 %v565_v25, %v6620_v5  ;;  %v6653_v25 = vrot.slane %v6636_v38, 1  ;;  %v6665_v23 = vld [vmem:[#allocation2 + $0xe0] sm:$0xff] }
  0x8f   : > { %9985 = vst [vmem:[#allocation31_spill] sm:$0xff] %v6608_v2 }
  0x90   : > { %420 = vst.msk [vmem:[#allocation2 + $0xf1] sm:$0xff] %vm312_vm0, %v6575_v21  ;;  %v6633_v21 = vld [vmem:[%s6368_s30 + $0xd0] sm:$0xff]  ;;  %v570_v62 = vsel %vm530_vm3, %v6653_v25, %v569_v30  ;;  %v6685_v28 = vld [vmem:[#allocation2 + $0x108] sm:$0xff]  ;;  %5109 = vrot.lane.b32.xlu0 %v5108_v36, %s6148_s26 }
  0x91   : > { %9986 = vst [vmem:[#allocation32_spill] sm:$0xff] %v6616_v61  ;;  %v586_v30 = vrot.slane %v6685_v28, 1 }
  0x92   : > { %9987 = vst [vmem:[#allocation33_spill] sm:$0xff] %v6620_v5 }
  0x93   : > { %9988 = vst [vmem:[#allocation34_spill] sm:$0xff] %v6625_v48 }
  0x94   : > { %421 = vst.msk [vmem:[#allocation2 + $0xf9] sm:$0xff] %vm312_vm0, %v6587_v43  ;;  %v575_v43 = vsel %vm530_vm3, %v6625_v48, %v574_v55  ;;  %v6667_v55 = vld [vmem:[#allocation2 + $0xe8] sm:$0x3]  ;;  %v6693_v26 = vld [vmem:[#allocation2 + $0x110] sm:$0xff] }
  0x95   : > { %9989 = vst [vmem:[#allocation35_spill] sm:$0xff] %v6633_v21  ;;  %v5118_v9 = vpack.i.bf16 %v575_v43, %v6648_v40  ;;  %v6682_v43 = vrot.slane %v6665_v23, 1  ;;  %v579_v10 = vrot.slane %v6667_v55, 1  ;;  %v6710_v36 = vrot.slane %v6693_v26, 1 }
  0x96   : > { %424 = vst.msk [vmem:[#allocation2 + $0x121] sm:$0xff] %vm312_vm0, %v6604_v59  ;;  %v6661_v59 = vld [vmem:[%s6368_s30 + $0xc0] sm:$0xff] }
  0x97   : > { %9990 = vst [vmem:[#allocation36_spill] sm:$0xff] %v6644_v44  ;;  %v6705_v12 = vsel %vm530_vm3, %v576_v22, %v6682_v43  ;;  %v6713_v15 = vld [vmem:[#allocation2 + $0xf0] sm:$0xff]  ;;  %5119 = vrot.lane.b32.xlu2 %v5118_v9, %s6148_s26 }
  0x98   : > { %9991 = vst [vmem:[#allocation37_spill] sm:$0xff] %v6648_v40 }
  0x99   : > { %9992 = vst [vmem:[#allocation38_spill] sm:$0xff] %v6653_v25 }
  0x9a   : > { %425 = vst.msk [vmem:[#allocation2 + $0x129] sm:$0xff] %vm312_vm0, %v6616_v61  ;;  %v6677_v61 = vsel %vm530_vm3, %v566_v54, %v6653_v25  ;;  %v6695_v54 = vld [vmem:[#allocation2 + $0x118] sm:$0x3] }
  0x9b   : > { %9993 = vst [vmem:[#allocation39_spill] sm:$0xff] %v6661_v59  ;;  %v589_v19 = vrot.slane %v6695_v54, 1  ;;  %v6719_v40 = vld [vmem:[#allocation2 + $0xf8] sm:$0xff]  ;;  %v6721_v22 = vld [vmem:[#allocation2 + $0x100] sm:$0x3] }
  0x9c   : > { %428 = vst.msk [vmem:[#allocation2 + $0x151] sm:$0xff] %vm312_vm0, %v6633_v21  ;;  %v6690_v21 = vld [vmem:[%s6368_s30 + $0xe0] sm:$0xff]  ;;  %v6733_v9 = vrot.slane %v6719_v40, 1 }
  0x9d   : > { %9994 = vst [vmem:[#allocation40_spill] sm:$0xff] %v6673_v11  ;;  %v6736_v48 = vld [vmem:[#allocation2 + $0x120] sm:$0xff] }
  0x9e   : > { %9995 = vst [vmem:[#allocation41_spill] sm:$0xff] %v6677_v61 }
  0x9f   : > { %9996 = vst [vmem:[#allocation42_spill] sm:$0xff] %v6682_v43 }
  0xa0   : > { %429 = vst.msk [vmem:[#allocation2 + $0x159] sm:$0xff] %vm312_vm0, %v6644_v44  ;;  %v580_v44 = vsel %vm530_vm3, %v6682_v43, %v579_v10  ;;  %v581_v10 = vrot.slane %v6713_v15, 1  ;;  %v6728_v43 = vsel %vm530_vm3, %v586_v30, %v6710_v36  ;;  %v591_v30 = vrot.slane %v6736_v48, 1 }
  0xa1   : > { %9997 = vst [vmem:[#allocation43_spill] sm:$0xff] %v6690_v21  ;;  %v6743_v5 = vld [vmem:[#allocation2 + $0x130] sm:$0x3] }
  0xa2   : > { %426 = vst.msk [vmem:[#allocation2 + $0x139] sm:$0xff] %vm312_vm0, %v6661_v59  ;;  %v5113_v59 = vpack.i.bf16 %v570_v62, %v6677_v61  ;;  %v584_v62 = vrot.slane %v6721_v22, 1  ;;  %v5123_v61 = vpack.i.bf16 %v580_v44, %v6705_v12  ;;  %v6756_v44 = vsel %vm530_vm3, %v581_v10, %v6733_v9 }
  0xa3   : > { %9998 = vst [vmem:[#allocation44_spill] sm:$0xff] %v6701_v13  ;;  %v6750_v25 = vld [vmem:[#allocation2 + $0x150] sm:$0xff] }
  0xa4   : > { %9999 = vst [vmem:[#allocation45_spill] sm:$0xff] %v6705_v12  ;;  %5114 = vrot.lane.b32.xlu1 %v5113_v59, %s6148_s26  ;;  %5124 = vrot.lane.b32.xlu0 %v5123_v61, %s6148_s26 }
  0xa5   : > { %10000 = vst [vmem:[#allocation46_spill] sm:$0xff] %v6710_v36 }
  0xa6   : > { %427 = vst.msk [vmem:[#allocation2 + $0x141] sm:$0xff] %vm312_vm0, %v6673_v11  ;;  %v590_v11 = vsel %vm530_vm3, %v6710_v36, %v589_v19  ;;  %v594_v36 = vrot.slane %v6743_v5, 1 }
  0xa7   : > { %430 = vst.msk [vmem:[#allocation2 + $0x169] sm:$0xff] %vm312_vm0, %v6690_v21  ;;  %v6741_v21 = vld [vmem:[#allocation2 + $0x128] sm:$0xff]  ;;  %v5133_v51 = vpack.i.bf16 %v590_v11, %v6728_v43  ;;  %v6760_v12 = vld [vmem:[#allocation2 + $0x160] sm:$0x3] }
  0xa8   : > { %10001 = vst [vmem:[#allocation47_spill] sm:$0xff] %v6728_v43  ;;  %v6747_v19 = vrot.slane %v6741_v21, 1  ;;  %v604_v59 = vrot.slane %v6760_v12, 1 }
  0xa9   : > { %10002 = vst [vmem:[#allocation48_spill] sm:$0xff] %v6733_v9  ;;  %v6769_v6 = vld [vmem:[#allocation2 + $0x138] sm:$0xff]  ;;  %5134 = vrot.lane.b32.xlu2 %v5133_v51, %s6148_s26 }
  0xaa   : > { %10003 = vst [vmem:[#allocation49_spill] sm:$0xff] %v6736_v48  ;;  %v601_v48 = vrot.slane %v6750_v25, 1  ;;  %v6778_v43 = vsel %vm530_vm3, %v591_v30, %v6747_v19 }
  0xab   : > { %431 = vst.msk [vmem:[#allocation2 + $0x171] sm:$0xff] %vm312_vm0, %v6701_v13  ;;  %v6758_v13 = vld [vmem:[#allocation2 + $0x158] sm:$0xff] }
  0xac   : > { %10004 = vst [vmem:[#allocation50_spill] sm:$0xff] %v6741_v21  ;;  %v585_v21 = vsel %vm530_vm3, %v6733_v9, %v584_v62  ;;  %v595_v62 = vsel %vm530_vm3, %v6747_v19, %v594_v36 }
  0xad   : > { %10005 = vst [vmem:[#allocation51_spill] sm:$0xff] %v6743_v5  ;;  %v6766_v5 = vrot.slane %v6758_v13, 1  ;;  %v6772_v11 = vld [vmem:[#allocation2 + $0x140] sm:$0xff]  ;;  %v6774_v10 = vld [vmem:[#allocation2 + $0x148] sm:$0x3]  ;;  %v5128_v9 = vpack.i.bf16 %v585_v21, %v6756_v44  ;;  %v5138_v51 = vpack.i.bf16 %v595_v62, %v6778_v43 }
  0xae   : > { %10006 = vst [vmem:[#allocation52_spill] sm:$0xff] %v6747_v19  ;;  %v6798_v36 = vrot.slane %v6772_v11, 1  ;;  %v599_v21 = vrot.slane %v6774_v10, 1 }
  0xaf   : > { %10007 = vst [vmem:[#allocation53_spill] sm:$0xff] %v6750_v25  ;;  %v6793_v58 = vsel %vm530_vm3, %v601_v48, %v6766_v5  ;;  %v605_v30 = vsel %vm530_vm3, %v6766_v5, %v604_v59  ;;  %5129 = vrot.lane.b32.xlu1 %v5128_v9, %s6148_s26  ;;  %v713_v59 = vrot.slane %v6486_v39, 2  ;;  %5139 = vrot.lane.b32.xlu0 %v5138_v51, %s6148_s26 }
  0xb0   : > { %10008 = vst [vmem:[#allocation54_spill] sm:$0xff] %v6756_v44  ;;  %v5148_v48 = vpack.i.bf16 %v605_v30, %v6793_v58  ;;  %v600_v62 = vsel %vm530_vm3, %v6798_v36, %v599_v21 }
  0xb1   : > { %10009 = vst [vmem:[#allocation55_spill] sm:$0xff] %v6758_v13  ;;  %v6785_v13 = vld [vmem:[#allocation2 + $0x168] sm:$0xff] }
  0xb2   : > { %10010 = vst [vmem:[#allocation56_spill] sm:$0xff] %v6760_v12  ;;  %v596_v12 = vrot.slane %v6769_v6, 1  ;;  %v6787_v61 = vld [vmem:[#allocation2 + $0x170] sm:$0xff]  ;;  %v6789_v25 = vld [vmem:[#allocation2 + $0x178] sm:$0x3]  ;;  %v606_v19 = vrot.slane %v6785_v13, 1  ;;  %5149 = vrot.lane.b32.xlu2 %v5148_v48, %s6148_s26 }
  0xb3   : > { %10011 = vst [vmem:[#allocation57_spill] sm:$0xff] %v6766_v5  ;;  %v6804_v44 = vrot.slane %v6787_v61, 1  ;;  %v6842_v48 = vrot.slane %v6472_v33, 2 }
  0xb4   : > { %10012 = vst [vmem:[#allocation58_spill] sm:$0xff] %v6769_v6  ;;  %v609_v6 = vrot.slane %v6789_v25, 1  ;;  %v6812_v5 = vsel %vm530_vm3, %v596_v12, %v6798_v36  ;;  %v711_v12 = vrot.slane %v6225_v4, 2  ;;  %v718_v4 = vrot.slane %v6465_v31, 2 }
  0xb5   : > { %10013 = vst [vmem:[#allocation59_spill] sm:$0xff] %v6778_v43  ;;  %v6817_v43 = vrot.slane %v6493_v41, 2  ;;  %v6823_v9 = vsel %vm530_vm3, %v606_v19, %v6804_v44  ;;  %v5143_v30 = vpack.i.bf16 %v600_v62, %v6812_v5  ;;  %v708_v41 = vrot.slane %v6221_v3, 2 }
  0xb6   : > { %10014 = vst [vmem:[#allocation60_spill] sm:$0xff] %v6787_v61  ;;  %v716_v61 = vrot.slane %v6495_v42, 2  ;;  %v610_v39 = vsel %vm530_vm3, %v6804_v44, %v609_v6  ;;  %v709_v42 = vrot.slane %v6214_v1, 2  ;;  %v721_v6 = vrot.slane %v6474_v34, 2 }
  0xb7   : > { %v6834_v21 = vsel %vm707_vm4, %v713_v59, %v6817_v43  ;;  %v5153_v51 = vpack.i.bf16 %v610_v39, %v6823_v9  ;;  %v731_v3 = vrot.slane %v6415_v17, 2  ;;  %5144 = vrot.lane.b32.xlu1 %v5143_v30, %s6148_s26  ;;  %v6851_v39 = vrot.slane %v6413_v16, 2 }
  0xb8   : > { %v717_v19 = vsel %vm707_vm4, %v6817_v43, %v716_v61  ;;  %v710_v59 = vsel %vm707_vm4, %v708_v41, %v709_v42  ;;  %v712_v62 = vsel %vm707_vm4, %v709_v42, %v711_v12  ;;  %v728_v61 = vrot.slane %v6406_v14, 2 }
  0xb9   : > { %v5163_v1 = vpack.i.bf16 %v717_v19, %v6834_v21  ;;  %5154 = vrot.lane.b32.xlu0 %v5153_v51, %s6148_s26  ;;  %v6856_v31 = vsel %vm707_vm4, %v718_v4, %v6842_v48  ;;  %v722_v17 = vsel %vm707_vm4, %v6842_v48, %v721_v6  ;;  %v5158_v33 = vpack.i.bf16 %v712_v62, %v710_v59 }
  0xba   : > { %v723_v34 = vrot.slane %v6541_v60, 2  ;;  %v6863_v14 = vrot.slane %v6550_v63, 2  ;;  %v726_v16 = vrot.slane %v6552_v0, 2  ;;  %v6868_v12 = vsel %vm707_vm4, %v728_v61, %v6851_v39 }
  0xbb   : > { %5164 = vrot.lane.b32.xlu2 %v5163_v1, %s6149_s8  ;;  %v732_v30 = vsel %vm707_vm4, %v6851_v39, %v731_v3  ;;  %v5168_v41 = vpack.i.bf16 %v722_v17, %v6856_v31  ;;  %v733_v42 = vrot.slane %v6513_v49, 2  ;;  %v6875_v19 = vrot.slane %v6521_v52, 2 }
  0xbc   : > { %v736_v60 = vrot.slane %v6523_v53, 2  ;;  %v6881_v63 = vsel %vm707_vm4, %v723_v34, %v6863_v14  ;;  %v5178_v0 = vpack.i.bf16 %v732_v30, %v6868_v12  ;;  %v727_v51 = vsel %vm707_vm4, %v6863_v14, %v726_v16  ;;  %v6892_v53 = vld [vmem:[#allocation2 + $0x28] sm:$0x3] }
  0xbd   : > { %v743_v6 = vrot.slane %v6628_v50, 2  ;;  %v6888_v49 = vrot.slane %v6636_v38, 2  ;;  %v746_v52 = vrot.slane %v6638_v32, 2  ;;  %v6896_v4 = vsel %vm707_vm4, %v733_v42, %v6875_v19 }
  0xbe   : > { %v737_v3 = vsel %vm707_vm4, %v6875_v19, %v736_v60  ;;  %v1066_v1 = vrot.slane %v6892_v53, 1  ;;  %v5173_v50 = vpack.i.bf16 %v727_v51, %v6881_v63  ;;  %v738_v38 = vrot.slane %v6570_v18, 2 }
  0xbf   : > { %5159 = vrot.lane.b32.xlu1 %v5158_v33, %s6149_s8  ;;  %v6905_v32 = vrot.slane %v6579_v27, 2  ;;  %v741_v59 = vrot.slane %v6581_v35, 2  ;;  %v6910_v62 = vsel %vm707_vm4, %v743_v6, %v6888_v49  ;;  %v747_v61 = vsel %vm707_vm4, %v6888_v49, %v746_v52  ;;  %v6918_v33 = vld [vmem:[#allocation2 + $0x40] sm:$0x3]  ;;  %v6949_v52 = vld [vmem:[#allocation2 + $0x58] sm:$0x3] }
  0xc0   : > { %10015 = vst [vmem:[#allocation61_spill] sm:$0xff] %v6910_v62  ;;  %v6916_v17 = vsel %vm530_vm3, %v6510_v47, %v1066_v1  ;;  %v5183_v18 = vpack.i.bf16 %v737_v3, %v6896_v4  ;;  %v1071_v35 = vrot.slane %v6918_v33, 1  ;;  %v748_v34 = vrot.slane %v6599_v57, 2  ;;  %v6951_v3 = vld [vmem:[#allocation2 + $0x70] sm:$0x3]  ;;  %v10030_v27 = vld [vmem:[#allocation51_spill] sm:$0xff] }
  0xc1   : > { %5169 = vrot.lane.b32.xlu0 %v5168_v41, %s6149_s8  ;;  %v6926_v16 = vrot.slane %v6608_v2, 2  ;;  %v751_v30 = vrot.slane %v6610_v7, 2  ;;  %v6932_v47 = vsel %vm707_vm4, %v738_v38, %v6905_v32  ;;  %v742_v41 = vsel %vm707_vm4, %v6905_v32, %v741_v59  ;;  %v10032_v57 = vld [vmem:[#allocation28_spill] sm:$0xff] }
  0xc2   : > { %v5193_v42 = vpack.i.bf16 %v747_v61, %v6910_v62  ;;  %v6939_v60 = vsel %vm530_vm3, %v6483_v37, %v1071_v35  ;;  %v6943_v51 = vrot.slane %v6719_v40, 2  ;;  %v761_v7 = vrot.slane %v6721_v22, 2 }
  0xc3   : > { %5179 = vrot.lane.b32.xlu2 %v5178_v0, %s6149_s8  ;;  %10016 = vst [vmem:[#allocation62_spill] sm:$0xff] %v6926_v16  ;;  %v758_v0 = vrot.slane %v6713_v15, 2  ;;  %v6955_v37 = vsel %vm707_vm4, %v748_v34, %v6926_v16  ;;  %v752_v15 = vsel %vm707_vm4, %v6926_v16, %v751_v30  ;;  %v1076_v40 = vrot.slane %v6949_v52, 1  ;;  %v7015_v30 = vld [vmem:[#allocation2 + $0xa0] sm:$0x3] }
  0xc4   : > { %10017 = vst [vmem:[#allocation63_spill] sm:$0xff] %v6943_v51  ;;  %v1081_v22 = vrot.slane %v6951_v3, 1  ;;  %v5188_v1 = vpack.i.bf16 %v742_v41, %v6932_v47  ;;  %v6965_v38 = vrot.slane %v6665_v23, 2  ;;  %v756_v59 = vrot.slane %v6667_v55, 2  ;;  %v10039_v16 = vld [vmem:[#allocation56_spill] sm:$0xff] }
  0xc5   : > { %10018 = vst [vmem:[#allocation64_spill] sm:$0xff] %v6955_v37  ;;  %v6970_v61 = vsel %vm707_vm4, %v758_v0, %v6943_v51  ;;  %v6976_v35 = vsel %vm530_vm3, %v6567_v8, %v1076_v40  ;;  %v5198_v23 = vpack.i.bf16 %v752_v15, %v6955_v37  ;;  %v6992_v8 = vrot.slane %v6693_v26, 2  ;;  %v10022_v40 = vld [vmem:[#allocation22_spill] sm:$0xff] }
  0xc6   : > { %10019 = vst [vmem:[#allocation65_spill] sm:$0xff] %v6970_v61  ;;  %v6980_v34 = vsel %vm530_vm3, %v6424_v20, %v1081_v22  ;;  %v766_v20 = vrot.slane %v6695_v54, 2  ;;  %v7009_v55 = vrot.slane %v6772_v11, 2  ;;  %v776_v54 = vrot.slane %v6774_v10, 2 }
  0xc7   : > { %5174 = vrot.lane.b32.xlu1 %v5173_v50, %s6149_s8  ;;  %v753_v50 = vrot.slane %v6656_v29, 2  ;;  %v6982_v29 = vld [vmem:[#allocation2 + $0x88] sm:$0x3]  ;;  %10020 = vst [vmem:[#allocation66_spill] sm:$0xff] %v6992_v8  ;;  %v1091_v11 = vrot.slane %v7015_v30, 1  ;;  %v771_v2 = vrot.slane %v10030_v27, 2 }
  0xc8   : > { %v1086_v41 = vrot.slane %v6982_v29, 1  ;;  %10024 = vst [vmem:[#allocation22_spill] sm:$0xff] %v7009_v55  ;;  %v10034_v27 = vld [vmem:[#allocation33_spill] sm:$0xff] }
  0xc9   : > { %5184 = vrot.lane.b32.xlu0 %v5183_v18, %s6149_s8  ;;  %v762_v18 = vsel %vm707_vm4, %v6943_v51, %v761_v7  ;;  %v6998_v0 = vsel %vm707_vm4, %v753_v50, %v6965_v38  ;;  %v757_v7 = vsel %vm707_vm4, %v6965_v38, %v756_v59  ;;  %v7017_v59 = vld [vmem:[#allocation2 + $0xb8] sm:$0x3]  ;;  %v10028_v50 = vld [vmem:[#allocation50_spill] sm:$0xff] }
  0xca   : > { %10021 = vst [vmem:[#allocation67_spill] sm:$0xff] %v6998_v0  ;;  %v5208_v15 = vpack.i.bf16 %v762_v18, %v6970_v61  ;;  %v7005_v22 = vsel %vm530_vm3, %v10022_v40, %v1086_v41  ;;  %v767_v41 = vsel %vm707_vm4, %v6992_v8, %v766_v20  ;;  %v1096_v10 = vrot.slane %v7017_v59, 1 }
  0xcb   : > { %5194 = vrot.lane.b32.xlu2 %v5193_v42, %s6149_s8  ;;  %v763_v42 = vrot.slane %v6685_v28, 2  ;;  %v10023_v28 = vld [vmem:[#allocation58_spill] sm:$0xff]  ;;  %v5203_v40 = vpack.i.bf16 %v757_v7, %v6998_v0  ;;  %v7031_v6 = vrot.slane %v10028_v50, 2  ;;  %v777_v20 = vsel %vm707_vm4, %v7009_v55, %v776_v54 }
  0xcc   : > { %v773_v26 = vrot.slane %v10023_v28, 2  ;;  %v10033_v7 = vld [vmem:[#allocation38_spill] sm:$0xff] }
  0xcd   : > { %v7021_v18 = vsel %vm707_vm4, %v763_v42, %v6992_v8  ;;  %v7042_v8 = vsel %vm530_vm3, %v10032_v57, %v1091_v11  ;;  %v10037_v57 = vld [vmem:[#allocation55_spill] sm:$0xff]  ;;  %v772_v37 = vsel %vm707_vm4, %v7031_v6, %v771_v2 }
  0xce   : > { %10026 = vst [vmem:[#allocation58_spill] sm:$0xff] %v7021_v18  ;;  %v7036_v42 = vsel %vm707_vm4, %v773_v26, %v7009_v55  ;;  %v5213_v50 = vpack.i.bf16 %v767_v41, %v7021_v18  ;;  %v10035_v26 = vld [vmem:[#allocation41_spill] sm:$0xff]  ;;  %v7058_v11 = vrot.slane %v10037_v57, 2  ;;  %v10040_v41 = vld [vmem:[#allocation34_spill] sm:$0xff] }
  0xcf   : > { %5189 = vrot.lane.b32.xlu1 %v5188_v1, %s6149_s8  ;;  %v10025_v1 = vld [vmem:[#allocation25_spill] sm:$0xff] }
  0xd0   : > { %10029 = vst [vmem:[#allocation25_spill] sm:$0xff] %v7031_v6  ;;  %v10036_v55 = vld [vmem:[#allocation53_spill] sm:$0xff] }
  0xd1   : > { %5199 = vrot.lane.b32.xlu0 %v5198_v23, %s6149_s8  ;;  %v10027_v23 = vld [vmem:[#allocation49_spill] sm:$0xff]  ;;  %v778_v51 = vrot.slane %v10036_v55, 2  ;;  %10038 = vst [vmem:[#allocation50_spill] sm:$0xff] %v7058_v11 }
  0xd2   : > { %v768_v28 = vrot.slane %v10027_v23, 2  ;;  %10031 = vst [vmem:[#allocation49_spill] sm:$0xff] %v7036_v42  ;;  %v7048_v23 = vld [vmem:[#allocation2 + $0xd0] sm:$0x3]  ;;  %v10042_v55 = vld [vmem:[#allocation37_spill] sm:$0xff] }
  0xd3   : > { %5209 = vrot.lane.b32.xlu2 %v5208_v15, %s6149_s8  ;;  %v7046_v15 = vsel %vm530_vm3, %v10033_v7, %v1096_v10  ;;  %v1101_v54 = vrot.slane %v7048_v23, 1  ;;  %v781_v10 = vrot.slane %v10039_v16, 2  ;;  %v5223_v7 = vpack.i.bf16 %v777_v20, %v7036_v42  ;;  %v7073_v57 = vld [vmem:[#allocation2 + $0xe8] sm:$0x3]  ;;  %v7075_v16 = vld [vmem:[#allocation2 + $0x100] sm:$0x3] }
  0xd4   : > { %v7067_v61 = vsel %vm707_vm4, %v768_v28, %v7031_v6  ;;  %10043 = vst [vmem:[#allocation28_spill] sm:$0xff] %v7075_v16  ;;  %v1106_v28 = vrot.slane %v7073_v57, 1  ;;  %v7096_v6 = vld [vmem:[#allocation2 + $0x118] sm:$0x3] }
  0xd5   : > { %v1102_v18 = vsel %vm530_vm3, %v10040_v41, %v1101_v54  ;;  %10041 = vst [vmem:[#allocation51_spill] sm:$0xff] %v7067_v61  ;;  %v782_v20 = vsel %vm707_vm4, %v7058_v11, %v781_v10  ;;  %v1111_v54 = vrot.slane %v7075_v16, 1  ;;  %v5218_v2 = vpack.i.bf16 %v772_v37, %v7067_v61  ;;  %v10047_v10 = vld [vmem:[#allocation48_spill] sm:$0xff] }
  0xd6   : > { %v5273_v0 = vpack.i.bf16 %v1102_v18, %v10042_v55  ;;  %v783_v18 = vrot.slane %v6785_v13, 2  ;;  %v786_v55 = vrot.slane %v6789_v25, 2  ;;  %v10049_v13 = vld [vmem:[#allocation54_spill] sm:$0xff] }
  0xd7   : > { %5204 = vrot.lane.b32.xlu1 %v5203_v40, %s6149_s8  ;;  %v7079_v40 = vsel %vm707_vm4, %v778_v51, %v7058_v11  ;;  %v10046_v51 = vld [vmem:[#allocation42_spill] sm:$0xff]  ;;  %v1112_v11 = vsel %vm530_vm3, %v10047_v10, %v1111_v54 }
  0xd8   : > { %10044 = vst [vmem:[#allocation38_spill] sm:$0xff] %v7079_v40  ;;  %v1107_v42 = vsel %vm530_vm3, %v10046_v51, %v1106_v28  ;;  %v5228_v37 = vpack.i.bf16 %v782_v20, %v7079_v40  ;;  %v5283_v16 = vpack.i.bf16 %v1112_v11, %v10049_v13  ;;  %v10050_v25 = vld [vmem:[#allocation46_spill] sm:$0xff]  ;;  %v10051_v51 = vld [vmem:[#allocation47_spill] sm:$0xff]  ;;  %v7115_v11 = vld [vmem:[#allocation2 + $0x148] sm:$0x3] }
  0xd9   : > { %5214 = vrot.lane.b32.xlu0 %v5213_v50, %s6149_s8  ;;  %v10045_v50 = vld [vmem:[#allocation60_spill] sm:$0xff]  ;;  %v7118_v10 = vld [vmem:[%s6368_s30 + $0xf0] sm:$0xff]  ;;  %v7123_v13 = vld [vmem:[%s6368_s30 + $0xf8] sm:$0xff] }
  0xda   : > { %v7089_v41 = vrot.slane %v10045_v50, 2  ;;  %v1116_v50 = vrot.slane %v7096_v6, 1  ;;  %10052 = vst [vmem:[#allocation33_spill] sm:$0xff] %v7118_v10 }
  0xdb   : > { %5224 = vrot.lane.b32.xlu2 %v5223_v7, %s6149_s8  ;;  %v10048_v7 = vld [vmem:[#allocation45_spill] sm:$0xff]  ;;  %10053 = vst [vmem:[#allocation41_spill] sm:$0xff] %v7123_v13 }
  0xdc   : > { %v5278_v61 = vpack.i.bf16 %v1107_v42, %v10048_v7  ;;  %v1117_v62 = vsel %vm530_vm3, %v10050_v25, %v1116_v50  ;;  %v7107_v28 = vsel %vm707_vm4, %v783_v18, %v7089_v41  ;;  %v787_v54 = vsel %vm707_vm4, %v7089_v41, %v786_v55  ;;  %v7113_v42 = vld [vmem:[#allocation2 + $0x130] sm:$0x3]  ;;  %432 = vst.msk [vmem:[#allocation2 + $0x181] sm:$0xff] %vm312_vm0, %v7118_v10  ;;  %v10055_v55 = vld [vmem:[#allocation52_spill] sm:$0xff] }
  0xdd   : > { %v5288_v20 = vpack.i.bf16 %v1117_v62, %v10051_v51  ;;  %v1126_v7 = vrot.slane %v7115_v11, 1  ;;  %v5233_v18 = vpack.i.bf16 %v787_v54, %v7107_v28  ;;  %v10054_v62 = vpack.i.bf16 %v6916_v17, %v6533_v56  ;;  %433 = vst.msk [vmem:[#allocation2 + $0x189] sm:$0xff] %vm312_vm0, %v7123_v13  ;;  %v7138_v25 = vld [vmem:[#allocation2 + $0x160] sm:$0x3]  ;;  %v10056_v51 = vld [vmem:[#allocation59_spill] sm:$0xff]  ;;  %v10057_v56 = vld [vmem:[#allocation57_spill] sm:$0xff] }
  0xde   : > { %v1131_v40 = vrot.slane %v7138_v25, 1 }
  0xdf   : > { %5219 = vrot.lane.b32.xlu1 %v5218_v2, %s6149_s8  ;;  %v1121_v2 = vrot.slane %v7113_v42, 1  ;;  %v1127_v50 = vsel %vm530_vm3, %v6798_v36, %v1126_v7  ;;  %v7151_v36 = vld [vmem:[#allocation2 + $0x178] sm:$0x3] }
  0xe0   : > { %v5298_v54 = vpack.i.bf16 %v1127_v50, %v6812_v5  ;;  %v1132_v17 = vsel %vm530_vm3, %v10057_v56, %v1131_v40  ;;  %v1136_v7 = vrot.slane %v7151_v36, 1  ;;  %v10059_v5 = vpack.i.bf16 %v6980_v34, %v6439_v24 }
  0xe1   : > { %5229 = vrot.lane.b32.xlu0 %v5228_v37, %s6149_s8  ;;  %v1122_v37 = vsel %vm530_vm3, %v10055_v55, %v1121_v2  ;;  %v10058_v2 = vpack.i.bf16 %v6939_v60, %v6505_v45  ;;  %v10060_v45 = vpack.i.bf16 %v6976_v35, %v6591_v46  ;;  %v10061_v60 = vpack.i.bf16 %v7005_v22, %v10025_v1 }
  0xe2   : > { %v5293_v10 = vpack.i.bf16 %v1122_v37, %v10056_v51  ;;  %v1137_v40 = vsel %vm530_vm3, %v6804_v44, %v1136_v7  ;;  %v10062_v24 = vpack.i.bf16 %v7046_v15, %v10035_v26  ;;  %v10063_v44 = vpack.i.bf16 %v7042_v8, %v10034_v27 }
  0xe3   : > { %5239 = vrot.lane.b32.xlu2 %v10054_v62, %s6148_s26  ;;  %v5303_v62 = vpack.i.bf16 %v1132_v17, %v6793_v58  ;;  %v5308_v58 = vpack.i.bf16 %v1137_v40, %v6823_v9  ;;  %v7185_v9 = vld [vmem:[#allocation2 + $0x180] sm:$0xff]  ;;  %v1257_v56 = vrot.slane %v6951_v3, 2  ;;  %v1262_v7 = vrot.slane %v6982_v29, 2 }
  0xe4   : > { %v7187_v35 = vld [vmem:[#allocation2 + $0x188] sm:$0xff]  ;;  %v7189_v22 = vld [vmem:[#allocation2 + $0x190] sm:$0x3]  ;;  %v1138_v1 = vrot.slane %v7185_v9, 1  ;;  %v1282_v29 = vrot.slane %v7073_v57, 2 }
  0xe5   : > { %v7194_v15 = vrot.slane %v7187_v35, 1  ;;  %v1141_v8 = vrot.slane %v7189_v22, 1  ;;  %v10067_v57 = vld [vmem:[#allocation61_spill] sm:$0xff] }
  0xe7   : > { %5234 = vrot.lane.b32.xlu1 %v5233_v18, %s6149_s8  ;;  %v7158_v18 = vpop.permute.xlu2 %5099  ;;  %v7203_v27 = vsel %vm530_vm3, %v1138_v1, %v7194_v15  ;;  %v10068_v1 = vld [vmem:[#allocation28_spill] sm:$0xff] }
  0xe8   : > { %v7213_v37 = vpop.permute.xlu1 %5089 }
  0xe9   : > { %5244 = vrot.lane.b32.xlu0 %v10058_v2, %s6148_s26 }
  0xeb   : > { %5254 = vrot.lane.b32.xlu2 %v10059_v5, %s6148_s26 }
  0xef   : > { %5249 = vrot.lane.b32.xlu1 %v10060_v45, %s6148_s26  ;;  %v7175_v34 = vpop.permute.xlu2 %5104  ;;  %v1263_v45 = vsel %vm707_vm4, %v6875_v19, %v1262_v7  ;;  %v1283_v19 = vsel %vm707_vm4, %v6965_v38, %v1282_v29  ;;  %v10071_v38 = vld [vmem:[#allocation63_spill] sm:$0xff] }
  0xf1   : > { %5259 = vrot.lane.b32.xlu0 %v10061_v60, %s6148_s26 }
  0xf3   : > { %5269 = vrot.lane.b32.xlu2 %v10062_v24, %s6148_s26 }
  0xf7   : > { %5264 = vrot.lane.b32.xlu1 %v10063_v44, %s6148_s26  ;;  %v7183_v46 = vpop.permute.xlu2 %5119 }
  0xf9   : > { %5274 = vrot.lane.b32.xlu0 %v5273_v0, %s6148_s26  ;;  %v7198_v0 = vpop.permute.xlu0 %5079 }
  0xfb   : > { %5284 = vrot.lane.b32.xlu2 %v5283_v16, %s6148_s26  ;;  %v1242_v16 = vrot.slane %v6892_v53, 2 }
  0xfd   : > { %v1243_v50 = vsel %vm707_vm4, %v6817_v43, %v1242_v16  ;;  %v10070_v16 = vld [vmem:[#allocation62_spill] sm:$0xff] }
  0xff   : > { %5279 = vrot.lane.b32.xlu1 %v5278_v61, %s6148_s26  ;;  %v1142_v61 = vsel %vm530_vm3, %v7194_v15, %v1141_v8  ;;  %v1287_v8 = vrot.slane %v10068_v1, 2 }
 0x100   : > { %v5313_v55 = vpack.i.bf16 %v1142_v61, %v7203_v27 }
 0x101   : > { %5289 = vrot.lane.b32.xlu0 %v5288_v20, %s6148_s26  ;;  %v1252_v20 = vrot.slane %v6949_v52, 2  ;;  %v7218_v51 = vpop.permute.xlu0 %5084  ;;  %v5318_v52 = vpack.i.bf16 %v1243_v50, %v6834_v21  ;;  %v7239_v21 = vpop.permute.xlu1 %5094 }
 0x103   : > { %5299 = vrot.lane.b32.xlu2 %v5298_v54, %s6148_s26  ;;  %v7207_v26 = vpop.permute.xlu2 %5134  ;;  %v1247_v54 = vrot.slane %v6918_v33, 2  ;;  %v1253_v53 = vsel %vm707_vm4, %v6863_v14, %v1252_v20  ;;  %v4951_v33 = vld [vmem:[%s9836_s1] sm:$0xf]  ;;  %v5059_v14 = vld [vmem:[%s9836_s1] sm:$0x30] }
 0x104   : > { %v5328_v17 = vpack.i.bf16 %v1253_v53, %v6881_v63  ;;  %v4952_v3 = vor.u32 %v5059_v14, %v4951_v33  ;;  %v1258_v63 = vsel %vm707_vm4, %v6851_v39, %v1257_v56  ;;  %v1272_v39 = vrot.slane %v7017_v59, 2  ;;  %v10073_v56 = vld [vmem:[#allocation25_spill] sm:$0xff]  ;;  %v10076_v14 = vld [vmem:[#allocation51_spill] sm:$0xff] }
 0x105   : > { %v1248_v43 = vsel %vm707_vm4, %v6842_v48, %v1247_v54  ;;  %v10072_v54 = vld [vmem:[#allocation64_spill] sm:$0xff]  ;;  %v1302_v33 = vrot.slane %v7115_v11, 2 }
 0x106   : > { %v5323_v48 = vpack.i.bf16 %v1248_v43, %v6856_v31 }
 0x107   : > { %5294 = vrot.lane.b32.xlu1 %v5293_v10, %s6148_s26 }
 0x109   : > { %5304 = vrot.lane.b32.xlu0 %v5303_v62, %s6148_s26  ;;  %v1267_v62 = vrot.slane %v7015_v30, 2  ;;  %v7244_v2 = vpop.permute.xlu0 %5109  ;;  %v1698_v30 = vsel %vm707_vm4, %v4952_v3, 0 }
 0x10a   : > { %10065 = vst [vmem:[#allocation55_spill] sm:$0xff] %v7244_v2  ;;  %1707 = vmatpush.bf16.msra.mxu1 %v1698_v30  ;;  %5066 = vmatpush.bf16.msra.mxu3 %v1698_v30  ;;  %v1312_v30 = vrot.slane %v7151_v36, 2  ;;  %v5081_v36 = vunpack.i.l.bf16 %v7198_v0  ;;  %v7560_v2 = vld [vmem:[#allocation2 + $0x48] sm:$0xff] }
 0x10b   : > { %5314 = vrot.lane.b32.xlu2 %v5313_v55, %s6148_s26  ;;  %v1268_v5 = vsel %vm707_vm4, %v6905_v32, %v1267_v62  ;;  %v1273_v32 = vsel %vm707_vm4, %v6888_v49, %v1272_v39  ;;  %v10069_v49 = vld [vmem:[#allocation67_spill] sm:$0xff]  ;;  %v1297_v55 = vrot.slane %v7113_v42, 2  ;;  %v10075_v42 = vld [vmem:[#allocation65_spill] sm:$0xff]  ;;  %v10081_v39 = vld [vmem:[#allocation58_spill] sm:$0xff] }
 0x10c   : > { %v7224_v10 = vpop.permute.xlu2 %5149  ;;  %v5343_v31 = vpack.i.bf16 %v1268_v5, %v6932_v47  ;;  %v1277_v47 = vrot.slane %v7048_v23, 2  ;;  %v5348_v44 = vpack.i.bf16 %v1273_v32, %v10067_v57  ;;  %v5358_v61 = vpack.i.bf16 %v1283_v19, %v10069_v49  ;;  %v10082_v32 = vld [vmem:[#allocation49_spill] sm:$0xff] }
 0x10d   : > { %10064 = vst [vmem:[#allocation53_spill] sm:$0xff] %v7224_v10  ;;  %v1288_v23 = vsel %vm707_vm4, %v10071_v38, %v1287_v8  ;;  %v7321_v19 = vrot.slane %v7187_v35, 2  ;;  %v1317_v57 = vrot.slane %v7189_v22, 2  ;;  %v7329_v8 = vld [vmem:[#allocation2 + $0x30] sm:$0xff]  ;;  %v7335_v22 = vld [vmem:[#allocation2 + $0x40] sm:$0x3] }
 0x10e   : > { %v5363_v62 = vpack.i.bf16 %v1288_v23, %v10075_v42  ;;  %v10085_v38 = vld [vmem:[#allocation38_spill] sm:$0xff]  ;;  %v1886_v42 = vrot.slane %v7329_v8, 1 }
 0x10f   : > { %5309 = vrot.lane.b32.xlu1 %v5308_v58, %s6148_s26  ;;  %v5333_v58 = vpack.i.bf16 %v1258_v63, %v6868_v12  ;;  %v5338_v12 = vpack.i.bf16 %v1263_v45, %v6896_v4  ;;  %v1278_v4 = vsel %vm707_vm4, %v10070_v16, %v1277_v47  ;;  %v10077_v63 = vld [vmem:[#allocation66_spill] sm:$0xff]  ;;  %v1313_v45 = vsel %vm707_vm4, %v7089_v41, %v1312_v30 }
 0x110   : > { %v5353_v53 = vpack.i.bf16 %v1278_v4, %v10072_v54  ;;  %v1314_v47 = vrot.slane %v7185_v9, 2  ;;  %v10083_v41 = vld [vmem:[#allocation50_spill] sm:$0xff]  ;;  %v6042_v9 = vld [vmem:[#allocation2] sm:$0xff]  ;;  %v1318_v4 = vsel %vm707_vm4, %v7321_v19, %v1317_v57  ;;  %v6043_v54 = vld [vmem:[#allocation2 + $0x8] sm:$0xff] }
 0x111   : > { %5319 = vrot.lane.b32.xlu0 %v5318_v52, %s6149_s8  ;;  %v1292_v52 = vrot.slane %v7096_v6, 2  ;;  %v10079_v6 = vld [vmem:[#allocation22_spill] sm:$0xff]  ;;  %v884_v35 = vsel %vm312_vm0, %v6042_v9, %v5081_v36  ;;  %v7372_v36 = vld [vmem:[#allocation2 + $0x78] sm:$0xff] }
 0x112   : > { %v1303_v5 = vsel %vm707_vm4, %v10079_v6, %v1302_v33  ;;  %v1901_v9 = vrot.slane %v7372_v36, 1 }
 0x113   : > { %5329 = vrot.lane.b32.xlu2 %v5328_v17, %s6149_s8  ;;  %v1298_v17 = vsel %vm707_vm4, %v10073_v56, %v1297_v55  ;;  %v7350_v56 = vld [vmem:[#allocation2 + $0x68] sm:$0xff] }
 0x114   : > { %v5373_v3 = vpack.i.bf16 %v1298_v17, %v10076_v14  ;;  %v7352_v17 = vld [vmem:[#allocation2 + $0x70] sm:$0x3] }
 0x115   : > { %v7252_v40 = vpop.permute.xlu2 %5164 }
 0x116   : > { %v7261_v60 = vpop.permute.xlu1 %5114  ;;  %v7266_v24 = vpop.permute.xlu0 %5124 }
 0x117   : > { %5324 = vrot.lane.b32.xlu1 %v5323_v48, %s6149_s8  ;;  %10066 = vst [vmem:[#allocation56_spill] sm:$0xff] %v7261_v60  ;;  %v1293_v48 = vsel %vm707_vm4, %v10077_v63, %v1292_v52  ;;  %v7348_v52 = vld [vmem:[#allocation2 + $0x60] sm:$0xff] }
 0x118   : > { %v5368_v11 = vpack.i.bf16 %v1293_v48, %v10081_v39  ;;  %v1896_v6 = vrot.slane %v7348_v52, 1  ;;  %v1899_v39 = vrot.slane %v7352_v17, 1 }
 0x119   : > { %5334 = vrot.lane.b32.xlu0 %v5333_v58, %s6149_s8 }
 0x11b   : > { %5344 = vrot.lane.b32.xlu2 %v5343_v31, %s6149_s8  ;;  %v1307_v31 = vrot.slane %v7138_v25, 2  ;;  %v5388_v25 = vpack.i.bf16 %v1313_v45, %v7107_v28  ;;  %v7339_v28 = vsel %vm707_vm4, %v1314_v47, %v7321_v19 }
 0x11c   : > { %10084 = vst [vmem:[#allocation42_spill] sm:$0xff] %v7339_v28  ;;  %v5393_v30 = vpack.i.bf16 %v1318_v4, %v7339_v28  ;;  %v5086_v4 = vunpack.i.l.bf16 %v7218_v51  ;;  %v7517_v28 = vld [vmem:[#allocation2 + $0x190] sm:$0x3] }
 0x11d   : > { %v7273_v59 = vpop.permute.xlu2 %5179  ;;  %v1308_v1 = vsel %vm707_vm4, %v10083_v41, %v1307_v31  ;;  %v7382_v41 = vld [vmem:[#allocation2 + $0xa8] sm:$0xff] }
 0x11e   : > { %v5383_v23 = vpack.i.bf16 %v1308_v1, %v10085_v38  ;;  %v7384_v1 = vld [vmem:[#allocation2 + $0xb0] sm:$0xff]  ;;  %v5167_v38 = vunpack.i.h.bf16 %v7252_v40 }
 0x11f   : > { %5339 = vrot.lane.b32.xlu1 %v5338_v12, %s6149_s8  ;;  %v5378_v12 = vpack.i.bf16 %v1303_v5, %v10082_v32  ;;  %v1897_v5 = vrot.slane %v7350_v56, 1  ;;  %v7374_v32 = vld [vmem:[#allocation2 + $0x80] sm:$0xff] }
 0x121   : > { %v7282_v20 = vpop.permute.xlu1 %5129  ;;  %5349 = vrot.lane.b32.xlu0 %v5348_v44, %s6149_s8  ;;  %v7287_v50 = vpop.permute.xlu0 %5139  ;;  %v5082_v44 = vunpack.i.h.bf16 %v7198_v0  ;;  %v1898_v47 = vsel %vm530_vm3, %v1896_v6, %v1897_v5  ;;  %v1900_v57 = vsel %vm530_vm3, %v1897_v5, %v1899_v39  ;;  %v7413_v39 = vld [vmem:[#allocation2 + $0x20] sm:$0xff] }
 0x123   : > { %5359 = vrot.lane.b32.xlu2 %v5358_v61, %s6149_s8  ;;  %v7333_v61 = vld [vmem:[#allocation2 + $0x38] sm:$0xff] }
 0x124   : > { %v1887_v14 = vrot.slane %v7333_v61, 1 }
 0x125   : > { %v7294_v43 = vpop.permute.xlu2 %5194 }
 0x126   : > { %10074 = vst [vmem:[#allocation34_spill] sm:$0xff] %v7294_v43 }
 0x127   : > { %5354 = vrot.lane.b32.xlu1 %v5353_v53, %s6149_s8  ;;  %v885_v53 = vsel %vm312_vm0, %v6043_v54, %v5082_v44  ;;  %v5408_v54 = vpack.i.bf16 %v1900_v57, %v1898_v47  ;;  %v7420_v47 = vld [vmem:[#allocation2 + $0xd0] sm:$0x3] }
 0x128   : > { %10090 = vst [vmem:[#allocation47_spill] sm:$0xff] %v7420_v47 }
 0x129   : > { %v7303_v7 = vpop.permute.xlu1 %5144  ;;  %5364 = vrot.lane.b32.xlu0 %v5363_v62, %s6149_s8 }
 0x12a   : > { %10078 = vst [vmem:[#allocation37_spill] sm:$0xff] %v7303_v7 }
 0x12b   : > { %v7308_v58 = vpop.permute.xlu0 %5154  ;;  %5374 = vrot.lane.b32.xlu2 %v5373_v3, %s6149_s8  ;;  %v1889_v3 = vrot.slane %v7335_v22, 1 }
 0x12c   : > { %10080 = vst [vmem:[#allocation60_spill] sm:$0xff] %v7308_v58  ;;  %v7432_v58 = vld [vmem:[#allocation2 + $0x100] sm:$0x3] }
 0x12d   : > { %v7316_v29 = vpop.permute.xlu2 %5209  ;;  %v1890_v31 = vsel %vm530_vm3, %v1887_v14, %v1889_v3 }
 0x12f   : > { %5369 = vrot.lane.b32.xlu1 %v5368_v11, %s6149_s8  ;;  %v1888_v11 = vsel %vm530_vm3, %v1886_v42, %v1887_v14  ;;  %v1911_v42 = vrot.slane %v7382_v41, 1  ;;  %v5121_v14 = vunpack.i.l.bf16 %v7183_v46 }
 0x131   : > { %v5160_v49 = vpop.permute.xlu1 %5159  ;;  %5379 = vrot.lane.b32.xlu0 %v5378_v12, %s6149_s8  ;;  %v7376_v12 = vld [vmem:[#allocation2 + $0x88] sm:$0x3] }
 0x132   : > { %v5162_v0 = vunpack.i.h.bf16 %v5160_v49  ;;  %v5161_v16 = vunpack.i.l.bf16 %v5160_v49  ;;  %v7386_v49 = vld [vmem:[#allocation2 + $0xb8] sm:$0x3] }
 0x133   : > { %v7343_v55 = vpop.permute.xlu0 %5169  ;;  %5389 = vrot.lane.b32.xlu2 %v5388_v25, %s6149_s8  ;;  %v5398_v25 = vpack.i.bf16 %v1890_v31, %v1888_v11  ;;  %v7418_v31 = vld [vmem:[#allocation2 + $0xc8] sm:$0xff] }
 0x134   : > { %v917_v62 = vsel %vm916_vm5, %v884_v35, %v5161_v16  ;;  %v918_v33 = vsel %vm916_vm5, %v885_v53, %v5162_v0  ;;  %v1902_v35 = vrot.slane %v7374_v32, 1  ;;  %v1904_v0 = vrot.slane %v7376_v12, 1  ;;  %10089 = vst [vmem:[#allocation46_spill] sm:$0xff] %v7418_v31 }
 0x135   : > { %v949_v63 = vpack.c.bf16 %v918_v33, %v917_v62  ;;  %v7359_v48 = vpop.permute.xlu2 %5224  ;;  %v5087_v16 = vunpack.i.h.bf16 %v7218_v51  ;;  %v5166_v53 = vunpack.i.l.bf16 %v7252_v40  ;;  %v1912_v62 = vrot.slane %v7384_v1, 1  ;;  %v7409_v40 = vld [vmem:[#allocation2 + $0x18] sm:$0xff] }
 0x136   : > { %10086 = vst [vmem:[#allocation48_spill] sm:$0xff] %v7359_v48  ;;  %v1914_v33 = vrot.slane %v7386_v49, 1  ;;  %v1903_v3 = vsel %vm530_vm3, %v1901_v9, %v1902_v35  ;;  %v1905_v51 = vsel %vm530_vm3, %v1902_v35, %v1904_v0  ;;  %v886_v5 = vsel %vm312_vm0, %v7409_v40, %v5086_v4  ;;  %v7426_v35 = vld [vmem:[#allocation2 + $0xf0] sm:$0xff]  ;;  %v10091_v4 = vld [vmem:[#allocation29_spill] sm:$0xff]  ;;  %v7495_v48 = vld [vmem:[#allocation2 + $0xd8] sm:$0xff] }
 0x137   : > { %5384 = vrot.lane.b32.xlu1 %v5383_v23, %s6149_s8  ;;  %4953 = vmatmul.msk.bf16.vlgmr.msra.gmra.mxu1 %vm1503_vm6, %v949_v63  ;;  %v7404_v63 = vld [vmem:[#allocation2 + $0xc0] sm:$0xff]  ;;  %v887_v11 = vsel %vm312_vm0, %v7413_v39, %v5087_v16  ;;  %v900_v16 = vsel %vm312_vm0, %v10091_v4, %v5121_v14  ;;  %v5413_v13 = vpack.i.bf16 %v1905_v51, %v1903_v3  ;;  %v1926_v3 = vrot.slane %v7426_v35, 1 }
 0x138   : > { %10087 = vst [vmem:[#allocation45_spill] sm:$0xff] %v7404_v63  ;;  %v920_v57 = vsel %vm916_vm5, %v887_v11, %v5167_v38  ;;  %v1915_v9 = vsel %vm530_vm3, %v1912_v62, %v1914_v33  ;;  %v1916_v43 = vrot.slane %v7404_v63, 1  ;;  %v1917_v38 = vrot.slane %v7418_v31, 1  ;;  %v10093_v11 = vld [vmem:[#allocation31_spill] sm:$0xff] }
 0x139   : > { %v7369_v45 = vpop.permute.xlu1 %5174  ;;  %5394 = vrot.lane.b32.xlu0 %v5393_v30, %s6149_s8  ;;  %v5122_v30 = vunpack.i.h.bf16 %v7183_v46  ;;  %v919_v46 = vsel %vm916_vm5, %v886_v5, %v5166_v53  ;;  %10111 = vst [vmem:[#allocation29_spill] sm:$0xff] %v7560_v2 }
 0x13b   : > { %v7380_v44 = vpop.permute.xlu0 %5184  ;;  %v901_v10 = vsel %vm312_vm0, %v10093_v11, %v5122_v30 }
 0x13d   : > { %v7394_v23 = vpop.permute.xlu2 %5239 }
 0x13f   : > { %5399 = vrot.lane.b32.xlu1 %v5398_v25, %s6148_s26  ;;  %v1913_v25 = vsel %vm530_vm3, %v1911_v42, %v1912_v62  ;;  %v1919_v42 = vrot.slane %v7420_v47, 1  ;;  %v950_v62 = vpack.c.bf16 %v920_v57, %v919_v46  ;;  %v1918_v46 = vsel %vm530_vm3, %v1916_v43, %v1917_v38 }
 0x140   : > { %v5423_v14 = vpack.i.bf16 %v1915_v9, %v1913_v25  ;;  %v7452_v25 = vld [vmem:[#allocation2 + $0x108] sm:$0xff]  ;;  %v7456_v9 = vld [vmem:[#allocation2 + $0x118] sm:$0x3] }
 0x141   : > { %v7407_v6 = vpop.permute.xlu1 %5189  ;;  %5409 = vrot.lane.b32.xlu0 %v5408_v54, %s6148_s26  ;;  %v7430_v54 = vld [vmem:[#allocation2 + $0xf8] sm:$0xff]  ;;  %v1920_v30 = vsel %vm530_vm3, %v1917_v38, %v1919_v42  ;;  %10094 = vst [vmem:[#allocation59_spill] sm:$0xff] %v7452_v25  ;;  %v7464_v38 = vld [vmem:[#allocation2 + $0x140] sm:$0xff]  ;;  %v5092_v42 = vunpack.i.h.bf16 %v7213_v37 }
 0x142   : > { %10088 = vst [vmem:[#allocation54_spill] sm:$0xff] %v7407_v6  ;;  %v1927_v60 = vrot.slane %v7430_v54, 1  ;;  %v5428_v43 = vpack.i.bf16 %v1920_v30, %v1918_v46  ;;  %v5171_v46 = vunpack.i.l.bf16 %v7343_v55  ;;  %v7512_v6 = vld [vmem:[#allocation2 + $0xe0] sm:$0xff] }
 0x143   : > { %v5200_v0 = vpop.permute.xlu0 %5199  ;;  %10096 = vst [vmem:[#allocation61_spill] sm:$0xff] %v7456_v9 }
 0x144   : > { %v5202_v53 = vunpack.i.h.bf16 %v5200_v0  ;;  %v5201_v5 = vunpack.i.l.bf16 %v5200_v0  ;;  %v1929_v0 = vrot.slane %v7432_v58, 1 }
 0x145   : > { %v7437_v33 = vpop.permute.xlu2 %5254 }
 0x146   : > { %10092 = vst [vmem:[#allocation52_spill] sm:$0xff] %v7437_v33  ;;  %v933_v51 = vsel %vm916_vm5, %v900_v16, %v5201_v5  ;;  %v934_v4 = vsel %vm916_vm5, %v901_v10, %v5202_v53  ;;  %v7454_v10 = vld [vmem:[#allocation2 + $0x110] sm:$0xff]  ;;  %v1928_v16 = vsel %vm530_vm3, %v1926_v3, %v1927_v60  ;;  %v1930_v53 = vsel %vm530_vm3, %v1927_v60, %v1929_v0  ;;  %v7462_v5 = vld [vmem:[#allocation2 + $0x138] sm:$0xff] }
 0x147   : > { %4954 = vmatmul.msk.bf16.gmra.mxu1 %vm1503_vm6, %v950_v62  ;;  %v957_v47 = vpack.c.bf16 %v934_v4, %v933_v51  ;;  %5414 = vrot.lane.b32.xlu1 %v5413_v13, %s6148_s26  ;;  %10095 = vst [vmem:[#allocation57_spill] sm:$0xff] %v7454_v10  ;;  %v1931_v62 = vrot.slane %v7452_v25, 1  ;;  %v1932_v11 = vrot.slane %v7454_v10, 1  ;;  %v5091_v3 = vunpack.i.l.bf16 %v7213_v37 }
 0x148   : > { %v5126_v60 = vunpack.i.l.bf16 %v7266_v24  ;;  %v5172_v51 = vunpack.i.h.bf16 %v7343_v55  ;;  %v5438_v0 = vpack.i.bf16 %v1930_v53, %v1928_v16  ;;  %v1941_v30 = vrot.slane %v7462_v5, 1  ;;  %v7487_v16 = vld [vmem:[#allocation2 + $0x30] sm:$0xff]  ;;  %v7491_v53 = vld [vmem:[#allocation2 + $0x38] sm:$0xff] }
 0x149   : > { %v5205_v57 = vpop.permute.xlu1 %5204  ;;  %4961 = vmatmul.msk.bf16.vlgmr.msra.gmra.mxu3 %vm1503_vm6, %v957_v47  ;;  %5424 = vrot.lane.b32.xlu0 %v5423_v14, %s6148_s26  ;;  %v7466_v47 = vld [vmem:[#allocation2 + $0x148] sm:$0x3]  ;;  %v1934_v14 = vrot.slane %v7456_v9, 1  ;;  %v1942_v33 = vrot.slane %v7464_v38, 1  ;;  %v5127_v10 = vunpack.i.h.bf16 %v7266_v24  ;;  %v1933_v31 = vsel %vm530_vm3, %v1931_v62, %v1932_v11  ;;  %10098 = vst [vmem:[#allocation67_spill] sm:$0xff] %v7487_v16  ;;  %v7502_v62 = vld [vmem:[#allocation2 + $0x158] sm:$0xff] }
 0x14a   : > { %v1944_v25 = vrot.slane %v7466_v47, 1  ;;  %v5206_v9 = vunpack.i.l.bf16 %v5205_v57  ;;  %v5207_v37 = vunpack.i.h.bf16 %v5205_v57  ;;  %v888_v55 = vsel %vm312_vm0, %v7487_v16, %v5091_v3  ;;  %10099 = vst [vmem:[#allocation62_spill] sm:$0xff] %v7491_v53 }
 0x14b   : > { %v7460_v13 = vpop.permute.xlu0 %5214  ;;  %v1935_v63 = vsel %vm530_vm3, %v1932_v11, %v1934_v14  ;;  %v889_v24 = vsel %vm312_vm0, %v7491_v53, %v5092_v42  ;;  %v902_v57 = vsel %vm312_vm0, %v7495_v48, %v5126_v60  ;;  %10101 = vst [vmem:[#allocation64_spill] sm:$0xff] %v7502_v62  ;;  %v7504_v11 = vld [vmem:[#allocation2 + $0x160] sm:$0x3]  ;;  %v921_v14 = vsel %vm916_vm5, %v888_v55, %v5171_v46 }
 0x14c   : > { %10102 = vst [vmem:[#allocation25_spill] sm:$0xff] %v7504_v11  ;;  %v922_v3 = vsel %vm916_vm5, %v889_v24, %v5172_v51  ;;  %v1943_v16 = vsel %vm530_vm3, %v1941_v30, %v1942_v33  ;;  %v1945_v42 = vsel %vm530_vm3, %v1942_v33, %v1944_v25  ;;  %v903_v60 = vsel %vm312_vm0, %v7512_v6, %v5127_v10 }
 0x14d   : > { %v7475_v4 = vpop.permute.xlu2 %5269  ;;  %v5443_v7 = vpack.i.bf16 %v1935_v63, %v1933_v31  ;;  %v936_v46 = vsel %vm916_vm5, %v903_v60, %v5207_v37  ;;  %v1947_v30 = vrot.slane %v7502_v62, 1  ;;  %v1949_v33 = vrot.slane %v7504_v11, 1  ;;  %v1794_v37 = vld [vmem:[#allocation2 + $0x50] sm:$0xff] }
 0x14e   : > { %10097 = vst [vmem:[#allocation28_spill] sm:$0xff] %v7475_v4  ;;  %v951_v25 = vpack.c.bf16 %v922_v3, %v921_v14  ;;  %v5453_v24 = vpack.i.bf16 %v1945_v42, %v1943_v16  ;;  %v7534_v16 = vld [vmem:[#allocation2 + $0x198] sm:$0xff]  ;;  %v7536_v14 = vld [vmem:[#allocation2 + $0x1a0] sm:$0xff]  ;;  %v7538_v3 = vld [vmem:[#allocation2 + $0x1a8] sm:$0x3]  ;;  %v5097_v42 = vunpack.i.h.bf16 %v7239_v21 }
 0x14f   : > { %5429 = vrot.lane.b32.xlu1 %v5428_v43, %s6148_s26  ;;  %v7500_v43 = vld [vmem:[#allocation2 + $0x150] sm:$0xff]  ;;  %v1950_v31 = vsel %vm530_vm3, %v1947_v30, %v1949_v33  ;;  %10106 = vst [vmem:[#allocation22_spill] sm:$0xff] %v7534_v16  ;;  %v5132_v33 = vunpack.i.h.bf16 %v7282_v20  ;;  %v1962_v11 = vrot.slane %v7536_v14, 1  ;;  %v1964_v62 = vrot.slane %v7538_v3, 1 }
 0x150   : > { %10100 = vst [vmem:[#allocation63_spill] sm:$0xff] %v7500_v43  ;;  %v1946_v51 = vrot.slane %v7500_v43, 1 }
 0x151   : > { %v7485_v4 = vpop.permute.xlu1 %5219  ;;  %5439 = vrot.lane.b32.xlu0 %v5438_v0, %s6148_s26  ;;  %v935_v0 = vsel %vm916_vm5, %v902_v57, %v5206_v9  ;;  %v1793_v9 = vld [vmem:[#allocation2 + $0x48] sm:$0xff]  ;;  %v1795_v57 = vld [vmem:[#allocation2 + $0x58] sm:$0x3]  ;;  %10107 = vst [vmem:[#allocation58_spill] sm:$0xff] %v7536_v14  ;;  %v5212_v14 = vunpack.i.h.bf16 %v7316_v29 }
 0x152   : > { %v958_v10 = vpack.c.bf16 %v936_v46, %v935_v0  ;;  %v1948_v63 = vsel %vm530_vm3, %v1946_v51, %v1947_v30  ;;  %10108 = vst [vmem:[#allocation49_spill] sm:$0xff] %v7538_v3  ;;  %v1892_v46 = vrot.slane %v1794_v37, 1  ;;  %v1894_v51 = vrot.slane %v1795_v57, 1 }
 0x153   : > { %v7510_v53 = vpop.permute.xlu0 %5229  ;;  %v5096_v30 = vunpack.i.l.bf16 %v7239_v21  ;;  %v5211_v3 = vunpack.i.l.bf16 %v7316_v29  ;;  %v1965_v29 = vsel %vm530_vm3, %v1962_v11, %v1964_v62 }
 0x154   : > { %10103 = vst [vmem:[#allocation65_spill] sm:$0xff] %v7510_v53  ;;  %v1959_v53 = vrot.slane %v7517_v28, 1 }
 0x155   : > { %v7523_v55 = vpop.permute.xlu2 %5284 }
 0x156   : > { %10104 = vst [vmem:[#allocation51_spill] sm:$0xff] %v7523_v55  ;;  %v1960_v0 = vsel %vm530_vm3, %v7194_v15, %v1959_v53  ;;  %v5177_v15 = vunpack.i.h.bf16 %v7369_v45  ;;  %v5176_v53 = vunpack.i.l.bf16 %v7369_v45  ;;  %v7565_v45 = vld [vmem:[#allocation2 + $0x50] sm:$0xff] }
 0x157   : > { %4955 = vmatmul.msk.bf16.gmra.mxu1 %vm1503_vm6, %v951_v25  ;;  %5444 = vrot.lane.b32.xlu1 %v5443_v7, %s6148_s26  ;;  %v1891_v7 = vrot.slane %v1793_v9, 1  ;;  %v5131_v25 = vunpack.i.l.bf16 %v7282_v20  ;;  %v5468_v55 = vpack.i.bf16 %v1960_v0, %v7203_v27  ;;  %v1895_v20 = vsel %vm530_vm3, %v1892_v46, %v1894_v51  ;;  %10112 = vst [vmem:[#allocation31_spill] sm:$0xff] %v7565_v45 }
 0x158   : > { %v891_v27 = vsel %vm312_vm0, %v7565_v45, %v5097_v42 }
 0x159   : > { %v7530_v60 = vpop.permute.xlu1 %5234  ;;  %4962 = vmatmul.msk.bf16.gmra.mxu3 %vm1503_vm6, %v958_v10  ;;  %5454 = vrot.lane.b32.xlu0 %v5453_v24, %s6148_s26  ;;  %v5458_v10 = vpack.i.bf16 %v1950_v31, %v1948_v63  ;;  %v1893_v43 = vsel %vm530_vm3, %v1891_v7, %v1892_v46  ;;  %v2068_v63 = vrot.slane %v1794_v37, 2  ;;  %v2070_v31 = vrot.slane %v1795_v57, 2  ;;  %v1802_v57 = vld [vmem:[#allocation2 + $0x90] sm:$0xff] }
 0x15a   : > { %10105 = vst [vmem:[#allocation66_spill] sm:$0xff] %v7530_v60  ;;  %v1961_v60 = vrot.slane %v7534_v16, 1  ;;  %v5403_v16 = vpack.i.bf16 %v1895_v20, %v1893_v43  ;;  %v890_v7 = vsel %vm312_vm0, %v7560_v2, %v5096_v30  ;;  %v924_v51 = vsel %vm916_vm5, %v891_v27, %v5177_v15  ;;  %v7580_v30 = vld [vmem:[#allocation2 + $0xf8] sm:$0xff]  ;;  %v4931_v27 = vld [vmem:[%s9836_s1 + $0x8] sm:$0xf] }
 0x15b   : > { %v7546_v24 = vpop.permute.xlu0 %5244  ;;  %v923_v46 = vsel %vm916_vm5, %v890_v7, %v5176_v53  ;;  %v905_v42 = vsel %vm312_vm0, %v7580_v30, %v5132_v33  ;;  %v1906_v62 = vrot.slane %v1802_v57, 1  ;;  %v5101_v15 = vunpack.i.l.bf16 %v7158_v18 }
 0x15c   : > { %10109 = vst [vmem:[#allocation50_spill] sm:$0xff] %v7546_v24  ;;  %v2067_v24 = vrot.slane %v1793_v9, 2  ;;  %v7569_v9 = vld [vmem:[#allocation2 + $0xf0] sm:$0xff]  ;;  %v1963_v37 = vsel %vm530_vm3, %v1961_v60, %v1962_v11  ;;  %5404 = vrot.lane.b32.xlu2 %v5403_v16, %s6148_s26  ;;  %v1804_v60 = vld [vmem:[#allocation2 + $0xa0] sm:$0x3]  ;;  %v2071_v16 = vsel %vm707_vm4, %v2068_v63, %v2070_v31  ;;  %v938_v33 = vsel %vm916_vm5, %v905_v42, %v5212_v14 }
 0x15d   : > { %v7554_v21 = vpop.permute.xlu2 %5299  ;;  %v904_v43 = vsel %vm312_vm0, %v7569_v9, %v5131_v25  ;;  %v7585_v25 = vld [vmem:[#allocation2 + $0x98] sm:$0xff]  ;;  %v1909_v53 = vrot.slane %v1804_v60, 1  ;;  %v2073_v31 = vrot.slane %v7350_v56, 2  ;;  %v2082_v42 = vrot.slane %v1802_v57, 2 }
 0x15e   : > { %10110 = vst [vmem:[#allocation38_spill] sm:$0xff] %v7554_v21  ;;  %v2069_v11 = vsel %vm707_vm4, %v2067_v24, %v2068_v63  ;;  %v937_v7 = vsel %vm916_vm5, %v904_v43, %v5211_v3  ;;  %v5060_v24 = vld [vmem:[%s9836_s1 + $0x8] sm:$0x30]  ;;  %v2072_v63 = vrot.slane %v7348_v52, 2  ;;  %v2075_v21 = vrot.slane %v7352_v17, 2  ;;  %v1811_v57 = vld [vmem:[#allocation2 + $0xd8] sm:$0xff] }
 0x15f   : > { %5459 = vrot.lane.b32.xlu1 %v5458_v10, %s6148_s26  ;;  %10114 = vst [vmem:[#allocation69_spill] sm:$0xff] %v7585_v25  ;;  %v1907_v10 = vrot.slane %v7585_v25, 1  ;;  %v952_v3 = vpack.c.bf16 %v924_v51, %v923_v46  ;;  %v5483_v14 = vpack.i.bf16 %v2071_v16, %v2069_v11  ;;  %v2083_v45 = vrot.slane %v7585_v25, 2  ;;  %v7622_v11 = vld [vmem:[#allocation2 + $0x60] sm:$0xff] }
 0x160   : > { %v2085_v2 = vrot.slane %v1804_v60, 2  ;;  %v5102_v52 = vunpack.i.h.bf16 %v7158_v18  ;;  %v959_v56 = vpack.c.bf16 %v938_v33, %v937_v7  ;;  %v2074_v46 = vsel %vm707_vm4, %v2072_v63, %v2073_v31 }
 0x161   : > { %v7576_v0 = vpop.permute.xlu1 %5249  ;;  %5469 = vrot.lane.b32.xlu0 %v5468_v55, %s6148_s26  ;;  %v5473_v55 = vpack.i.bf16 %v1965_v29, %v1963_v37  ;;  %v1910_v37 = vsel %vm530_vm3, %v1907_v10, %v1909_v53  ;;  %v4932_v29 = vor.u32 %v5060_v24, %v4931_v27  ;;  %v2076_v51 = vsel %vm707_vm4, %v2073_v31, %v2075_v21  ;;  %v7626_v21 = vld [vmem:[#allocation2 + $0xe0] sm:$0xff]  ;;  %v7635_v24 = vld [vmem:[#allocation2 + $0x68] sm:$0xff] }
 0x162   : > { %10113 = vst [vmem:[#allocation68_spill] sm:$0xff] %v7576_v0  ;;  %v5182_v60 = vunpack.i.h.bf16 %v7273_v59  ;;  %v892_v16 = vsel %vm312_vm0, %v7622_v11, %v5101_v15  ;;  %v2084_v53 = vsel %vm707_vm4, %v2082_v42, %v2083_v45  ;;  %v5137_v33 = vunpack.i.h.bf16 %v7207_v26 }
 0x163   : > { %v7591_v20 = vpop.permute.xlu0 %5259  ;;  %v1553_v17 = vsel %vm707_vm4, %v4932_v29, 0  ;;  %10117 = vst [vmem:[#allocation72_spill] sm:$0xff] %v7626_v21  ;;  %v893_v15 = vsel %vm312_vm0, %v7635_v24, %v5102_v52  ;;  %v5488_v63 = vpack.i.bf16 %v2076_v51, %v2074_v46  ;;  %v2087_v31 = vrot.slane %v7382_v41, 2 }
 0x164   : > { %10115 = vst [vmem:[#allocation70_spill] sm:$0xff] %v7591_v20  ;;  %v1908_v20 = vsel %vm530_vm3, %v1906_v62, %v1907_v10  ;;  %5065 = vmatpush.bf16.msra.mxu2 %v1553_v17  ;;  %v5181_v62 = vunpack.i.l.bf16 %v7273_v59  ;;  %v1921_v10 = vrot.slane %v1811_v57, 1  ;;  %1562 = vmatpush.bf16.msra.mxu0 %v1553_v17  ;;  %v1922_v59 = vrot.slane %v7626_v21, 1 }
 0x165   : > { %v7605_v43 = vpop.permute.xlu2 %5314  ;;  %v5418_v0 = vpack.i.bf16 %v1910_v37, %v1908_v20  ;;  %v2086_v20 = vsel %vm707_vm4, %v2083_v45, %v2085_v2  ;;  %v2088_v2 = vrot.slane %v7384_v1, 2  ;;  %v2090_v45 = vrot.slane %v7386_v49, 2 }
 0x166   : > { %10116 = vst [vmem:[#allocation71_spill] sm:$0xff] %v7605_v43  ;;  %v926_v37 = vsel %vm916_vm5, %v893_v15, %v5182_v60  ;;  %v5498_v29 = vpack.i.bf16 %v2086_v20, %v2084_v53  ;;  %v2098_v52 = vrot.slane %v7626_v21, 2  ;;  %v5107_v1 = vunpack.i.h.bf16 %v7175_v34  ;;  %v7664_v20 = vld [vmem:[#allocation2 + $0x110] sm:$0xff] }
 0x167   : > { %4956 = vmatmul.msk.bf16.gmra.mxu1 %vm1503_vm6, %v952_v3  ;;  %5474 = vrot.lane.b32.xlu1 %v5473_v55, %s6148_s26  ;;  %v5136_v55 = vunpack.i.l.bf16 %v7207_v26  ;;  %v1923_v3 = vsel %vm530_vm3, %v1921_v10, %v1922_v59  ;;  %v925_v26 = vsel %vm916_vm5, %v892_v16, %v5181_v62  ;;  %v5106_v49 = vunpack.i.l.bf16 %v7175_v34  ;;  %v7654_v62 = vld [vmem:[#allocation2 + $0x108] sm:$0xff] }
 0x168   : > { %5419 = vrot.lane.b32.xlu2 %v5418_v0, %s6148_s26  ;;  %v1813_v0 = vld [vmem:[#allocation2 + $0xe8] sm:$0x3]  ;;  %v5216_v46 = vunpack.i.l.bf16 %v7460_v13  ;;  %v5217_v51 = vunpack.i.h.bf16 %v7460_v13  ;;  %v2091_v16 = vsel %vm707_vm4, %v2088_v2, %v2090_v45  ;;  %v5142_v34 = vunpack.i.h.bf16 %v7287_v50 }
 0x169   : > { %v7618_v18 = vpop.permute.xlu1 %5264  ;;  %4963 = vmatmul.msk.bf16.gmra.mxu3 %vm1503_vm6, %v959_v56  ;;  %5484 = vrot.lane.b32.xlu0 %v5483_v14, %s6149_s8  ;;  %v1924_v7 = vrot.slane %v1813_v0, 1  ;;  %v2097_v56 = vrot.slane %v1811_v57, 2  ;;  %v2100_v17 = vrot.slane %v1813_v0, 2  ;;  %v906_v60 = vsel %vm312_vm0, %v7654_v62, %v5136_v55  ;;  %v1820_v0 = vld [vmem:[#allocation2 + $0x120] sm:$0xff] }
 0x16a   : > { %v2089_v57 = vsel %vm707_vm4, %v2087_v31, %v2088_v2  ;;  %v953_v53 = vpack.c.bf16 %v926_v37, %v925_v26  ;;  %v907_v13 = vsel %vm312_vm0, %v7664_v20, %v5137_v33  ;;  %v1936_v55 = vrot.slane %v1820_v0, 1  ;;  %v4973_v31 = vld [vmem:[%s9836_s1 + $0x10] sm:$0xf]  ;;  %v5061_v2 = vld [vmem:[%s9836_s1 + $0x10] sm:$0x30] }
 0x16b   : > { %v7633_v27 = vpop.permute.xlu0 %5274  ;;  %v1925_v42 = vsel %vm530_vm3, %v1922_v59, %v1924_v7  ;;  %v1821_v59 = vld [vmem:[#allocation2 + $0x128] sm:$0xff]  ;;  %v1822_v7 = vld [vmem:[#allocation2 + $0x130] sm:$0x3]  ;;  %v2099_v15 = vsel %vm707_vm4, %v2097_v56, %v2098_v52  ;;  %v5141_v33 = vunpack.i.l.bf16 %v7287_v50  ;;  %v939_v37 = vsel %vm916_vm5, %v906_v60, %v5216_v46 }
 0x16c   : > { %10118 = vst [vmem:[#allocation73_spill] sm:$0xff] %v7633_v27  ;;  %v5433_v41 = vpack.i.bf16 %v1925_v42, %v1923_v3  ;;  %v1937_v45 = vrot.slane %v1821_v59, 1  ;;  %v1939_v3 = vrot.slane %v1822_v7, 1  ;;  %v4974_v42 = vor.u32 %v5061_v2, %v4973_v31 }
 0x16d   : > { %v7643_v14 = vpop.permute.xlu2 %5329  ;;  %v940_v56 = vsel %vm916_vm5, %v907_v13, %v5217_v51  ;;  %v2112_v46 = vrot.slane %v1820_v0, 2  ;;  %v2113_v60 = vrot.slane %v1821_v59, 2  ;;  %v7700_v0 = vld [vmem:[#allocation2 + $0x120] sm:$0xff]  ;;  %v5186_v59 = vunpack.i.l.bf16 %v7380_v44 }
 0x16e   : > { %v2375_v43 = vsel %vm707_vm4, %v4974_v42, 0  ;;  %v1938_v50 = vsel %vm530_vm3, %v1936_v55, %v1937_v45  ;;  %v1940_v27 = vsel %vm530_vm3, %v1937_v45, %v1939_v3  ;;  %v1830_v45 = vld [vmem:[#allocation2 + $0x170] sm:$0xff]  ;;  %v1831_v3 = vld [vmem:[#allocation2 + $0x178] sm:$0x3] }
 0x16f   : > { %5489 = vrot.lane.b32.xlu1 %v5488_v63, %s6149_s8  ;;  %v2101_v63 = vsel %vm707_vm4, %v2098_v52, %v2100_v17  ;;  %v2102_v52 = vrot.slane %v7426_v35, 2  ;;  %v2103_v17 = vrot.slane %v7430_v54, 2  ;;  %2384 = vmatpush.bf16.msrb.mxu2 %v2375_v43  ;;  %v5448_v51 = vpack.i.bf16 %v1940_v27, %v1938_v50  ;;  %v7691_v54 = vld [vmem:[#allocation2 + $0x78] sm:$0xff] }
 0x170   : > { %5434 = vrot.lane.b32.xlu2 %v5433_v41, %s6148_s26  ;;  %v2105_v41 = vrot.slane %v7432_v58, 2  ;;  %v5513_v25 = vpack.i.bf16 %v2101_v63, %v2099_v15  ;;  %v960_v35 = vpack.c.bf16 %v940_v56, %v939_v37  ;;  %v894_v58 = vsel %vm312_vm0, %v7691_v54, %v5106_v49  ;;  %v1829_v63 = vld [vmem:[#allocation2 + $0x168] sm:$0xff] }
 0x171   : > { %v7662_v10 = vpop.permute.xlu1 %5279  ;;  %5499 = vrot.lane.b32.xlu0 %v5498_v29, %s6149_s8  ;;  %v5503_v29 = vpack.i.bf16 %v2091_v16, %v2089_v57  ;;  %v2115_v57 = vrot.slane %v1822_v7, 2  ;;  %v7696_v16 = vld [vmem:[#allocation2 + $0x80] sm:$0xff]  ;;  %v908_v43 = vsel %vm312_vm0, %v7700_v0, %v5141_v33  ;;  %v2104_v27 = vsel %vm707_vm4, %v2102_v52, %v2103_v17 }
 0x172   : > { %v895_v13 = vsel %vm312_vm0, %v7696_v16, %v5107_v1  ;;  %v5187_v49 = vunpack.i.h.bf16 %v7380_v44  ;;  %v5242_v7 = vunpack.i.h.bf16 %v7394_v23  ;;  %v7714_v1 = vld [vmem:[#allocation2 + $0x128] sm:$0xff]  ;;  %v5281_v31 = vunpack.i.l.bf16 %v7662_v10 }
 0x173   : > { %v7678_v26 = vpop.permute.xlu0 %5289  ;;  %v909_v15 = vsel %vm312_vm0, %v7714_v1, %v5142_v34  ;;  %v2114_v2 = vsel %vm707_vm4, %v2112_v46, %v2113_v60  ;;  %v2116_v44 = vsel %vm707_vm4, %v2113_v60, %v2115_v57  ;;  %v1951_v33 = vrot.slane %v1829_v63, 1 }
 0x174   : > { %v5282_v37 = vunpack.i.h.bf16 %v7662_v10  ;;  %v1952_v42 = vrot.slane %v1830_v45, 1  ;;  %v1954_v56 = vrot.slane %v1831_v3, 1  ;;  %v5222_v52 = vunpack.i.h.bf16 %v7485_v4 }
 0x175   : > { %v7685_v21 = vpop.permute.xlu2 %5344  ;;  %v2117_v34 = vrot.slane %v7462_v5, 2  ;;  %v5221_v50 = vunpack.i.l.bf16 %v7485_v4  ;;  %v5528_v60 = vpack.i.bf16 %v2116_v44, %v2114_v2 }
 0x176   : > { %v1953_v57 = vsel %vm530_vm3, %v1951_v33, %v1952_v42  ;;  %v1955_v10 = vsel %vm530_vm3, %v1952_v42, %v1954_v56  ;;  %v1432_v5 = vsel %vm312_vm0, %v7512_v6, %v5282_v37  ;;  %v5241_v56 = vunpack.i.l.bf16 %v7394_v23 }
 0x177   : > { %4957 = vmatmul.msk.bf16.gmra.mxu1 %vm1503_vm6, %v953_v53  ;;  %5504 = vrot.lane.b32.xlu1 %v5503_v29, %s6149_s8  ;;  %v2106_v53 = vsel %vm707_vm4, %v2103_v17, %v2105_v41  ;;  %v2118_v17 = vrot.slane %v7464_v38, 2  ;;  %v2120_v41 = vrot.slane %v7466_v47, 2  ;;  %v2128_v38 = vrot.slane %v1830_v45, 2 }
 0x178   : > { %5449 = vrot.lane.b32.xlu2 %v5448_v51, %s6148_s26  ;;  %v2130_v47 = vrot.slane %v1831_v3, 2  ;;  %v5463_v4 = vpack.i.bf16 %v1955_v10, %v1953_v57  ;;  %v2062_v6 = vrot.slane %v7329_v8, 2  ;;  %v927_v45 = vsel %vm916_vm5, %v894_v58, %v5186_v59 }
 0x179   : > { %v7710_v55 = vpop.permute.xlu1 %5294  ;;  %4964 = vmatmul.msk.bf16.gmra.mxu3 %vm1503_vm6, %v960_v35  ;;  %5514 = vrot.lane.b32.xlu0 %v5513_v25, %s6149_s8  ;;  %v5518_v25 = vpack.i.bf16 %v2106_v53, %v2104_v27  ;;  %v1431_v27 = vsel %vm312_vm0, %v7495_v48, %v5281_v31  ;;  %v2127_v53 = vrot.slane %v1829_v63, 2  ;;  %v2119_v33 = vsel %vm707_vm4, %v2117_v34, %v2118_v17 }
 0x17a   : > { %v2121_v42 = vsel %vm707_vm4, %v2118_v17, %v2120_v41  ;;  %v2063_v31 = vrot.slane %v7333_v61, 2  ;;  %v928_v3 = vsel %vm916_vm5, %v895_v13, %v5187_v49  ;;  %v941_v37 = vsel %vm916_vm5, %v908_v43, %v5221_v50 }
 0x17b   : > { %v7722_v29 = vpop.permute.xlu0 %5304  ;;  %v942_v17 = vsel %vm916_vm5, %v909_v15, %v5222_v52  ;;  %v2129_v41 = vsel %vm707_vm4, %v2127_v53, %v2128_v38  ;;  %v5533_v8 = vpack.i.bf16 %v2121_v42, %v2119_v33  ;;  %v2135_v58 = vrot.slane %v7517_v28, 2 }
 0x17c   : > { %v2064_v13 = vsel %vm707_vm4, %v2062_v6, %v2063_v31  ;;  %v954_v49 = vpack.c.bf16 %v928_v3, %v927_v45  ;;  %v1416_v43 = vsel %vm312_vm0, %v7413_v39, %v5242_v7  ;;  %v961_v57 = vpack.c.bf16 %v942_v17, %v941_v37  ;;  %v10124_v3 = vld [vmem:[#allocation48_spill] sm:$0xff] }
 0x17d   : > { %v5360_v46 = vpop.permute.xlu2 %5359  ;;  %v2136_v23 = vsel %vm707_vm4, %v7321_v19, %v2135_v58  ;;  %v2077_v39 = vrot.slane %v7372_v36, 2  ;;  %v2078_v7 = vrot.slane %v7374_v32, 2  ;;  %v10120_v19 = vld [vmem:[#allocation42_spill] sm:$0xff]  ;;  %v5227_v37 = vunpack.i.h.bf16 %v10124_v3 }
 0x17e   : > { %v5362_v51 = vunpack.i.h.bf16 %v5360_v46  ;;  %v5361_v35 = vunpack.i.l.bf16 %v5360_v46  ;;  %v2131_v46 = vsel %vm707_vm4, %v2128_v38, %v2130_v47  ;;  %v10126_v58 = vld [vmem:[#allocation46_spill] sm:$0xff] }
 0x17f   : > { %5519 = vrot.lane.b32.xlu1 %v5518_v25, %s6149_s8  ;;  %v2065_v25 = vrot.slane %v7335_v22, 2  ;;  %v1415_v22 = vsel %vm312_vm0, %v7409_v40, %v5241_v56  ;;  %v5543_v50 = vpack.i.bf16 %v2131_v46, %v2129_v41  ;;  %v2079_v38 = vsel %vm707_vm4, %v2077_v39, %v2078_v7  ;;  %v10123_v56 = vld [vmem:[#allocation50_spill] sm:$0xff]  ;;  %v7799_v46 = vld [vmem:[#allocation2 + $0x98] sm:$0xff] }
 0x180   : > { %v1463_v2 = vsel %vm916_vm5, %v1431_v27, %v5361_v35  ;;  %v1464_v44 = vsel %vm916_vm5, %v1432_v5, %v5362_v51  ;;  %5464 = vrot.lane.b32.xlu2 %v5463_v4, %s6148_s26  ;;  %v2080_v51 = vrot.slane %v7376_v12, 2  ;;  %v10119_v35 = vld [vmem:[#allocation55_spill] sm:$0xff]  ;;  %v5548_v5 = vpack.i.bf16 %v2136_v23, %v10120_v19  ;;  %v10121_v4 = vld [vmem:[#allocation37_spill] sm:$0xff] }
 0x181   : > { %v7741_v48 = vpop.permute.xlu1 %5309  ;;  %v1487_v63 = vpack.c.bf16 %v1464_v44, %v1463_v2  ;;  %5529 = vrot.lane.b32.xlu0 %v5528_v60, %s6149_s8  ;;  %v2066_v59 = vsel %vm707_vm4, %v2063_v31, %v2065_v25  ;;  %v5111_v27 = vunpack.i.l.bf16 %v10119_v35  ;;  %v5112_v36 = vunpack.i.h.bf16 %v10119_v35  ;;  %v10122_v2 = vld [vmem:[#allocation54_spill] sm:$0xff] }
 0x182   : > { %v5478_v10 = vpack.i.bf16 %v2066_v59, %v2064_v13  ;;  %v2081_v47 = vsel %vm707_vm4, %v2078_v7, %v2080_v51  ;;  %v5147_v32 = vunpack.i.h.bf16 %v10121_v4  ;;  %v5146_v12 = vunpack.i.l.bf16 %v10121_v4  ;;  %v7790_v31 = vld [vmem:[#allocation2 + $0x90] sm:$0xff] }
 0x183   : > { %v5320_v34 = vpop.permute.xlu0 %5319  ;;  %4941 = vmatmul.msk.bf16.vlgmr.msra.gmra.mxu2 %vm1503_vm6, %v1487_v63  ;;  %v5192_v44 = vunpack.i.h.bf16 %v10122_v2  ;;  %v5191_v33 = vunpack.i.l.bf16 %v10122_v2  ;;  %v5493_v42 = vpack.i.bf16 %v2081_v47, %v2079_v38  ;;  %v5247_v63 = vunpack.i.h.bf16 %v10123_v56 }
 0x184   : > { %v5322_v60 = vunpack.i.h.bf16 %v5320_v34  ;;  %v5321_v61 = vunpack.i.l.bf16 %v5320_v34  ;;  %v5246_v6 = vunpack.i.l.bf16 %v10123_v56  ;;  %v896_v45 = vsel %vm312_vm0, %v7790_v31, %v5111_v27 }
 0x185   : > { %v5226_v25 = vunpack.i.l.bf16 %v10124_v3  ;;  %v2093_v13 = vrot.slane %v10126_v58, 2 }
 0x186   : > { %v1447_v15 = vsel %vm916_vm5, %v1415_v22, %v5321_v61  ;;  %v1448_v52 = vsel %vm916_vm5, %v1416_v43, %v5322_v60  ;;  %v10125_v60 = vld [vmem:[#allocation45_spill] sm:$0xff]  ;;  %v929_v43 = vsel %vm916_vm5, %v896_v45, %v5191_v33  ;;  %v10134_v45 = vld [vmem:[#allocation56_spill] sm:$0xff] }
 0x187   : > { %4958 = vmatmul.msk.bf16.gmra.mxu1 %vm1503_vm6, %v954_v49  ;;  %v1479_v28 = vpack.c.bf16 %v1448_v52, %v1447_v15  ;;  %5534 = vrot.lane.b32.xlu1 %v5533_v8, %s6149_s8  ;;  %v897_v8 = vsel %vm312_vm0, %v7799_v46, %v5112_v36  ;;  %v2092_v61 = vrot.slane %v10125_v60, 2  ;;  %v10127_v49 = vld [vmem:[#allocation47_spill] sm:$0xff]  ;;  %v5116_v3 = vunpack.i.l.bf16 %v10134_v45 }
 0x188   : > { %5479 = vrot.lane.b32.xlu2 %v5478_v10, %s6149_s8  ;;  %v2095_v22 = vrot.slane %v10127_v49, 2  ;;  %v930_v59 = vsel %vm916_vm5, %v897_v8, %v5192_v44  ;;  %v7808_v15 = vld [vmem:[#allocation2 + $0x138] sm:$0xff]  ;;  %v10135_v8 = vld [vmem:[#allocation53_spill] sm:$0xff]  ;;  %v5117_v49 = vunpack.i.h.bf16 %v10134_v45 }
 0x189   : > { %v5325_v40 = vpop.permute.xlu1 %5324  ;;  %4933 = vmatmul.msk.bf16.vlgmr.msra.gmra.mxu0 %vm1503_vm6, %v1479_v28  ;;  %4965 = vmatmul.msk.bf16.gmra.mxu3 %vm1503_vm6, %v961_v57  ;;  %v910_v52 = vsel %vm312_vm0, %v7808_v15, %v5146_v12  ;;  %v10128_v10 = vld [vmem:[#allocation67_spill] sm:$0xff]  ;;  %v2094_v7 = vsel %vm707_vm4, %v2092_v61, %v2093_v13  ;;  %v955_v38 = vpack.c.bf16 %v930_v59, %v929_v43  ;;  %v5152_v60 = vunpack.i.h.bf16 %v10135_v8 }
 0x18a   : > { %5544 = vrot.lane.b32.xlu0 %v5543_v50, %s6149_s8  ;;  %v5327_v34 = vunpack.i.h.bf16 %v5325_v40  ;;  %v5326_v17 = vunpack.i.l.bf16 %v5325_v40  ;;  %v7812_v50 = vld [vmem:[#allocation2 + $0x140] sm:$0xff]  ;;  %v1417_v23 = vsel %vm312_vm0, %v10128_v10, %v5246_v6  ;;  %v10129_v40 = vld [vmem:[#allocation62_spill] sm:$0xff]  ;;  %v2096_v51 = vsel %vm707_vm4, %v2093_v13, %v2095_v22  ;;  %v10131_v44 = vld [vmem:[#allocation59_spill] sm:$0xff] }
 0x18b   : > { %v7778_v53 = vpop.permute.xlu0 %5334  ;;  %v911_v28 = vsel %vm312_vm0, %v7812_v50, %v5147_v32  ;;  %v1418_v39 = vsel %vm312_vm0, %v10129_v40, %v5247_v63  ;;  %v943_v19 = vsel %vm916_vm5, %v910_v52, %v5226_v25  ;;  %v5508_v47 = vpack.i.bf16 %v2096_v51, %v2094_v7  ;;  %v10130_v32 = vld [vmem:[#allocation51_spill] sm:$0xff]  ;;  %v10133_v63 = vld [vmem:[#allocation61_spill] sm:$0xff]  ;;  %v10136_v22 = vld [vmem:[#allocation34_spill] sm:$0xff] }
 0x18c   : > { %v1449_v35 = vsel %vm916_vm5, %v1417_v23, %v5326_v17  ;;  %v1450_v27 = vsel %vm916_vm5, %v1418_v39, %v5327_v34  ;;  %v5287_v12 = vunpack.i.h.bf16 %v10130_v32  ;;  %v5286_v2 = vunpack.i.l.bf16 %v10130_v32  ;;  %v10137_v39 = vld [vmem:[#allocation68_spill] sm:$0xff]  ;;  %v10139_v32 = vld [vmem:[#allocation63_spill] sm:$0xff] }
 0x18d   : > { %v1480_v36 = vpack.c.bf16 %v1450_v27, %v1449_v35  ;;  %v2107_v33 = vrot.slane %v10131_v44, 2  ;;  %v2110_v6 = vrot.slane %v10133_v63, 2  ;;  %v5151_v61 = vunpack.i.l.bf16 %v10135_v8  ;;  %v7856_v27 = vld [vmem:[#allocation2 + $0xa8] sm:$0xff]  ;;  %v7878_v45 = vld [vmem:[#allocation2 + $0x158] sm:$0xff] }
 0x18e   : > { %v5197_v43 = vunpack.i.h.bf16 %v10136_v22  ;;  %v1433_v59 = vsel %vm312_vm0, %v7569_v9, %v5286_v2  ;;  %v1434_v52 = vsel %vm312_vm0, %v7580_v30, %v5287_v12  ;;  %v5252_v7 = vunpack.i.h.bf16 %v10137_v39  ;;  %v10140_v2 = vld [vmem:[#allocation64_spill] sm:$0xff] }
 0x18f   : > { %5549 = vrot.lane.b32.xlu1 %v5548_v5, %s6149_s8  ;;  %v944_v5 = vsel %vm916_vm5, %v911_v28, %v5227_v37  ;;  %v5196_v28 = vunpack.i.l.bf16 %v10136_v22  ;;  %v5251_v51 = vunpack.i.l.bf16 %v10137_v39  ;;  %v898_v9 = vsel %vm312_vm0, %v7856_v27, %v5116_v3 }
 0x190   : > { %5494 = vrot.lane.b32.xlu2 %v5493_v42, %s6149_s8  ;;  %v962_v4 = vpack.c.bf16 %v944_v5, %v943_v19  ;;  %v10132_v42 = vld [vmem:[#allocation57_spill] sm:$0xff]  ;;  %v2122_v12 = vrot.slane %v10139_v32, 2  ;;  %v2123_v44 = vrot.slane %v10140_v2, 2  ;;  %v913_v3 = vsel %vm312_vm0, %v7878_v45, %v5152_v60  ;;  %v10147_v2 = vld [vmem:[#allocation60_spill] sm:$0xff] }
 0x191   : > { %v7797_v41 = vpop.permute.xlu1 %5339  ;;  %v2108_v56 = vrot.slane %v10132_v42, 2  ;;  %v10138_v19 = vld [vmem:[#allocation65_spill] sm:$0xff] }
 0x192   : > { %v5232_v5 = vunpack.i.h.bf16 %v10138_v19  ;;  %v5231_v30 = vunpack.i.l.bf16 %v10138_v19 }
 0x193   : > { %v7817_v57 = vpop.permute.xlu0 %5349  ;;  %v2109_v34 = vsel %vm707_vm4, %v2107_v33, %v2108_v56  ;;  %v2111_v17 = vsel %vm707_vm4, %v2108_v56, %v2110_v6  ;;  %v10141_v33 = vld [vmem:[#allocation25_spill] sm:$0xff]  ;;  %v931_v56 = vsel %vm916_vm5, %v898_v9, %v5196_v28  ;;  %v7874_v6 = vld [vmem:[#allocation2 + $0x150] sm:$0xff]  ;;  %v5292_v28 = vunpack.i.h.bf16 %v7678_v26 }
 0x194   : > { %v5523_v40 = vpack.i.bf16 %v2111_v17, %v2109_v34  ;;  %v2125_v42 = vrot.slane %v10141_v33, 2  ;;  %v10143_v17 = vld [vmem:[#allocation31_spill] sm:$0xff]  ;;  %v946_v60 = vsel %vm916_vm5, %v913_v3, %v5232_v5  ;;  %v10145_v9 = vld [vmem:[#allocation58_spill] sm:$0xff]  ;;  %v10146_v5 = vld [vmem:[#allocation49_spill] sm:$0xff] }
 0x195   : > { %v1420_v8 = vsel %vm312_vm0, %v10143_v17, %v5252_v7  ;;  %v2138_v19 = vrot.slane %v10145_v9, 2  ;;  %v10149_v3 = vld [vmem:[#allocation66_spill] sm:$0xff]  ;;  %v5336_v17 = vunpack.i.l.bf16 %v7778_v53 }
 0x196   : > { %v10150_v9 = vld [vmem:[#allocation70_spill] sm:$0xff] }
 0x197   : > { %4959 = vmatmul.msk.bf16.gmra.mxu1 %vm1503_vm6, %v955_v38  ;;  %v5332_v38 = vunpack.i.h.bf16 %v7643_v14 }
 0x198   : > { %5509 = vrot.lane.b32.xlu2 %v5508_v47, %s6149_s8  ;;  %v5331_v47 = vunpack.i.l.bf16 %v7643_v14  ;;  %v912_v14 = vsel %vm312_vm0, %v7874_v6, %v5151_v61 }
 0x199   : > { %4934 = vmatmul.msk.bf16.gmra.mxu0 %vm1503_vm6, %v1480_v36  ;;  %4966 = vmatmul.msk.bf16.gmra.mxu3 %vm1503_vm6, %v962_v4  ;;  %v7839_v37 = vpop.permute.xlu1 %5354  ;;  %v7865_v36 = vld [vmem:[#allocation2 + $0xb0] sm:$0xff]  ;;  %v1452_v61 = vsel %vm916_vm5, %v1420_v8, %v5332_v38  ;;  %v945_v22 = vsel %vm916_vm5, %v912_v14, %v5231_v30  ;;  %v2140_v30 = vrot.slane %v10146_v5, 2  ;;  %v1436_v38 = vsel %vm312_vm0, %v7664_v20, %v5292_v28 }
 0x19a   : > { %v899_v4 = vsel %vm312_vm0, %v7865_v36, %v5117_v49  ;;  %v5237_v20 = vunpack.i.h.bf16 %v10149_v3 }
 0x19b   : > { %v5365_v25 = vpop.permute.xlu0 %5364  ;;  %v932_v63 = vsel %vm916_vm5, %v899_v4, %v5197_v43  ;;  %v2141_v4 = vsel %vm707_vm4, %v2138_v19, %v2140_v30  ;;  %v5342_v30 = vunpack.i.h.bf16 %v7797_v41 }
 0x19c   : > { %v5367_v58 = vunpack.i.h.bf16 %v5365_v25  ;;  %v5366_v13 = vunpack.i.l.bf16 %v5365_v25  ;;  %v10142_v25 = vld [vmem:[#allocation29_spill] sm:$0xff] }
 0x19d   : > { %v1419_v34 = vsel %vm312_vm0, %v10142_v25, %v5251_v51  ;;  %v10144_v51 = vld [vmem:[#allocation22_spill] sm:$0xff]  ;;  %v5236_v25 = vunpack.i.l.bf16 %v10149_v3 }
 0x19e   : > { %v1465_v10 = vsel %vm916_vm5, %v1433_v59, %v5366_v13  ;;  %v1466_v23 = vsel %vm916_vm5, %v1434_v52, %v5367_v58  ;;  %v2124_v58 = vsel %vm707_vm4, %v2122_v12, %v2123_v44  ;;  %v2126_v13 = vsel %vm707_vm4, %v2123_v44, %v2125_v42 }
 0x19f   : > { %v1488_v35 = vpack.c.bf16 %v1466_v23, %v1465_v10  ;;  %v1451_v49 = vsel %vm916_vm5, %v1419_v34, %v5331_v47  ;;  %v956_v59 = vpack.c.bf16 %v932_v63, %v931_v56  ;;  %v5538_v52 = vpack.i.bf16 %v2126_v13, %v2124_v58  ;;  %v10148_v56 = vld [vmem:[#allocation52_spill] sm:$0xff]  ;;  %v7924_v13 = vld [vmem:[#allocation2 + $0x168] sm:$0xff] }
 0x1a0   : > { %5524 = vrot.lane.b32.xlu2 %v5523_v40, %s6149_s8  ;;  %v5291_v10 = vunpack.i.l.bf16 %v7678_v26  ;;  %v1481_v23 = vpack.c.bf16 %v1452_v61, %v1451_v49  ;;  %v963_v40 = vpack.c.bf16 %v946_v60, %v945_v22  ;;  %v5157_v44 = vunpack.i.h.bf16 %v10147_v2  ;;  %v7928_v61 = vld [vmem:[#allocation2 + $0x170] sm:$0xff] }
 0x1a1   : > { %4942 = vmatmul.msk.bf16.gmra.mxu2 %vm1503_vm6, %v1488_v35  ;;  %v5370_v43 = vpop.permute.xlu1 %5369  ;;  %v2137_v35 = vrot.slane %v10144_v51, 2  ;;  %v5156_v42 = vunpack.i.l.bf16 %v10147_v2  ;;  %v5257_v63 = vunpack.i.h.bf16 %v10148_v56  ;;  %v5337_v34 = vunpack.i.h.bf16 %v7778_v53 }
 0x1a2   : > { %v5372_v39 = vunpack.i.h.bf16 %v5370_v43  ;;  %v5371_v7 = vunpack.i.l.bf16 %v5370_v43  ;;  %v1435_v26 = vsel %vm312_vm0, %v7654_v62, %v5291_v10  ;;  %v5256_v62 = vunpack.i.l.bf16 %v10148_v56 }
 0x1a3   : > { %v2139_v47 = vsel %vm707_vm4, %v2137_v35, %v2138_v19  ;;  %v1422_v58 = vsel %vm312_vm0, %v7635_v24, %v5257_v63  ;;  %v914_v49 = vsel %vm312_vm0, %v7924_v13, %v5156_v42  ;;  %v915_v53 = vsel %vm312_vm0, %v7928_v61, %v5157_v44 }
 0x1a4   : > { %v1467_v32 = vsel %vm916_vm5, %v1435_v26, %v5371_v7  ;;  %v1468_v12 = vsel %vm916_vm5, %v1436_v38, %v5372_v39  ;;  %v5553_v33 = vpack.i.bf16 %v2141_v4, %v2139_v47  ;;  %v1421_v8 = vsel %vm312_vm0, %v7622_v11, %v5256_v62  ;;  %v5380_v4 = vpop.permute.xlu0 %5379 }
 0x1a5   : > { %v1489_v14 = vpack.c.bf16 %v1468_v12, %v1467_v32  ;;  %v1453_v22 = vsel %vm916_vm5, %v1421_v8, %v5336_v17  ;;  %v1454_v60 = vsel %vm916_vm5, %v1422_v58, %v5337_v34  ;;  %v947_v43 = vsel %vm916_vm5, %v914_v49, %v5236_v25  ;;  %v10151_v32 = vld [vmem:[#allocation38_spill] sm:$0xff] }
 0x1a6   : > { %v948_v11 = vsel %vm916_vm5, %v915_v53, %v5237_v20  ;;  %v5297_v24 = vunpack.i.h.bf16 %v7710_v55  ;;  %v1482_v28 = vpack.c.bf16 %v1454_v60, %v1453_v22  ;;  %v5261_v19 = vunpack.i.l.bf16 %v10150_v9 }
 0x1a7   : > { %4960 = vmatmul.msk.bf16.gmra.mxu1 %vm1503_vm6, %v956_v59  ;;  %v5375_v59 = vpop.permute.xlu2 %5374  ;;  %v964_v10 = vpack.c.bf16 %v948_v11, %v947_v43  ;;  %v5341_v26 = vunpack.i.l.bf16 %v7797_v41  ;;  %v5302_v12 = vunpack.i.h.bf16 %v10151_v32  ;;  %v5301_v2 = vunpack.i.l.bf16 %v10151_v32 }
 0x1a8   : > { %5539 = vrot.lane.b32.xlu2 %v5538_v52, %s6149_s8  ;;  %v5296_v52 = vunpack.i.l.bf16 %v7710_v55  ;;  %v1438_v7 = vsel %vm312_vm0, %v7714_v1, %v5297_v24  ;;  %v5262_v55 = vunpack.i.h.bf16 %v10150_v9  ;;  %v5381_v41 = vunpack.i.l.bf16 %v5380_v4  ;;  %v10152_v24 = vld [vmem:[#allocation28_spill] sm:$0xff] }
 0x1a9   : > { %4935 = vmatmul.msk.bf16.gmra.mxu0 %vm1503_vm6, %v1481_v23  ;;  %4967 = vmatmul.msk.bf16.gmra.mxu3 %vm1503_vm6, %v963_v40  ;;  %v5377_v23 = vunpack.i.h.bf16 %v5375_v59  ;;  %v5376_v40 = vunpack.i.l.bf16 %v5375_v59  ;;  %v5267_v62 = vunpack.i.h.bf16 %v7618_v18  ;;  %v5347_v20 = vunpack.i.h.bf16 %v7685_v21 }
 0x1aa   : > { %v1437_v39 = vsel %vm312_vm0, %v7700_v0, %v5296_v52  ;;  %v1423_v0 = vsel %vm312_vm0, %v7691_v54, %v5261_v19  ;;  %v1424_v1 = vsel %vm312_vm0, %v7696_v16, %v5262_v55  ;;  %v1439_v54 = vsel %vm312_vm0, %v7808_v15, %v5301_v2 }
 0x1ab   : > { %v1469_v51 = vsel %vm916_vm5, %v1437_v39, %v5376_v40  ;;  %v1470_v35 = vsel %vm916_vm5, %v1438_v7, %v5377_v23  ;;  %v1455_v38 = vsel %vm916_vm5, %v1423_v0, %v5341_v26  ;;  %v1456_v47 = vsel %vm916_vm5, %v1424_v1, %v5342_v30 }
 0x1ac   : > { %v1490_v5 = vpack.c.bf16 %v1470_v35, %v1469_v51  ;;  %v1483_v44 = vpack.c.bf16 %v1456_v47, %v1455_v38  ;;  %v1440_v16 = vsel %vm312_vm0, %v7812_v50, %v5302_v12  ;;  %v1471_v56 = vsel %vm916_vm5, %v1439_v54, %v5381_v41  ;;  %v5395_v60 = vpop.permute.xlu0 %5394  ;;  %v10154_v54 = vld [vmem:[#allocation71_spill] sm:$0xff] }
 0x1ad   : > { %v5346_v25 = vunpack.i.l.bf16 %v7685_v21  ;;  %v1426_v50 = vsel %vm312_vm0, %v7799_v46, %v5267_v62  ;;  %v5307_v58 = vunpack.i.h.bf16 %v7722_v29  ;;  %v5306_v49 = vunpack.i.l.bf16 %v7722_v29 }
 0x1ae   : > { %v1458_v8 = vsel %vm916_vm5, %v1426_v50, %v5347_v20  ;;  %v5272_v29 = vunpack.i.h.bf16 %v10152_v24  ;;  %v5271_v52 = vunpack.i.l.bf16 %v10152_v24  ;;  %v5351_v23 = vunpack.i.l.bf16 %v7817_v57  ;;  %v6077_v24 = vld [vmem:[#allocation2 + $0x30] sm:$0xff] }
 0x1af   : > { %v5390_v42 = vpop.permute.xlu2 %5389  ;;  %v1441_v46 = vsel %vm312_vm0, %v7874_v6, %v5306_v49  ;;  %v5312_v51 = vunpack.i.h.bf16 %v7741_v48  ;;  %v5311_v35 = vunpack.i.l.bf16 %v7741_v48  ;;  %v10153_v48 = vld [vmem:[#allocation73_spill] sm:$0xff]  ;;  %v5356_v32 = vunpack.i.l.bf16 %v7839_v37 }
 0x1b0   : > { %5554 = vrot.lane.b32.xlu2 %v5553_v33, %s6149_s8  ;;  %v5382_v33 = vunpack.i.h.bf16 %v5380_v4  ;;  %v1427_v6 = vsel %vm312_vm0, %v7856_v27, %v5271_v52  ;;  %v1428_v40 = vsel %vm312_vm0, %v7865_v36, %v5272_v29  ;;  %v5392_v55 = vunpack.i.h.bf16 %v5390_v42 }
 0x1b1   : > { %4943 = vmatmul.msk.bf16.gmra.mxu2 %vm1503_vm6, %v1489_v14  ;;  %v5266_v14 = vunpack.i.l.bf16 %v7618_v18  ;;  %v5385_v18 = vpop.permute.xlu1 %5384  ;;  %v1459_v39 = vsel %vm916_vm5, %v1427_v6, %v5351_v23  ;;  %v5391_v19 = vunpack.i.l.bf16 %v5390_v42  ;;  %v1444_v27 = vsel %vm312_vm0, %v7928_v61, %v5312_v51  ;;  %v6072_v61 = vld [vmem:[#allocation2 + $0xc0] sm:$0xff] }
 0x1b2   : > { %v1472_v63 = vsel %vm916_vm5, %v1440_v16, %v5382_v33  ;;  %v5387_v53 = vunpack.i.h.bf16 %v5385_v18  ;;  %v5386_v22 = vunpack.i.l.bf16 %v5385_v18  ;;  %v1443_v36 = vsel %vm312_vm0, %v7924_v13, %v5311_v35 }
 0x1b3   : > { %v1491_v3 = vpack.c.bf16 %v1472_v63, %v1471_v56  ;;  %v1425_v15 = vsel %vm312_vm0, %v7790_v31, %v5266_v14  ;;  %v1442_v31 = vsel %vm312_vm0, %v7878_v45, %v5307_v58  ;;  %v1475_v30 = vsel %vm916_vm5, %v1443_v36, %v5391_v19 }
 0x1b4   : > { %v1457_v17 = vsel %vm916_vm5, %v1425_v15, %v5346_v25  ;;  %v1473_v43 = vsel %vm916_vm5, %v1441_v46, %v5386_v22  ;;  %v1474_v11 = vsel %vm916_vm5, %v1442_v31, %v5387_v53  ;;  %v7995_v45 = vpop.permute.xlu0 %5409  ;;  %v1476_v26 = vsel %vm916_vm5, %v1444_v27, %v5392_v55  ;;  %v8038_v25 = vld [vmem:[#allocation2 + $0x180] sm:$0xff]  ;;  %v6078_v55 = vld [vmem:[#allocation2 + $0x50] sm:$0xff] }
 0x1b5   : > { %v1484_v21 = vpack.c.bf16 %v1458_v8, %v1457_v17  ;;  %v5277_v1 = vunpack.i.h.bf16 %v10153_v48  ;;  %v5276_v38 = vunpack.i.l.bf16 %v10153_v48  ;;  %v1493_v47 = vpack.c.bf16 %v1476_v26, %v1475_v30 }
 0x1b6   : > { %v5357_v4 = vunpack.i.h.bf16 %v7839_v37  ;;  %v5317_v16 = vunpack.i.h.bf16 %v10154_v54  ;;  %v5316_v37 = vunpack.i.l.bf16 %v10154_v54  ;;  %v5397_v62 = vunpack.i.h.bf16 %v5395_v60 }
 0x1b7   : > { %v7971_v34 = vpop.permute.xlu2 %5404  ;;  %v1429_v2 = vsel %vm312_vm0, %v6072_v61, %v5276_v38  ;;  %v5396_v14 = vunpack.i.l.bf16 %v5395_v60  ;;  %v5412_v38 = vunpack.i.h.bf16 %v7995_v45 }
 0x1b8   : > { %v1461_v41 = vsel %vm916_vm5, %v1429_v2, %v5356_v32  ;;  %v1445_v15 = vsel %vm312_vm0, %v8038_v25, %v5316_v37  ;;  %v6080_v2 = vld [vmem:[#allocation2 + $0x68] sm:$0xff] }
 0x1b9   : > { %4936 = vmatmul.msk.bf16.gmra.mxu0 %vm1503_vm6, %v1482_v28  ;;  %4968 = vmatmul.msk.bf16.gmra.mxu3 %vm1503_vm6, %v964_v10  ;;  %v1492_v28 = vpack.c.bf16 %v1474_v11, %v1473_v43  ;;  %v5352_v10 = vunpack.i.h.bf16 %v7817_v57  ;;  %v1477_v17 = vsel %vm916_vm5, %v1445_v15, %v5396_v14  ;;  %v6076_v43 = vld [vmem:[#allocation2 + $0x38] sm:$0xff] }
 0x1bb   : > { %v1460_v7 = vsel %vm916_vm5, %v1428_v40, %v5352_v10 }
 0x1bc   : > { %v1485_v57 = vpack.c.bf16 %v1460_v7, %v1459_v39  ;;  %v8014_v0 = vpop.permute.xlu0 %5424  ;;  %v5407_v39 = vunpack.i.h.bf16 %v7971_v34  ;;  %v5406_v7 = vunpack.i.l.bf16 %v7971_v34 }
 0x1be   : > { %v2241_v19 = vsel %vm312_vm0, %v6078_v55, %v5407_v39  ;;  %v6084_v39 = vld [vmem:[#allocation2 + $0x90] sm:$0xff] }
 0x1c1   : > { %4944 = vmatmul.msk.bf16.gmra.mxu2 %vm1503_vm6, %v1490_v5  ;;  %v5400_v5 = vpop.permute.xlu1 %5399 }
 0x1c2   : > { %v7988_v59 = vpop.permute.xlu2 %5419  ;;  %v5401_v53 = vunpack.i.l.bf16 %v5400_v5 }
 0x1c4   : > { %v8031_v56 = vpop.permute.xlu0 %5439  ;;  %v2238_v29 = vsel %vm312_vm0, %v6077_v24, %v5401_v53 }
 0x1c9   : > { %4937 = vmatmul.msk.bf16.gmra.mxu0 %vm1503_vm6, %v1483_v44  ;;  %v8023_v13 = vpop.permute.xlu1 %5414  ;;  %v6073_v44 = vld [vmem:[#allocation2 + $0xc8] sm:$0xff] }
 0x1ca   : > { %v8005_v9 = vpop.permute.xlu2 %5434  ;;  %v1430_v33 = vsel %vm312_vm0, %v6073_v44, %v5277_v1  ;;  %v2243_v44 = vsel %vm312_vm0, %v6080_v2, %v5412_v38 }
 0x1cb   : > { %v1462_v42 = vsel %vm916_vm5, %v1430_v33, %v5357_v4  ;;  %v6081_v33 = vld [vmem:[#allocation2 + $0x60] sm:$0xff] }
 0x1cc   : > { %v1486_v63 = vpack.c.bf16 %v1462_v42, %v1461_v41  ;;  %v8048_v49 = vpop.permute.xlu0 %5454 }
 0x1d1   : > { %4945 = vmatmul.msk.bf16.gmra.mxu2 %vm1503_vm6, %v1491_v3  ;;  %v8034_v3 = vld [vmem:[#allocation2 + $0x188] sm:$0xff]  ;;  %v8046_v18 = vpop.permute.xlu1 %5429 }
 0x1d2   : > { %v8020_v12 = vpop.permute.xlu2 %5449  ;;  %v1446_v20 = vsel %vm312_vm0, %v8034_v3, %v5317_v16 }
 0x1d3   : > { %v1478_v8 = vsel %vm916_vm5, %v1446_v20, %v5397_v62  ;;  %v5416_v62 = vunpack.i.l.bf16 %v8023_v13 }
 0x1d4   : > { %v1494_v58 = vpack.c.bf16 %v1478_v8, %v1477_v17  ;;  %v8055_v52 = vpop.permute.xlu0 %5469  ;;  %v6082_v17 = vld [vmem:[#allocation2 + $0x80] sm:$0xff] }
 0x1d9   : > { %4938 = vmatmul.msk.bf16.gmra.mxu0 %vm1503_vm6, %v1484_v21  ;;  %v5402_v21 = vunpack.i.h.bf16 %v5400_v5  ;;  %v8051_v31 = vpop.permute.xlu1 %5444  ;;  %v6079_v5 = vld [vmem:[#allocation2 + $0x48] sm:$0xff] }
 0x1da   : > { %v8042_v50 = vpop.permute.xlu2 %5464  ;;  %v2240_v27 = vsel %vm312_vm0, %v6079_v5, %v5406_v7  ;;  %v5426_v5 = vunpack.i.l.bf16 %v8014_v0 }
 0x1db   : > { %v2239_v11 = vsel %vm312_vm0, %v6076_v43, %v5402_v21 }
 0x1dc   : > { %v5485_v51 = vpop.permute.xlu0 %5484 }
 0x1dd   : > { %v5487_v35 = vunpack.i.h.bf16 %v5485_v51 }
 0x1df   : > { %v2273_v48 = vsel %vm916_vm5, %v2241_v19, %v5487_v35 }
 0x1e1   : > { %4946 = vmatmul.msk.bf16.gmra.mxu2 %vm1503_vm6, %v1492_v28  ;;  %v8059_v6 = vpop.permute.xlu1 %5459 }
 0x1e2   : > { %v5480_v22 = vpop.permute.xlu2 %5479 }
 0x1e3   : > { %v5482_v46 = vunpack.i.h.bf16 %v5480_v22  ;;  %v5481_v60 = vunpack.i.l.bf16 %v5480_v22 }
 0x1e4   : > { %v5500_v24 = vpop.permute.xlu0 %5499 }
 0x1e5   : > { %v2271_v28 = vsel %vm916_vm5, %v2239_v11, %v5482_v46  ;;  %v2270_v10 = vsel %vm916_vm5, %v2238_v29, %v5481_v60  ;;  %v5421_v11 = vunpack.i.l.bf16 %v7988_v59  ;;  %v5502_v29 = vunpack.i.h.bf16 %v5500_v24 }
 0x1e6   : > { %v2302_v23 = vpack.c.bf16 %v2271_v28, %v2270_v10  ;;  %v5501_v28 = vunpack.i.l.bf16 %v5500_v24  ;;  %v10155_v10 = vld [vmem:[#allocation69_spill] sm:$0xff] }
 0x1e7   : > { %v2246_v7 = vsel %vm312_vm0, %v6084_v39, %v5421_v11 }
 0x1e8   : > { %v2278_v35 = vsel %vm916_vm5, %v2246_v7, %v5501_v28 }
 0x1e9   : > { %4939 = vmatmul.msk.bf16.gmra.mxu0 %vm1503_vm6, %v1485_v57  ;;  %v5486_v57 = vunpack.i.l.bf16 %v5485_v51  ;;  %v8068_v36 = vpop.permute.xlu1 %5474 }
 0x1ea   : > { %v5495_v14 = vpop.permute.xlu2 %5494 }
 0x1eb   : > { %v2272_v26 = vsel %vm916_vm5, %v2240_v27, %v5486_v57  ;;  %v5497_v20 = vunpack.i.h.bf16 %v5495_v14  ;;  %v5496_v15 = vunpack.i.l.bf16 %v5495_v14  ;;  %v6088_v14 = vld [vmem:[#allocation2 + $0xc0] sm:$0xff] }
 0x1ec   : > { %v2303_v1 = vpack.c.bf16 %v2273_v48, %v2272_v26 }
 0x1f1   : > { %4947 = vmatmul.msk.bf16.gmra.mxu2 %vm1503_vm6, %v1493_v47  ;;  %v5411_v47 = vunpack.i.l.bf16 %v7995_v45  ;;  %v5490_v4 = vpop.permute.xlu1 %5489  ;;  %v5417_v45 = vunpack.i.h.bf16 %v8023_v13  ;;  %v5422_v13 = vunpack.i.h.bf16 %v7988_v59  ;;  %v5427_v59 = vunpack.i.h.bf16 %v8014_v0 }
 0x1f2   : > { %v5492_v32 = vunpack.i.h.bf16 %v5490_v4  ;;  %v5491_v61 = vunpack.i.l.bf16 %v5490_v4  ;;  %v5432_v0 = vunpack.i.h.bf16 %v8046_v18 }
 0x1f3   : > { %v2242_v41 = vsel %vm312_vm0, %v6081_v33, %v5411_v47  ;;  %v2245_v8 = vsel %vm312_vm0, %v6082_v17, %v5417_v45  ;;  %v6086_v47 = vld [vmem:[#allocation2 + $0xa8] sm:$0xff] }
 0x1f4   : > { %v2274_v54 = vsel %vm916_vm5, %v2242_v41, %v5491_v61  ;;  %v2275_v16 = vsel %vm916_vm5, %v2243_v44, %v5492_v32  ;;  %v2277_v46 = vsel %vm916_vm5, %v2245_v8, %v5497_v20  ;;  %v2248_v4 = vsel %vm312_vm0, %v6086_v47, %v5426_v5  ;;  %v6087_v45 = vld [vmem:[#allocation2 + $0xc8] sm:$0xff]  ;;  %v8145_v5 = vld [vmem:[#allocation3 + $0x8] sm:$0xff] }
 0x1f5   : > { %v2304_v37 = vpack.c.bf16 %v2275_v16, %v2274_v54  ;;  %v5431_v41 = vunpack.i.l.bf16 %v8046_v18  ;;  %v5510_v54 = vpop.permute.xlu2 %5509  ;;  %v1709_v18 = vpop.f32.mrf.mxu1 }
 0x1f6   : > { %v5512_v16 = vunpack.i.h.bf16 %v5510_v54 }
 0x1f7   : > { %v2250_v20 = vsel %vm312_vm0, %v6088_v14, %v5431_v41 }
 0x1f9   : > { %4940 = vmatmul.msk.bf16.gmra.mxu0 %vm1503_vm6, %v1486_v63  ;;  %v5505_v27 = vpop.permute.xlu1 %5504 }
 0x1fa   : > { %v5507_v26 = vunpack.i.h.bf16 %v5505_v27  ;;  %v5506_v48 = vunpack.i.l.bf16 %v5505_v27  ;;  %v2637_v27 = vld [vmem:[#allocation3 + $0x10] sm:$0x3] }
 0x1fb   : > { %v2734_v47 = vrot.slane %v2637_v27, 1 }
 0x1fc   : > { %v2280_v32 = vsel %vm916_vm5, %v2248_v4, %v5506_v48  ;;  %v5441_v4 = vunpack.i.l.bf16 %v8031_v56 }
 0x201   : > { %4948 = vmatmul.msk.bf16.gmra.mxu2 %vm1503_vm6, %v1494_v58  ;;  %v6083_v58 = vld [vmem:[#allocation2 + $0x78] sm:$0xff] }
 0x202   : > { %v2244_v21 = vsel %vm312_vm0, %v6083_v58, %v5416_v62  ;;  %v2251_v62 = vsel %vm312_vm0, %v6087_v45, %v5432_v0  ;;  %v2910_v0 = vrot.slane %v2637_v27, 2  ;;  %v5446_v27 = vunpack.i.l.bf16 %v8051_v31 }
 0x203   : > { %v2276_v22 = vsel %vm916_vm5, %v2244_v21, %v5496_v15  ;;  %v2283_v15 = vsel %vm916_vm5, %v2251_v62, %v5512_v16 }
 0x204   : > { %v2305_v60 = vpack.c.bf16 %v2277_v46, %v2276_v22  ;;  %v5437_v46 = vunpack.i.h.bf16 %v8005_v9 }
 0x206   : > { %v8062_v40 = vpop.f32.mrf.mxu2  ;;  %v1564_v21 = vpop.f32.mrf.mxu0 }
 0x20e   : > { %v8070_v30 = vpop.f32.mrf.mxu2 }
 0x211   : > { %4975 = vmatmul.msk.bf16.vlgmr.msrb.gmra.mxu2 %vm1503_vm6, %v2302_v23  ;;  %v2247_v23 = vsel %vm312_vm0, %v10155_v10, %v5422_v13  ;;  %v5515_v13 = vpop.permute.xlu0 %5514  ;;  %v6089_v10 = vld [vmem:[#allocation2 + $0xd8] sm:$0xff] }
 0x212   : > { %v2279_v51 = vsel %vm916_vm5, %v2247_v23, %v5502_v29  ;;  %v5517_v11 = vunpack.i.h.bf16 %v5515_v13  ;;  %v5516_v24 = vunpack.i.l.bf16 %v5515_v13  ;;  %v10156_v29 = vld [vmem:[#allocation72_spill] sm:$0xff] }
 0x213   : > { %v2306_v55 = vpack.c.bf16 %v2279_v51, %v2278_v35  ;;  %v2253_v28 = vsel %vm312_vm0, %v10156_v29, %v5437_v46  ;;  %v1566_v51 = vpop.f32.mrf.mxu0  ;;  %v6091_v46 = vld [vmem:[#allocation2 + $0xf0] sm:$0xff] }
 0x214   : > { %v2285_v39 = vsel %vm916_vm5, %v2253_v28, %v5517_v11 }
 0x21b   : > { %v1569_v41 = vpop.f32.mrf.mxu0 }
 0x221   : > { %4976 = vmatmul.msk.bf16.gmra.mxu2 %vm1503_vm6, %v2303_v1  ;;  %v6085_v1 = vld [vmem:[#allocation2 + $0xb0] sm:$0xff] }
 0x222   : > { %v2249_v38 = vsel %vm312_vm0, %v6085_v1, %v5427_v59 }
 0x223   : > { %v2281_v61 = vsel %vm916_vm5, %v2249_v38, %v5507_v26  ;;  %v5442_v26 = vunpack.i.h.bf16 %v8031_v56  ;;  %v2732_v38 = vrot.slane %v8145_v5, 1  ;;  %v1571_v28 = vpop.f32.mrf.mxu0 }
 0x224   : > { %v8075_v34 = vpop.f32.mrf.mxu2  ;;  %v2307_v44 = vpack.c.bf16 %v2281_v61, %v2280_v32  ;;  %v5520_v32 = vpop.permute.xlu1 %5519 }
 0x225   : > { %v2735_v16 = vsel %vm530_vm3, %v2732_v38, %v2734_v47 }
 0x22c   : > { %v8081_v42 = vpop.f32.mrf.mxu2 }
 0x231   : > { %4977 = vmatmul.msk.bf16.gmra.mxu2 %vm1503_vm6, %v2304_v37  ;;  %v5511_v37 = vunpack.i.l.bf16 %v5510_v54 }
 0x233   : > { %v2282_v17 = vsel %vm916_vm5, %v2250_v20, %v5511_v37  ;;  %v5522_v20 = vunpack.i.h.bf16 %v5520_v32 }
 0x234   : > { %v8086_v63 = vpop.f32.mrf.mxu2  ;;  %v2308_v58 = vpack.c.bf16 %v2283_v15, %v2282_v17  ;;  %v5521_v15 = vunpack.i.l.bf16 %v5520_v32  ;;  %v6090_v17 = vld [vmem:[#allocation2 + $0xf8] sm:$0xff] }
 0x23c   : > { %v8092_v53 = vpop.f32.mrf.mxu2 }
 0x241   : > { %4978 = vmatmul.msk.bf16.gmra.mxu2 %vm1503_vm6, %v2305_v60  ;;  %v5436_v60 = vunpack.i.l.bf16 %v8005_v9  ;;  %v8143_v9 = vld [vmem:[#allocation3] sm:$0xff] }
 0x242   : > { %v2731_v1 = vrot.slane %v8143_v9, 1  ;;  %v2907_v61 = vrot.slane %v8143_v9, 2 }
 0x243   : > { %v2252_v23 = vsel %vm312_vm0, %v6089_v10, %v5436_v60  ;;  %v2254_v60 = vsel %vm312_vm0, %v6091_v46, %v5441_v4  ;;  %v6092_v4 = vld [vmem:[#allocation2 + $0x110] sm:$0xff]  ;;  %v5452_v46 = vunpack.i.h.bf16 %v8020_v12 }
 0x244   : > { %v8097_v43 = vpop.f32.mrf.mxu2  ;;  %v2284_v7 = vsel %vm916_vm5, %v2252_v23, %v5516_v24  ;;  %v2733_v54 = vsel %vm530_vm3, %v2731_v1, %v2732_v38  ;;  %v2286_v13 = vsel %vm916_vm5, %v2254_v60, %v5521_v15  ;;  %v1710_v23 = vadd.f32 %v1709_v18, %v1564_v21  ;;  %v8178_v38 = vld [vmem:[%s9839_s4] ss:$0 sm:$0xff]  ;;  %v5530_v60 = vpop.permute.xlu0 %5529 }
 0x245   : > { %v2309_v59 = vpack.c.bf16 %v2285_v39, %v2284_v7  ;;  %v5558_v45 = vpack.i.bf16 %v2735_v16, %v2733_v54  ;;  %v8171_v39 = vld [vmem:[%s9838_s3] ss:$0 sm:$0xff] }
 0x247   : > { %5559 = vrot.lane.b32.xlu0 %v5558_v45, %s6148_s26 }
 0x24c   : > { %v8106_v57 = vpop.f32.mrf.mxu2 }
 0x251   : > { %4979 = vmatmul.msk.bf16.gmra.mxu2 %vm1503_vm6, %v2306_v55  ;;  %v1711_v55 = vpop.f32.mrf.mxu1 }
 0x252   : > { %v1712_v16 = vadd.f32 %v1711_v55, %v1566_v51 }
 0x254   : > { %v8109_v19 = vpop.f32.mrf.mxu2 }
 0x259   : > { %v1714_v37 = vpop.f32.mrf.mxu1 }
 0x25a   : > { %v1715_v51 = vadd.f32 %v1714_v37, %v1569_v41 }
 0x25c   : > { %v8117_v2 = vpop.f32.mrf.mxu2 }
 0x261   : > { %4980 = vmatmul.msk.bf16.gmra.mxu2 %vm1503_vm6, %v2307_v44  ;;  %v2908_v44 = vrot.slane %v8145_v5, 2  ;;  %v1716_v10 = vpop.f32.mrf.mxu1 }
 0x263   : > { %v2909_v62 = vsel %vm707_vm4, %v2907_v61, %v2908_v44  ;;  %v2911_v14 = vsel %vm707_vm4, %v2908_v44, %v2910_v0  ;;  %v6093_v61 = vld [vmem:[#allocation2 + $0x108] sm:$0xff] }
 0x264   : > { %v8120_v33 = vpop.f32.mrf.mxu2  ;;  %v5563_v56 = vpack.i.bf16 %v2911_v14, %v2909_v62  ;;  %v2256_v44 = vsel %vm312_vm0, %v6093_v61, %v5446_v27  ;;  %v6094_v27 = vld [vmem:[#allocation2 + $0x128] sm:$0xff] }
 0x266   : > { %5564 = vrot.lane.b32.xlu1 %v5563_v56, %s6149_s8 }
 0x269   : > { %v8186_v54 = vpop.f32.mrf.mxu1 }
 0x26c   : > { %v8128_v8 = vpop.f32.mrf.mxu2 }
 0x271   : > { %4981 = vmatmul.msk.bf16.gmra.mxu2 %vm1503_vm6, %v2308_v58  ;;  %v2255_v58 = vsel %vm312_vm0, %v6090_v17, %v5442_v26  ;;  %v5525_v26 = vpop.permute.xlu2 %5524 }
 0x272   : > { %v2287_v11 = vsel %vm916_vm5, %v2255_v58, %v5522_v20  ;;  %v5527_v21 = vunpack.i.h.bf16 %v5525_v26  ;;  %v5526_v18 = vunpack.i.l.bf16 %v5525_v26  ;;  %v2259_v26 = vsel %vm312_vm0, %v6094_v27, %v5452_v46 }
 0x273   : > { %v2310_v29 = vpack.c.bf16 %v2287_v11, %v2286_v13  ;;  %v5451_v13 = vunpack.i.l.bf16 %v8020_v12 }
 0x274   : > { %v8131_v22 = vpop.f32.mrf.mxu2  ;;  %v2288_v14 = vsel %vm916_vm5, %v2256_v44, %v5526_v18 }
 0x27c   : > { %v8140_v35 = vpop.f32.mrf.mxu2 }
 0x281   : > { %4982 = vmatmul.msk.bf16.gmra.mxu2 %vm1503_vm6, %v2309_v59  ;;  %v5447_v59 = vunpack.i.h.bf16 %v8051_v31  ;;  %v8184_v31 = vpop.f32.mrf.mxu0 }
 0x283   : > { %v2257_v32 = vsel %vm312_vm0, %v6092_v4, %v5447_v59  ;;  %v5532_v59 = vunpack.i.h.bf16 %v5530_v60 }
 0x284   : > { %v8148_v48 = vpop.f32.mrf.mxu2  ;;  %v2289_v62 = vsel %vm916_vm5, %v2257_v32, %v5527_v21  ;;  %v6095_v21 = vld [vmem:[#allocation2 + $0x120] sm:$0xff]  ;;  %v1717_v32 = vadd.f32 %v1716_v10, %v1571_v28 }
 0x285   : > { %v2311_v56 = vpack.c.bf16 %v2289_v62, %v2288_v14  ;;  %v2258_v41 = vsel %vm312_vm0, %v6095_v21, %v5451_v13  ;;  %v2291_v18 = vsel %vm916_vm5, %v2259_v26, %v5532_v59  ;;  %v1720_v21 = vadd.f32 %v8186_v54, %v8184_v31  ;;  %v6097_v54 = vld [vmem:[#allocation2 + $0x138] sm:$0xff] }
 0x289   : > { %v8196_v11 = vpop.f32.mrf.mxu0 }
 0x28c   : > { %v8165_v24 = vpop.f32.mrf.mxu2 }
 0x291   : > { %4983 = vmatmul.msk.bf16.gmra.mxu2 %vm1503_vm6, %v2310_v29 }
 0x294   : > { %v2386_v7 = vpop.f32.mrf.mxu2 }
 0x295   : > { %v2466_v1 = vadd.f32 %v2386_v7, %v1710_v23  ;;  %v8198_v23 = vpop.f32.mrf.mxu1 }
 0x297   : > { %v2502_v47 = vmul.f32 %v8171_v39, %v2466_v1  ;;  %v5531_v1 = vunpack.i.l.bf16 %v5530_v60 }
 0x299   : > { %v2538_v0 = vadd.f32 %v8178_v38, %v2502_v47  ;;  %v2290_v4 = vsel %vm916_vm5, %v2258_v41, %v5531_v1 }
 0x29a   : > { %v2312_v10 = vpack.c.bf16 %v2291_v18, %v2290_v4  ;;  %v5456_v18 = vunpack.i.l.bf16 %v8048_v49  ;;  %v5535_v4 = vpop.permute.xlu1 %5534 }
 0x29b   : > { %v2570_v45 = vmax.f32 %v2538_v0, 0.0 }
 0x29c   : > { %v2388_v20 = vpop.f32.mrf.mxu2 }
 0x29d   : > { %2603 = vst.msk [vmem:[#allocation3 + $0x19] sm:$0xff] %vm312_vm0, %v2570_v45  ;;  %v2467_v15 = vadd.f32 %v2388_v20, %v1712_v16  ;;  %v8221_v60 = vpop.f32.mrf.mxu1 }
 0x29f   : > { %v2503_v17 = vmul.f32 %v8171_v39, %v2467_v15 }
 0x2a1   : > { %v2539_v58 = vadd.f32 %v8178_v38, %v2503_v17  ;;  %4984 = vmatmul.msk.bf16.gmra.mxu2 %vm1503_vm6, %v2311_v56  ;;  %v8219_v17 = vpop.f32.mrf.mxu0 }
 0x2a3   : > { %v2571_v55 = vmax.f32 %v2539_v58, 0.0 }
 0x2a4   : > { %v2391_v29 = vpop.f32.mrf.mxu2  ;;  %v8204_v37 = vld [vmem:[#allocation3 + $0x18] sm:$0xff] }
 0x2a5   : > { %2604 = vst.msk [vmem:[#allocation3 + $0x21] sm:$0xff] %vm312_vm0, %v2571_v55  ;;  %v2468_v7 = vadd.f32 %v2391_v29, %v1715_v51  ;;  %v3261_v44 = vrot.slane %v8204_v37, 1  ;;  %v2912_v14 = vrot.slane %v8204_v37, 2 }
 0x2a7   : > { %v2504_v47 = vmul.f32 %v8171_v39, %v2468_v7 }
 0x2a9   : > { %v2540_v12 = vadd.f32 %v8178_v38, %v2504_v47 }
 0x2ab   : > { %v2572_v61 = vmax.f32 %v2540_v12, 0.0  ;;  %v5457_v12 = vunpack.i.h.bf16 %v8048_v49 }
 0x2ac   : > { %v2393_v0 = vpop.f32.mrf.mxu2  ;;  %v8210_v16 = vld [vmem:[#allocation3 + $0x20] sm:$0xff]  ;;  %v8212_v45 = vld [vmem:[#allocation3 + $0x28] sm:$0x3] }
 0x2ad   : > { %v2640_v62 = vld [vmem:[#allocation3 + $0x28] sm:$0x3]  ;;  %2605 = vst.msk [vmem:[#allocation3 + $0x31] sm:$0xff] %vm312_vm0, %v2572_v61  ;;  %v2469_v20 = vadd.f32 %v2393_v0, %v1717_v32  ;;  %v3262_v15 = vrot.slane %v8210_v16, 1  ;;  %v3264_v56 = vrot.slane %v8212_v45, 1  ;;  %v2913_v28 = vrot.slane %v8210_v16, 2 }
 0x2ae   : > { %v2915_v58 = vrot.slane %v2640_v62, 2  ;;  %v2739_v46 = vrot.slane %v2640_v62, 1  ;;  %v5536_v0 = vunpack.i.l.bf16 %v5535_v4 }
 0x2af   : > { %v2505_v51 = vmul.f32 %v8171_v39, %v2469_v20  ;;  %v3263_v55 = vsel %vm530_vm3, %v3261_v44, %v3262_v15  ;;  %v3265_v13 = vsel %vm530_vm3, %v3262_v15, %v3264_v56  ;;  %v8227_v29 = vsel %vm707_vm4, %v2912_v14, %v2913_v28  ;;  %v6096_v14 = vld [vmem:[#allocation2 + $0x140] sm:$0xff]  ;;  %v8247_v56 = vpop.f32.mrf.mxu1 }
 0x2b0   : > { %v5578_v7 = vpack.i.bf16 %v3265_v13, %v3263_v55  ;;  %v2916_v59 = vsel %vm707_vm4, %v2913_v28, %v2915_v58  ;;  %v2740_v27 = vsel %vm530_vm3, %v3262_v15, %v2739_v46  ;;  %v5537_v44 = vunpack.i.h.bf16 %v5535_v4  ;;  %v8245_v15 = vpop.f32.mrf.mxu0 }
 0x2b1   : > { %v2541_v26 = vadd.f32 %v8178_v38, %v2505_v51  ;;  %4985 = vmatmul.msk.bf16.gmra.mxu2 %vm1503_vm6, %v2312_v10  ;;  %v5573_v1 = vpack.i.bf16 %v2916_v59, %v8227_v29  ;;  %v5568_v47 = vpack.i.bf16 %v2740_v27, %v3263_v55  ;;  %v2261_v31 = vsel %vm312_vm0, %v6096_v14, %v5457_v12 }
 0x2b2   : > { %5579 = vrot.lane.b32.xlu0 %v5578_v7, %s6148_s26  ;;  %v2260_v20 = vsel %vm312_vm0, %v6097_v54, %v5456_v18  ;;  %v3440_v58 = vrot.slane %v8212_v45, 2  ;;  %v2293_v51 = vsel %vm916_vm5, %v2261_v31, %v5537_v44  ;;  %v1722_v55 = vadd.f32 %v8198_v23, %v8196_v11 }
 0x2b3   : > { %v2573_v41 = vmax.f32 %v2541_v26, 0.0  ;;  %5574 = vrot.lane.b32.xlu2 %v5573_v1, %s6149_s8  ;;  %5569 = vrot.lane.b32.xlu1 %v5568_v47, %s6148_s26  ;;  %v2292_v46 = vsel %vm916_vm5, %v2260_v20, %v5536_v0 }
 0x2b4   : > { %v2396_v32 = vpop.f32.mrf.mxu2  ;;  %v8250_v10 = vld [vmem:[#allocation3 + $0x30] sm:$0xff]  ;;  %v2313_v12 = vpack.c.bf16 %v2293_v51, %v2292_v46  ;;  %v3441_v11 = vsel %vm707_vm4, %v2913_v28, %v3440_v58 }
 0x2b5   : > { %2606 = vst.msk [vmem:[#allocation3 + $0x39] sm:$0xff] %vm312_vm0, %v2573_v41  ;;  %v2470_v61 = vadd.f32 %v2396_v32, %v1720_v21  ;;  %v4259_v27 = vrot.slane %v8250_v10, 2  ;;  %v2741_v1 = vrot.slane %v8250_v10, 1 }
 0x2b7   : > { %v2506_v62 = vmul.f32 %v8171_v39, %v2470_v61  ;;  %v8283_v51 = vpop.f32.mrf.mxu1 }
 0x2b8   : > { %v8279_v58 = vpop.f32.mrf.mxu0 }
 0x2b9   : > { %v2542_v49 = vadd.f32 %v8178_v38, %v2506_v62 }
 0x2bb   : > { %v2574_v13 = vmax.f32 %v2542_v49, 0.0 }
 0x2bc   : > { %v2398_v7 = vpop.f32.mrf.mxu2  ;;  %v8257_v59 = vld [vmem:[#allocation3 + $0x38] sm:$0xff]  ;;  %v2643_v26 = vld [vmem:[#allocation3 + $0x40] sm:$0x3] }
 0x2bd   : > { %2607 = vst.msk [vmem:[#allocation3 + $0x49] sm:$0xff] %vm312_vm0, %v2574_v13  ;;  %v2471_v47 = vadd.f32 %v2398_v7, %v1722_v55  ;;  %v8263_v45 = vrot.slane %v8257_v59, 2  ;;  %v2920_v21 = vrot.slane %v2643_v26, 2  ;;  %v2742_v41 = vrot.slane %v8257_v59, 1  ;;  %v8267_v18 = vld [vmem:[#allocation3 + $0x40] sm:$0x3] }
 0x2be   : > { %v2744_v23 = vrot.slane %v2643_v26, 1  ;;  %v3989_v4 = vld [vmem:[#allocation3 + $0x40] sm:$0x3]  ;;  %v3269_v20 = vrot.slane %v8267_v18, 1  ;;  %v1725_v55 = vadd.f32 %v8221_v60, %v8219_v17  ;;  %v5462_v7 = vunpack.i.h.bf16 %v8059_v6  ;;  %v5540_v26 = vpop.permute.xlu2 %5539 }
 0x2bf   : > { %v2507_v32 = vmul.f32 %v8171_v39, %v2471_v47  ;;  %v4261_v61 = vsel %vm707_vm4, %v4259_v27, %v8263_v45  ;;  %v2921_v44 = vsel %vm707_vm4, %v8263_v45, %v2920_v21  ;;  %v2743_v0 = vsel %vm530_vm3, %v2741_v1, %v2742_v41 }
 0x2c0   : > { %v5593_v62 = vpack.i.bf16 %v4261_v61, %v3441_v11  ;;  %v5588_v14 = vpack.i.bf16 %v2921_v44, %v4261_v61  ;;  %v2745_v31 = vsel %vm530_vm3, %v2742_v41, %v2744_v23  ;;  %v4262_v49 = vrot.slane %v3989_v4, 2 }
 0x2c1   : > { %v2543_v28 = vadd.f32 %v8178_v38, %v2507_v32  ;;  %4986 = vmatmul.msk.bf16.gmra.mxu2 %vm1503_vm6, %v2313_v12  ;;  %v5583_v54 = vpack.i.bf16 %v2745_v31, %v2743_v0  ;;  %v4086_v46 = vrot.slane %v3989_v4, 1  ;;  %v5461_v27 = vunpack.i.l.bf16 %v8059_v6  ;;  %v6098_v4 = vld [vmem:[#allocation2 + $0x158] sm:$0xff]  ;;  %v6099_v6 = vld [vmem:[#allocation2 + $0x150] sm:$0xff] }
 0x2c2   : > { %5594 = vrot.lane.b32.xlu1 %v5593_v62, %s6149_s8  ;;  %5589 = vrot.lane.b32.xlu0 %v5588_v14, %s6149_s8  ;;  %v3270_v21 = vsel %vm530_vm3, %v2742_v41, %v3269_v20  ;;  %v4263_v12 = vsel %vm707_vm4, %v8263_v45, %v4262_v49  ;;  %v5542_v17 = vunpack.i.h.bf16 %v5540_v26  ;;  %v5541_v60 = vunpack.i.l.bf16 %v5540_v26 }
 0x2c3   : > { %v2575_v13 = vmax.f32 %v2543_v28, 0.0  ;;  %5584 = vrot.lane.b32.xlu2 %v5583_v54, %s6148_s26  ;;  %v4087_v11 = vsel %vm530_vm3, %v2742_v41, %v4086_v46  ;;  %v2263_v32 = vsel %vm312_vm0, %v6098_v4, %v5462_v7  ;;  %v2262_v44 = vsel %vm312_vm0, %v6099_v6, %v5461_v27 }
 0x2c4   : > { %v2401_v1 = vpop.f32.mrf.mxu2  ;;  %v5608_v62 = vpack.i.bf16 %v3270_v21, %v2743_v0  ;;  %v5603_v14 = vpack.i.bf16 %v4261_v61, %v4263_v12  ;;  %v5598_v28 = vpack.i.bf16 %v4087_v11, %v2743_v0  ;;  %v2644_v54 = vld [vmem:[#allocation3 + $0x48] sm:$0xff]  ;;  %v3445_v41 = vrot.slane %v8267_v18, 2  ;;  %v8307_v61 = vpop.f32.mrf.mxu0 }
 0x2c5   : > { %2608 = vst.msk [vmem:[#allocation3 + $0x51] sm:$0xff] %vm312_vm0, %v2575_v13  ;;  %v2472_v47 = vadd.f32 %v2401_v1, %v1725_v55  ;;  %v2295_v20 = vsel %vm916_vm5, %v2263_v32, %v5542_v17  ;;  %v2294_v49 = vsel %vm916_vm5, %v2262_v44, %v5541_v60  ;;  %v1727_v46 = vadd.f32 %v8247_v56, %v8245_v15  ;;  %v1731_v12 = vpop.f32.mrf.mxu1 }
 0x2c6   : > { %v2922_v27 = vrot.slane %v2644_v54, 2  ;;  %v2746_v26 = vrot.slane %v2644_v54, 1  ;;  %v2314_v11 = vpack.c.bf16 %v2295_v20, %v2294_v49  ;;  %v3446_v56 = vsel %vm707_vm4, %v8263_v45, %v3445_v41 }
 0x2c7   : > { %v2508_v23 = vmul.f32 %v8171_v39, %v2472_v47  ;;  %v1730_v20 = vadd.f32 %v8283_v51, %v8279_v58  ;;  %v4995_v58 = vld [vmem:[%s9837_s2 + $0x8] sm:$0xf] }
 0x2c9   : > { %v2544_v31 = vadd.f32 %v8178_v38, %v2508_v23 }
 0x2ca   : > { %5609 = vrot.lane.b32.xlu1 %v5608_v62, %s6148_s26  ;;  %5604 = vrot.lane.b32.xlu0 %v5603_v14, %s6149_s8 }
 0x2cb   : > { %v2576_v55 = vmax.f32 %v2544_v31, 0.0  ;;  %5599 = vrot.lane.b32.xlu2 %v5598_v28, %s6148_s26 }
 0x2cc   : > { %v2403_v0 = vpop.f32.mrf.mxu2  ;;  %v2645_v13 = vld [vmem:[#allocation3 + $0x50] sm:$0xff]  ;;  %v2646_v7 = vld [vmem:[#allocation3 + $0x58] sm:$0x3]  ;;  %v8339_v51 = vpop.f32.mrf.mxu0 }
 0x2cd   : > { %2609 = vst.msk [vmem:[#allocation3 + $0x61] sm:$0xff] %vm312_vm0, %v2576_v55  ;;  %v2473_v18 = vadd.f32 %v2403_v0, %v1727_v46  ;;  %v8310_v1 = vrot.slane %v2645_v13, 2  ;;  %v2925_v47 = vrot.slane %v2646_v7, 2  ;;  %v2747_v21 = vrot.slane %v2645_v13, 1  ;;  %v3992_v17 = vld [vmem:[#allocation3 + $0x58] sm:$0x3]  ;;  %v5545_v0 = vpop.permute.xlu0 %5544 }
 0x2ce   : > { %v2749_v15 = vrot.slane %v2646_v7, 1  ;;  %v8320_v6 = vld [vmem:[#allocation3 + $0x58] sm:$0x3]  ;;  %v4267_v28 = vrot.slane %v3992_v17, 2  ;;  %v4091_v54 = vrot.slane %v3992_v17, 1  ;;  %v5467_v46 = vunpack.i.h.bf16 %v8042_v50  ;;  %v6100_v17 = vld [vmem:[#allocation2 + $0x170] sm:$0xff] }
 0x2cf   : > { %v2509_v60 = vmul.f32 %v8171_v39, %v2473_v18  ;;  %v2924_v23 = vsel %vm707_vm4, %v2922_v27, %v8310_v1  ;;  %v2926_v4 = vsel %vm707_vm4, %v8310_v1, %v2925_v47  ;;  %v2748_v32 = vsel %vm530_vm3, %v2746_v26, %v2747_v21 }
 0x2d0   : > { %v5618_v44 = vpack.i.bf16 %v2926_v4, %v2924_v23  ;;  %v2750_v62 = vsel %vm530_vm3, %v2747_v21, %v2749_v15  ;;  %v5623_v14 = vpack.i.bf16 %v2924_v23, %v3446_v56  ;;  %v3274_v41 = vrot.slane %v8320_v6, 1  ;;  %v6101_v4 = vld [vmem:[#allocation2 + $0x168] sm:$0xff] }
 0x2d1   : > { %v2545_v31 = vadd.f32 %v8178_v38, %v2509_v60  ;;  %4987 = vmatmul.msk.bf16.gmra.mxu2 %vm1503_vm6, %v2314_v11  ;;  %v5613_v45 = vpack.i.bf16 %v2750_v62, %v2748_v32  ;;  %v5466_v55 = vunpack.i.l.bf16 %v8042_v50  ;;  %v4268_v27 = vsel %vm707_vm4, %v8310_v1, %v4267_v28  ;;  %v5063_v50 = vld [vmem:[%s9837_s2 + $0x8] sm:$0x30]  ;;  %v1734_v62 = vpop.f32.mrf.mxu1 }
 0x2d2   : > { %5619 = vrot.lane.b32.xlu1 %v5618_v44, %s6149_s8  ;;  %v4092_v26 = vsel %vm530_vm3, %v2747_v21, %v4091_v54  ;;  %v3275_v18 = vsel %vm530_vm3, %v2747_v21, %v3274_v41  ;;  %v5547_v47 = vunpack.i.h.bf16 %v5545_v0  ;;  %v5546_v11 = vunpack.i.l.bf16 %v5545_v0 }
 0x2d3   : > { %v2577_v49 = vmax.f32 %v2545_v31, 0.0  ;;  %5614 = vrot.lane.b32.xlu0 %v5613_v45, %s6148_s26  ;;  %5624 = vrot.lane.b32.xlu2 %v5623_v14, %s6149_s8  ;;  %v4996_v56 = vor.u32 %v5063_v50, %v4995_v58  ;;  %v2265_v60 = vsel %vm312_vm0, %v6100_v17, %v5467_v46  ;;  %v2264_v44 = vsel %vm312_vm0, %v6101_v4, %v5466_v55 }
 0x2d4   : > { %v2406_v13 = vpop.f32.mrf.mxu2  ;;  %v5633_v14 = vpack.i.bf16 %v2924_v23, %v4268_v27  ;;  %v5628_v21 = vpack.i.bf16 %v4092_v26, %v2748_v32  ;;  %v5638_v45 = vpack.i.bf16 %v3275_v18, %v2748_v32  ;;  %v2647_v28 = vld [vmem:[#allocation3 + $0x60] sm:$0xff]  ;;  %v3450_v41 = vrot.slane %v8320_v6, 2  ;;  %v1591_v4 = vpop.f32.mrf.mxu0 }
 0x2d5   : > { %2610 = vst.msk [vmem:[#allocation3 + $0x69] sm:$0xff] %vm312_vm0, %v2577_v49  ;;  %v2474_v7 = vadd.f32 %v2406_v13, %v1730_v20  ;;  %v3750_v54 = vsel %vm707_vm4, %v4996_v56, 0  ;;  %v2297_v20 = vsel %vm916_vm5, %v2265_v60, %v5547_v47  ;;  %v2296_v49 = vsel %vm916_vm5, %v2264_v44, %v5546_v11  ;;  %v5015_v60 = vld [vmem:[%s9837_s2] sm:$0xf] }
 0x2d6   : > { %3759 = vmatpush.bf16.msrb.mxu3 %v3750_v54  ;;  %v1732_v46 = vadd.f32 %v1731_v12, %v8307_v61  ;;  %v2751_v13 = vrot.slane %v2647_v28, 1  ;;  %v2315_v18 = vpack.c.bf16 %v2297_v20, %v2296_v49  ;;  %v3451_v61 = vsel %vm707_vm4, %v8310_v1, %v3450_v41  ;;  %v5062_v1 = vld [vmem:[%s9837_s2] sm:$0x30] }
 0x2d7   : > { %v2510_v15 = vmul.f32 %v8171_v39, %v2474_v7  ;;  %v4269_v7 = vrot.slane %v2647_v28, 2 }
 0x2d9   : > { %v2546_v31 = vadd.f32 %v8178_v38, %v2510_v15  ;;  %v1736_v20 = vpop.f32.mrf.mxu1 }
 0x2da   : > { %5634 = vrot.lane.b32.xlu1 %v5633_v14, %s6149_s8 }
 0x2db   : > { %v2578_v55 = vmax.f32 %v2546_v31, 0.0  ;;  %5629 = vrot.lane.b32.xlu0 %v5628_v21, %s6148_s26  ;;  %5639 = vrot.lane.b32.xlu2 %v5638_v45, %s6148_s26  ;;  %v5037_v21 = vld [vmem:[%s9837_s2 + $0x10] sm:$0xf]  ;;  %v5064_v45 = vld [vmem:[%s9837_s2 + $0x10] sm:$0x30] }
 0x2dc   : > { %v2408_v23 = vpop.f32.mrf.mxu2  ;;  %v2648_v32 = vld [vmem:[#allocation3 + $0x68] sm:$0xff]  ;;  %v2649_v0 = vld [vmem:[#allocation3 + $0x70] sm:$0x3] }
 0x2dd   : > { %2611 = vst.msk [vmem:[#allocation3 + $0x79] sm:$0xff] %vm312_vm0, %v2578_v55  ;;  %v2475_v6 = vadd.f32 %v2408_v23, %v1732_v46  ;;  %v2752_v27 = vrot.slane %v2648_v32, 1  ;;  %v2754_v58 = vrot.slane %v2649_v0, 1  ;;  %v8359_v26 = vrot.slane %v2648_v32, 2  ;;  %v3995_v50 = vld [vmem:[#allocation3 + $0x70] sm:$0x3] }
 0x2de   : > { %v2930_v12 = vrot.slane %v2649_v0, 2  ;;  %v8368_v17 = vld [vmem:[#allocation3 + $0x70] sm:$0x3]  ;;  %v4096_v41 = vrot.slane %v3995_v50, 1  ;;  %v4272_v46 = vrot.slane %v3995_v50, 2  ;;  %v5016_v55 = vor.u32 %v5062_v1, %v5015_v60  ;;  %v8401_v60 = vpop.f32.mrf.mxu3 }
 0x2df   : > { %v2511_v47 = vmul.f32 %v8171_v39, %v2475_v6  ;;  %v2753_v11 = vsel %vm530_vm3, %v2751_v13, %v2752_v27  ;;  %v2755_v15 = vsel %vm530_vm3, %v2752_v27, %v2754_v58  ;;  %v4271_v56 = vsel %vm707_vm4, %v4269_v7, %v8359_v26  ;;  %v5550_v6 = vpop.permute.xlu1 %5549 }
 0x2e0   : > { %v5643_v44 = vpack.i.bf16 %v2755_v15, %v2753_v11  ;;  %v5653_v14 = vpack.i.bf16 %v4271_v56, %v3451_v61  ;;  %v2931_v31 = vsel %vm707_vm4, %v8359_v26, %v2930_v12  ;;  %v3279_v49 = vrot.slane %v8368_v17, 1 }
 0x2e1   : > { %v2547_v28 = vadd.f32 %v8178_v38, %v2511_v47  ;;  %4988 = vmatmul.msk.bf16.gmra.mxu2 %vm1503_vm6, %v2315_v18  ;;  %v5648_v54 = vpack.i.bf16 %v2931_v31, %v4271_v56  ;;  %v1735_v23 = vadd.f32 %v1734_v62, %v8339_v51  ;;  %v5038_v0 = vor.u32 %v5064_v45, %v5037_v21 }
 0x2e2   : > { %5644 = vrot.lane.b32.xlu1 %v5643_v44, %s6148_s26  ;;  %v5472_v13 = vunpack.i.h.bf16 %v8055_v52  ;;  %v5471_v7 = vunpack.i.l.bf16 %v8055_v52  ;;  %v3895_v18 = vsel %vm707_vm4, %v5016_v55, 0  ;;  %v4097_v12 = vsel %vm530_vm3, %v2752_v27, %v4096_v41 }
 0x2e3   : > { %v2579_v32 = vmax.f32 %v2547_v28, 0.0  ;;  %5654 = vrot.lane.b32.xlu0 %v5653_v14, %s6149_s8  ;;  %5649 = vrot.lane.b32.xlu2 %v5648_v54, %s6149_s8  ;;  %v4572_v51 = vsel %vm707_vm4, %v5038_v0, 0  ;;  %v3280_v62 = vsel %vm530_vm3, %v2752_v27, %v3279_v49  ;;  %v4273_v50 = vsel %vm707_vm4, %v8359_v26, %v4272_v46  ;;  %v1594_v28 = vpop.f32.mrf.mxu0 }
 0x2e4   : > { %v2411_v58 = vpop.f32.mrf.mxu2  ;;  %3904 = vmatpush.bf16.msrb.mxu0 %v3895_v18  ;;  %4581 = vmatpush.bf16.msrb.mxu1 %v4572_v51  ;;  %v5552_v47 = vunpack.i.h.bf16 %v5550_v6  ;;  %v5551_v52 = vunpack.i.l.bf16 %v5550_v6  ;;  %v2267_v1 = vsel %vm312_vm0, %v8034_v3, %v5472_v13  ;;  %v2266_v44 = vsel %vm312_vm0, %v8038_v25, %v5471_v7  ;;  %v3996_v45 = vld [vmem:[#allocation3 + $0x78] sm:$0xff]  ;;  %v1739_v25 = vpop.f32.mrf.mxu1 }
 0x2e5   : > { %2612 = vst.msk [vmem:[#allocation3 + $0x81] sm:$0xff] %vm312_vm0, %v2579_v32  ;;  %v2476_v61 = vadd.f32 %v2411_v58, %v1735_v23  ;;  %v5658_v14 = vpack.i.bf16 %v4097_v12, %v2753_v11  ;;  %v5668_v27 = vpack.i.bf16 %v3280_v62, %v2753_v11  ;;  %v5663_v21 = vpack.i.bf16 %v4271_v56, %v4273_v50 }
 0x2e6   : > { %v3455_v54 = vrot.slane %v8368_v17, 2  ;;  %v2298_v41 = vsel %vm916_vm5, %v2266_v44, %v5551_v52  ;;  %v2299_v49 = vsel %vm916_vm5, %v2267_v1, %v5552_v47  ;;  %v1737_v46 = vadd.f32 %v1736_v20, %v1591_v4 }
 0x2e7   : > { %v2512_v15 = vmul.f32 %v8171_v39, %v2476_v61  ;;  %v4274_v56 = vrot.slane %v3996_v45, 2  ;;  %v2756_v32 = vrot.slane %v3996_v45, 1  ;;  %v2316_v6 = vpack.c.bf16 %v2299_v49, %v2298_v41 }
 0x2e8   : > { %v3456_v4 = vsel %vm707_vm4, %v8359_v26, %v3455_v54  ;;  %v5477_v26 = vunpack.i.h.bf16 %v8068_v36  ;;  %v1740_v54 = vadd.f32 %v1739_v25, %v1594_v28 }
 0x2e9   : > { %v2548_v31 = vadd.f32 %v8178_v38, %v2512_v15  ;;  %v5555_v15 = vpop.permute.xlu2 %5554 }
 0x2ea   : > { %5659 = vrot.lane.b32.xlu1 %v5658_v14, %s6148_s26  ;;  %v5557_v49 = vunpack.i.h.bf16 %v5555_v15 }
 0x2eb   : > { %v2580_v3 = vmax.f32 %v2548_v31, 0.0  ;;  %5669 = vrot.lane.b32.xlu0 %v5668_v27, %s6148_s26  ;;  %5664 = vrot.lane.b32.xlu2 %v5663_v21, %s6149_s8  ;;  %v8432_v31 = vpop.f32.mrf.mxu3  ;;  %v5476_v27 = vunpack.i.l.bf16 %v8068_v36 }
 0x2ec   : > { %v2413_v55 = vpop.f32.mrf.mxu2  ;;  %v3997_v11 = vld [vmem:[#allocation3 + $0x80] sm:$0xff]  ;;  %v2652_v23 = vld [vmem:[#allocation3 + $0x88] sm:$0x3]  ;;  %v1741_v25 = vpop.f32.mrf.mxu1 }
 0x2ed   : > { %2613 = vst.msk [vmem:[#allocation3 + $0x91] sm:$0xff] %vm312_vm0, %v2580_v3  ;;  %v2477_v0 = vadd.f32 %v2413_v55, %v1737_v46  ;;  %v8415_v17 = vrot.slane %v3997_v11, 2  ;;  %v2935_v13 = vrot.slane %v2652_v23, 2  ;;  %v2757_v7 = vrot.slane %v3997_v11, 1  ;;  %v8419_v58 = vld [vmem:[#allocation3 + $0x88] sm:$0x3]  ;;  %v1596_v46 = vpop.f32.mrf.mxu0 }
 0x2ee   : > { %v2759_v20 = vrot.slane %v2652_v23, 1  ;;  %v3998_v62 = vld [vmem:[#allocation3 + $0x88] sm:$0x3]  ;;  %v3284_v14 = vrot.slane %v8419_v58, 1  ;;  %v6102_v55 = vld [vmem:[#allocation2 + $0x1a0] sm:$0xff] }
 0x2ef   : > { %v2513_v18 = vmul.f32 %v8171_v39, %v2477_v0  ;;  %v4276_v61 = vsel %vm707_vm4, %v4274_v56, %v8415_v17  ;;  %v2936_v12 = vsel %vm707_vm4, %v8415_v17, %v2935_v13  ;;  %v2758_v51 = vsel %vm530_vm3, %v2756_v32, %v2757_v7  ;;  %v6103_v32 = vld [vmem:[#allocation2 + $0x198] sm:$0xff] }
 0x2f0   : > { %v5683_v50 = vpack.i.bf16 %v4276_v61, %v3456_v4  ;;  %v5678_v47 = vpack.i.bf16 %v2936_v12, %v4276_v61  ;;  %v2760_v52 = vsel %vm530_vm3, %v2757_v7, %v2759_v20  ;;  %v4277_v21 = vrot.slane %v3998_v62, 2 }
 0x2f1   : > { %v2549_v1 = vadd.f32 %v8178_v38, %v2513_v18  ;;  %4989 = vmatmul.msk.bf16.gmra.mxu2 %vm1503_vm6, %v2316_v6  ;;  %v5673_v44 = vpack.i.bf16 %v2760_v52, %v2758_v51  ;;  %v4101_v45 = vrot.slane %v3998_v62, 1  ;;  %v2269_v11 = vsel %vm312_vm0, %v6102_v55, %v5477_v26 }
 0x2f2   : > { %5684 = vrot.lane.b32.xlu1 %v5683_v50, %s6149_s8  ;;  %v5556_v56 = vunpack.i.l.bf16 %v5555_v15  ;;  %v3285_v23 = vsel %vm530_vm3, %v2757_v7, %v3284_v14  ;;  %v2268_v28 = vsel %vm312_vm0, %v6103_v32, %v5476_v27  ;;  %v4278_v0 = vsel %vm707_vm4, %v8415_v17, %v4277_v21 }
 0x2f3   : > { %v2581_v41 = vmax.f32 %v2549_v1, 0.0  ;;  %5679 = vrot.lane.b32.xlu0 %v5678_v47, %s6149_s8  ;;  %5674 = vrot.lane.b32.xlu2 %v5673_v44, %s6148_s26  ;;  %v4102_v13 = vsel %vm530_vm3, %v2757_v7, %v4101_v45  ;;  %v2301_v4 = vsel %vm916_vm5, %v2269_v11, %v5557_v49  ;;  %v5698_v20 = vpack.i.bf16 %v3285_v23, %v2758_v51  ;;  %v5560_v7 = vpop.permute.xlu0 %5559  ;;  %v8453_v1 = vpop.f32.mrf.mxu3 }
 0x2f4   : > { %v2416_v3 = vpop.f32.mrf.mxu2  ;;  %v2300_v18 = vsel %vm916_vm5, %v2268_v28, %v5556_v56  ;;  %v5693_v62 = vpack.i.bf16 %v4276_v61, %v4278_v0  ;;  %v5688_v50 = vpack.i.bf16 %v4102_v13, %v2758_v51  ;;  %v2653_v47 = vld [vmem:[#allocation3 + $0x90] sm:$0xff]  ;;  %v3460_v52 = vrot.slane %v8419_v58, 2  ;;  %v1744_v0 = vpop.f32.mrf.mxu1 }
 0x2f5   : > { %2614 = vst.msk [vmem:[#allocation3 + $0x99] sm:$0xff] %vm312_vm0, %v2581_v41  ;;  %v2478_v36 = vadd.f32 %v2416_v3, %v1740_v54  ;;  %v1742_v26 = vadd.f32 %v1741_v25, %v1596_v46  ;;  %v2317_v44 = vpack.c.bf16 %v2301_v4, %v2300_v18  ;;  %v2937_v61 = vrot.slane %v2653_v47, 2  ;;  %v1599_v49 = vpop.f32.mrf.mxu0 }
 0x2f6   : > { %v2761_v51 = vrot.slane %v2653_v47, 1  ;;  %v3461_v3 = vsel %vm707_vm4, %v8415_v17, %v3460_v52  ;;  %v5562_v11 = vunpack.i.h.bf16 %v5560_v7  ;;  %v5561_v56 = vunpack.i.l.bf16 %v5560_v7  ;;  %v5565_v17 = vpop.permute.xlu1 %5564 }
 0x2f7   : > { %v2514_v6 = vmul.f32 %v8171_v39, %v2478_v36  ;;  %v1745_v52 = vadd.f32 %v1744_v0, %v1599_v49  ;;  %v5567_v7 = vunpack.i.h.bf16 %v5565_v17 }
 0x2f8   : > { %v3084_v47 = vsel %vm312_vm0, %v8145_v5, %v5562_v11 }
 0x2f9   : > { %v2550_v12 = vadd.f32 %v8178_v38, %v2514_v6  ;;  %v3116_v5 = vsel %vm916_vm5, %v3084_v47, %v5567_v7 }
 0x2fa   : > { %5699 = vrot.lane.b32.xlu1 %v5698_v20, %s6148_s26 }
 0x2fb   : > { %v2582_v15 = vmax.f32 %v2550_v12, 0.0  ;;  %5694 = vrot.lane.b32.xlu0 %v5693_v62, %s6149_s8  ;;  %5689 = vrot.lane.b32.xlu2 %v5688_v50, %s6148_s26 }
 0x2fc   : > { %v2418_v14 = vpop.f32.mrf.mxu2  ;;  %v2654_v27 = vld [vmem:[#allocation3 + $0x98] sm:$0xff]  ;;  %v2655_v21 = vld [vmem:[#allocation3 + $0xa0] sm:$0x3] }
 0x2fd   : > { %2615 = vst.msk [vmem:[#allocation3 + $0xa9] sm:$0xff] %vm312_vm0, %v2582_v15  ;;  %v2479_v45 = vadd.f32 %v2418_v14, %v1742_v26  ;;  %v8456_v54 = vrot.slane %v2654_v27, 2  ;;  %v2940_v58 = vrot.slane %v2655_v21, 2  ;;  %v2762_v41 = vrot.slane %v2654_v27, 1  ;;  %v4001_v55 = vld [vmem:[#allocation3 + $0xa0] sm:$0x3] }
 0x2fe   : > { %v2764_v46 = vrot.slane %v2655_v21, 1  ;;  %v3182_v25 = vld [vmem:[#allocation3 + $0xa0] sm:$0x3]  ;;  %v4282_v12 = vrot.slane %v4001_v55, 2  ;;  %v4106_v62 = vrot.slane %v4001_v55, 1  ;;  %v3083_v15 = vsel %vm312_vm0, %v8143_v9, %v5561_v56 }
 0x2ff   : > { %v2515_v36 = vmul.f32 %v8171_v39, %v2479_v45  ;;  %v2939_v23 = vsel %vm707_vm4, %v2937_v61, %v8456_v54  ;;  %v2941_v32 = vsel %vm707_vm4, %v8456_v54, %v2940_v58  ;;  %v2763_v28 = vsel %vm530_vm3, %v2761_v51, %v2762_v41  ;;  %v8480_v61 = vpop.f32.mrf.mxu3 }
 0x300   : > { %v5708_v13 = vpack.i.bf16 %v2941_v32, %v2939_v23  ;;  %v2765_v6 = vsel %vm530_vm3, %v2762_v41, %v2764_v46  ;;  %v5713_v4 = vpack.i.bf16 %v2939_v23, %v3461_v3  ;;  %v3289_v50 = vrot.slane %v3182_v25, 1  ;;  %v1601_v46 = vpop.f32.mrf.mxu0  ;;  %v1746_v32 = vpop.f32.mrf.mxu1 }
 0x301   : > { %v2551_v20 = vadd.f32 %v8178_v38, %v2515_v36  ;;  %4990 = vmatmul.msk.bf16.gmra.mxu2 %vm1503_vm6, %v2317_v44  ;;  %v5703_v18 = vpack.i.bf16 %v2765_v6, %v2763_v28  ;;  %v5566_v14 = vunpack.i.l.bf16 %v5565_v17  ;;  %v4283_v21 = vsel %vm707_vm4, %v8456_v54, %v4282_v12 }
 0x302   : > { %5709 = vrot.lane.b32.xlu1 %v5708_v13, %s6149_s8  ;;  %v4107_v51 = vsel %vm530_vm3, %v2762_v41, %v4106_v62  ;;  %v3290_v45 = vsel %vm530_vm3, %v2762_v41, %v3289_v50  ;;  %v5723_v3 = vpack.i.bf16 %v2939_v23, %v4283_v21  ;;  %v3465_v0 = vrot.slane %v3182_v25, 2 }
 0x303   : > { %v2583_v26 = vmax.f32 %v2551_v20, 0.0  ;;  %5704 = vrot.lane.b32.xlu0 %v5703_v18, %s6148_s26  ;;  %5714 = vrot.lane.b32.xlu2 %v5713_v4, %s6149_s8  ;;  %v3115_v58 = vsel %vm916_vm5, %v3083_v15, %v5566_v14  ;;  %v5718_v11 = vpack.i.bf16 %v4107_v51, %v2763_v28  ;;  %v5728_v56 = vpack.i.bf16 %v3290_v45, %v2763_v28 }
 0x304   : > { %v2421_v44 = vpop.f32.mrf.mxu2  ;;  %v3147_v49 = vpack.c.bf16 %v3116_v5, %v3115_v58  ;;  %v2656_v36 = vld [vmem:[#allocation3 + $0xa8] sm:$0xff]  ;;  %v1747_v13 = vadd.f32 %v1746_v32, %v1601_v46  ;;  %v3466_v25 = vsel %vm707_vm4, %v8456_v54, %v3465_v0  ;;  %v1750_v58 = vadd.f32 %v8401_v60, %v8062_v40 }
 0x305   : > { %2616 = vst.msk [vmem:[#allocation3 + $0xb1] sm:$0xff] %vm312_vm0, %v2583_v26  ;;  %v2480_v27 = vadd.f32 %v2421_v44, %v1745_v52  ;;  %v2766_v17 = vrot.slane %v2656_v36, 1  ;;  %v4284_v20 = vrot.slane %v2656_v36, 2 }
 0x306   : > { %5017 = vmatmul.msk.bf16.vlgmr.msrb.gmra.mxu0 %vm1503_vm6, %v3147_v49 }
 0x307   : > { %v2516_v9 = vmul.f32 %v8171_v39, %v2480_v27  ;;  %v8504_v44 = vpop.f32.mrf.mxu3 }
 0x309   : > { %v2552_v55 = vadd.f32 %v8178_v38, %v2516_v9 }
 0x30a   : > { %5724 = vrot.lane.b32.xlu1 %v5723_v3, %s6149_s8 }
 0x30b   : > { %v2584_v41 = vmax.f32 %v2552_v55, 0.0  ;;  %5719 = vrot.lane.b32.xlu0 %v5718_v11, %s6148_s26  ;;  %5729 = vrot.lane.b32.xlu2 %v5728_v56, %s6148_s26 }
 0x30c   : > { %v2423_v6 = vpop.f32.mrf.mxu2  ;;  %v2657_v4 = vld [vmem:[#allocation3 + $0xb0] sm:$0xff]  ;;  %v8491_v23 = vld [vmem:[#allocation3 + $0xb8] sm:$0x3] }
 0x30d   : > { %2617 = vst.msk [vmem:[#allocation3 + $0xc1] sm:$0xff] %vm312_vm0, %v2584_v41  ;;  %v2481_v28 = vadd.f32 %v2423_v6, %v1747_v13  ;;  %v2767_v18 = vrot.slane %v2657_v4, 1  ;;  %v2769_v12 = vrot.slane %v8491_v23, 1  ;;  %v8495_v62 = vrot.slane %v2657_v4, 2  ;;  %v4004_v50 = vld [vmem:[#allocation3 + $0xb8] sm:$0x3]  ;;  %v8513_v46 = vpop.permute.xlu2 %5574 }
 0x30e   : > { %v3185_v7 = vld [vmem:[#allocation3 + $0xb8] sm:$0x3]  ;;  %v4111_v54 = vrot.slane %v4004_v50, 1  ;;  %v4287_v45 = vrot.slane %v4004_v50, 2  ;;  %v1752_v6 = vadd.f32 %v8432_v31, %v8070_v30 }
 0x30f   : > { %v2517_v47 = vmul.f32 %v8171_v39, %v2481_v28  ;;  %v2768_v52 = vsel %vm530_vm3, %v2766_v17, %v2767_v18  ;;  %v2770_v26 = vsel %vm530_vm3, %v2767_v18, %v2769_v12  ;;  %v4286_v15 = vsel %vm707_vm4, %v4284_v20, %v8495_v62  ;;  %v8522_v13 = vpop.f32.mrf.mxu3 }
 0x310   : > { %v5733_v14 = vpack.i.bf16 %v2770_v26, %v2768_v52  ;;  %v5743_v27 = vpack.i.bf16 %v4286_v15, %v3466_v25  ;;  %v5738_v21 = vpack.i.bf16 %v8227_v29, %v4286_v15  ;;  %v3294_v51 = vrot.slane %v3185_v7, 1 }
 0x311   : > { %v2553_v5 = vadd.f32 %v8178_v38, %v2517_v47  ;;  %v4112_v3 = vsel %vm530_vm3, %v2767_v18, %v4111_v54  ;;  %v4288_v11 = vsel %vm707_vm4, %v8495_v62, %v4287_v45  ;;  %v3470_v41 = vrot.slane %v3185_v7, 2 }
 0x312   : > { %5734 = vrot.lane.b32.xlu1 %v5733_v14, %s6148_s26  ;;  %v3295_v55 = vsel %vm530_vm3, %v2767_v18, %v3294_v51  ;;  %v5748_v60 = vpack.i.bf16 %v4112_v3, %v2768_v52  ;;  %v5753_v0 = vpack.i.bf16 %v4286_v15, %v4288_v11 }
 0x313   : > { %v2585_v9 = vmax.f32 %v2553_v5, 0.0  ;;  %5744 = vrot.lane.b32.xlu0 %v5743_v27, %s6149_s8  ;;  %5739 = vrot.lane.b32.xlu2 %v5738_v21, %s6149_s8  ;;  %v5758_v32 = vpack.i.bf16 %v3295_v55, %v2768_v52  ;;  %v3471_v26 = vsel %vm707_vm4, %v8495_v62, %v3470_v41 }
 0x314   : > { %v2426_v49 = vpop.f32.mrf.mxu2  ;;  %v4005_v56 = vld [vmem:[#allocation3 + $0xc0] sm:$0xff] }
 0x315   : > { %2618 = vst.msk [vmem:[#allocation3 + $0xc9] sm:$0xff] %vm312_vm0, %v2585_v9  ;;  %v2482_v29 = vadd.f32 %v2426_v49, %v1750_v58  ;;  %v4289_v17 = vrot.slane %v4005_v56, 2  ;;  %v2771_v25 = vrot.slane %v4005_v56, 1  ;;  %v1755_v49 = vadd.f32 %v8453_v1, %v8075_v34 }
 0x316   : > { %v5577_v34 = vunpack.i.h.bf16 %v8513_v46  ;;  %v5576_v1 = vunpack.i.l.bf16 %v8513_v46  ;;  %v8581_v46 = vld [vmem:[%s9839_s4] ss:$0 sm:$0xff] }
 0x317   : > { %v2518_v40 = vmul.f32 %v8171_v39, %v2482_v29  ;;  %v8558_v55 = vpop.f32.mrf.mxu3 }
 0x319   : > { %v2554_v36 = vadd.f32 %v8178_v38, %v2518_v40 }
 0x31a   : > { %5749 = vrot.lane.b32.xlu1 %v5748_v60, %s6148_s26 }
 0x31b   : > { %v2586_v4 = vmax.f32 %v2554_v36, 0.0  ;;  %5759 = vrot.lane.b32.xlu0 %v5758_v32, %s6148_s26  ;;  %5754 = vrot.lane.b32.xlu2 %v5753_v0, %s6149_s8  ;;  %v8570_v0 = vld [vmem:[%s9838_s3] ss:$0 sm:$0xff] }
 0x31c   : > { %v2428_v20 = vpop.f32.mrf.mxu2  ;;  %v4006_v28 = vld [vmem:[#allocation3 + $0xc8] sm:$0xff]  ;;  %v4007_v18 = vld [vmem:[#allocation3 + $0xd0] sm:$0x3] }
 0x31d   : > { %v8529_v12 = vld [vmem:[#allocation3 + $0xd0] sm:$0x3]  ;;  %2619 = vst.msk [vmem:[#allocation3 + $0xd9] sm:$0xff] %vm312_vm0, %v2586_v4  ;;  %v2483_v50 = vadd.f32 %v2428_v20, %v1752_v6  ;;  %v8532_v47 = vpop.permute.xlu2 %5584  ;;  %v8534_v52 = vrot.slane %v4006_v28, 2  ;;  %v4292_v30 = vrot.slane %v4007_v18, 2  ;;  %v2772_v31 = vrot.slane %v4006_v28, 1 }
 0x31e   : > { %v2774_v15 = vrot.slane %v8529_v12, 1  ;;  %v8539_v7 = vld [vmem:[#allocation3 + $0xd0] sm:$0x3]  ;;  %v4116_v3 = vrot.slane %v4007_v18, 1 }
 0x31f   : > { %v2519_v14 = vmul.f32 %v8171_v39, %v2483_v50  ;;  %v8544_v27 = vsel %vm707_vm4, %v4289_v17, %v8534_v52  ;;  %v4293_v21 = vsel %vm707_vm4, %v8534_v52, %v4292_v30  ;;  %v2773_v5 = vsel %vm530_vm3, %v2771_v25, %v2772_v31 }
 0x320   : > { %v5768_v54 = vpack.i.bf16 %v8544_v27, %v3471_v26  ;;  %v5778_v51 = vpack.i.bf16 %v8544_v27, %v4293_v21  ;;  %v2775_v58 = vsel %vm530_vm3, %v2772_v31, %v2774_v15  ;;  %v3299_v9 = vrot.slane %v8539_v7, 1 }
 0x321   : > { %v2555_v45 = vadd.f32 %v8178_v38, %v2519_v14  ;;  %v5763_v39 = vpack.i.bf16 %v2775_v58, %v2773_v5  ;;  %v4117_v6 = vsel %vm530_vm3, %v2772_v31, %v4116_v3  ;;  %v2945_v14 = vrot.slane %v8491_v23, 2 }
 0x322   : > { %5769 = vrot.lane.b32.xlu1 %v5768_v54, %s6149_s8  ;;  %v3300_v56 = vsel %vm530_vm3, %v2772_v31, %v3299_v9  ;;  %v5773_v30 = vpack.i.bf16 %v4117_v6, %v2773_v5  ;;  %v3475_v31 = vrot.slane %v8539_v7, 2 }
 0x323   : > { %v2587_v29 = vmax.f32 %v2555_v45, 0.0  ;;  %5779 = vrot.lane.b32.xlu0 %v5778_v51, %s6149_s8  ;;  %5764 = vrot.lane.b32.xlu2 %v5763_v39, %s6148_s26  ;;  %v5783_v20 = vpack.i.bf16 %v3300_v56, %v2773_v5  ;;  %v2946_v6 = vsel %vm707_vm4, %v8495_v62, %v2945_v14 }
 0x324   : > { %v2431_v11 = vpop.f32.mrf.mxu2  ;;  %v4008_v28 = vld [vmem:[#allocation3 + $0xd8] sm:$0xff]  ;;  %v8595_v58 = vpop.permute.xlu0 %5579 }
 0x325   : > { %2620 = vst.msk [vmem:[#allocation3 + $0xe1] sm:$0xff] %vm312_vm0, %v2587_v29  ;;  %v5570_v38 = vpop.permute.xlu1 %5569  ;;  %v2484_v40 = vadd.f32 %v2431_v11, %v1755_v49  ;;  %v8562_v60 = vpop.permute.xlu2 %5599  ;;  %v4294_v15 = vrot.slane %v4008_v28, 2  ;;  %v2776_v5 = vrot.slane %v4008_v28, 1  ;;  %v3476_v49 = vsel %vm707_vm4, %v8534_v52, %v3475_v31 }
 0x326   : > { %v5572_v36 = vunpack.i.h.bf16 %v5570_v38  ;;  %v5571_v32 = vunpack.i.l.bf16 %v5570_v38  ;;  %v8605_v29 = vpop.f32.mrf.mxu3  ;;  %v5587_v28 = vunpack.i.h.bf16 %v8532_v47 }
 0x327   : > { %v2520_v41 = vmul.f32 %v8570_v0, %v2484_v40 }
 0x328   : > { %v3086_v4 = vsel %vm312_vm0, %v8210_v16, %v5572_v36  ;;  %v3085_v17 = vsel %vm312_vm0, %v8204_v37, %v5571_v32  ;;  %v1757_v37 = vadd.f32 %v8480_v61, %v8081_v42 }
 0x329   : > { %v2556_v18 = vadd.f32 %v8581_v46, %v2520_v41  ;;  %v3117_v25 = vsel %vm916_vm5, %v3085_v17, %v5576_v1  ;;  %v3118_v50 = vsel %vm916_vm5, %v3086_v4, %v5577_v34  ;;  %v2950_v34 = vrot.slane %v8529_v12, 2 }
 0x32a   : > { %5784 = vrot.lane.b32.xlu1 %v5783_v20, %s6148_s26  ;;  %v3148_v16 = vpack.c.bf16 %v3118_v50, %v3117_v25  ;;  %v1760_v4 = vadd.f32 %v8504_v44, %v8086_v63  ;;  %v5788_v17 = vpack.i.bf16 %v2946_v6, %v3476_v49  ;;  %v5601_v49 = vunpack.i.l.bf16 %v8562_v60 }
 0x32b   : > { %v2588_v26 = vmax.f32 %v2556_v18, 0.0  ;;  %5774 = vrot.lane.b32.xlu2 %v5773_v30, %s6148_s26  ;;  %v5586_v18 = vunpack.i.l.bf16 %v8532_v47 }
 0x32c   : > { %5018 = vmatmul.msk.bf16.gmra.mxu0 %vm1503_vm6, %v3148_v16  ;;  %v2433_v21 = vpop.f32.mrf.mxu2  ;;  %v4009_v54 = vld [vmem:[#allocation3 + $0xe0] sm:$0xff]  ;;  %v4010_v51 = vld [vmem:[#allocation3 + $0xe8] sm:$0x3]  ;;  %v2951_v16 = vsel %vm707_vm4, %v8534_v52, %v2950_v34 }
 0x32d   : > { %v8593_v45 = vld [vmem:[#allocation3 + $0xe8] sm:$0x3]  ;;  %2621 = vst.msk [vmem:[#allocation3 + $0xf1] sm:$0xff] %vm312_vm0, %v2588_v26  ;;  %v2485_v7 = vadd.f32 %v2433_v21, %v1757_v37  ;;  %v8598_v42 = vpop.permute.xlu2 %5624  ;;  %v8600_v61 = vrot.slane %v4009_v54, 2  ;;  %v4297_v23 = vrot.slane %v4010_v51, 2  ;;  %v2777_v9 = vrot.slane %v4009_v54, 1 }
 0x32e   : > { %v2779_v39 = vrot.slane %v8593_v45, 1  ;;  %v3191_v32 = vld [vmem:[#allocation3 + $0xe8] sm:$0x3]  ;;  %v4121_v20 = vrot.slane %v4010_v51, 1  ;;  %v3088_v26 = vsel %vm312_vm0, %v8257_v59, %v5587_v28  ;;  %v5808_v54 = vpack.i.bf16 %v2951_v16, %v8544_v27 }
 0x32f   : > { %v2521_v3 = vmul.f32 %v8570_v0, %v2485_v7  ;;  %v8610_v11 = vsel %vm707_vm4, %v4294_v15, %v8600_v61  ;;  %v4298_v38 = vsel %vm707_vm4, %v8600_v61, %v4297_v23  ;;  %v2778_v40 = vsel %vm530_vm3, %v2776_v5, %v2777_v9  ;;  %v8645_v7 = vpop.f32.mrf.mxu3 }
 0x330   : > { %v5803_v56 = vpack.i.bf16 %v4298_v38, %v8610_v11  ;;  %v2780_v36 = vsel %vm530_vm3, %v2777_v9, %v2779_v39  ;;  %v3304_v12 = vrot.slane %v3191_v32, 1  ;;  %v4122_v37 = vsel %vm530_vm3, %v2777_v9, %v4121_v20 }
 0x331   : > { %v2557_v1 = vadd.f32 %v8581_v46, %v2521_v3  ;;  %v5793_v41 = vpack.i.bf16 %v2780_v36, %v2778_v40  ;;  %v3087_v15 = vsel %vm312_vm0, %v8250_v10, %v5586_v18  ;;  %v3480_v51 = vrot.slane %v3191_v32, 2 }
 0x332   : > { %5804 = vrot.lane.b32.xlu1 %v5803_v56, %s6149_s8  ;;  %v3305_v21 = vsel %vm530_vm3, %v2777_v9, %v3304_v12  ;;  %v5798_v39 = vpack.i.bf16 %v4122_v37, %v2778_v40  ;;  %v1762_v9 = vadd.f32 %v8522_v13, %v8092_v53  ;;  %v5602_v27 = vunpack.i.h.bf16 %v8562_v60 }
 0x333   : > { %v2589_v25 = vmax.f32 %v2557_v1, 0.0  ;;  %5794 = vrot.lane.b32.xlu0 %v5793_v41, %s6148_s26  ;;  %5789 = vrot.lane.b32.xlu2 %v5788_v17, %s6149_s8  ;;  %v5813_v10 = vpack.i.bf16 %v3305_v21, %v2778_v40  ;;  %v3481_v40 = vsel %vm707_vm4, %v8600_v61, %v3480_v51  ;;  %v6106_v17 = vld [vmem:[#allocation3 + $0x30] sm:$0xff] }
 0x334   : > { %v2436_v50 = vpop.f32.mrf.mxu2  ;;  %v8628_v30 = vpop.permute.xlu1 %5594  ;;  %v8655_v56 = vld [vmem:[#allocation3 + $0xf0] sm:$0xff]  ;;  %v4435_v20 = vsel %vm312_vm0, %v6106_v17, %v5601_v49 }
 0x335   : > { %2622 = vst.msk [vmem:[#allocation3 + $0xf9] sm:$0xff] %vm312_vm0, %v2589_v25  ;;  %v2486_v63 = vadd.f32 %v2436_v50, %v1760_v4  ;;  %v5590_v62 = vpop.permute.xlu0 %5589  ;;  %v8631_v44 = vpop.permute.xlu2 %5639  ;;  %v5597_v38 = vunpack.i.h.bf16 %v8628_v30  ;;  %v1765_v4 = vadd.f32 %v8558_v55, %v8097_v43  ;;  %v2781_v18 = vrot.slane %v8655_v56, 1  ;;  %v6107_v25 = vld [vmem:[#allocation3 + $0x38] sm:$0xff] }
 0x336   : > { %v5592_v31 = vunpack.i.h.bf16 %v5590_v62  ;;  %v5591_v47 = vunpack.i.l.bf16 %v5590_v62  ;;  %v4436_v12 = vsel %vm312_vm0, %v6107_v25, %v5602_v27  ;;  %v5818_v62 = vpack.i.bf16 %v3481_v40, %v8610_v11 }
 0x337   : > { %v2522_v14 = vmul.f32 %v8570_v0, %v2486_v63  ;;  %v4467_v50 = vsel %vm916_vm5, %v4435_v20, %v5597_v38  ;;  %v4299_v38 = vrot.slane %v8655_v56, 2 }
 0x338   : > { %v3119_v5 = vsel %vm916_vm5, %v3087_v15, %v5591_v47  ;;  %v3120_v52 = vsel %vm916_vm5, %v3088_v26, %v5592_v31 }
 0x339   : > { %v2558_v23 = vadd.f32 %v8581_v46, %v2522_v14  ;;  %v3149_v59 = vpack.c.bf16 %v3120_v52, %v3119_v5  ;;  %v8687_v52 = vpop.f32.mrf.mxu3 }
 0x33a   : > { %5809 = vrot.lane.b32.xlu1 %v5808_v54, %s6149_s8 }
 0x33b   : > { %v2590_v3 = vmax.f32 %v2558_v23, 0.0  ;;  %5799 = vrot.lane.b32.xlu0 %v5798_v39, %s6148_s26  ;;  %5814 = vrot.lane.b32.xlu2 %v5813_v10, %s6148_s26  ;;  %v5626_v10 = vunpack.i.l.bf16 %v8598_v42 }
 0x33c   : > { %5019 = vmatmul.msk.bf16.gmra.mxu0 %vm1503_vm6, %v3149_v59  ;;  %v2438_v36 = vpop.f32.mrf.mxu2  ;;  %v5610_v32 = vpop.permute.xlu1 %5609  ;;  %v2666_v34 = vld [vmem:[#allocation3 + $0xf8] sm:$0xff]  ;;  %v8666_v1 = vld [vmem:[#allocation3 + $0x100] sm:$0x3] }
 0x33d   : > { %2623 = vst.msk [vmem:[#allocation3 + $0x109] sm:$0xff] %vm312_vm0, %v2590_v3  ;;  %v2487_v53 = vadd.f32 %v2438_v36, %v1762_v9  ;;  %v8662_v13 = vpop.permute.xlu0 %5604  ;;  %v8664_v60 = vpop.permute.xlu2 %5649  ;;  %v2782_v41 = vrot.slane %v2666_v34, 1  ;;  %v4013_v6 = vld [vmem:[#allocation3 + $0x100] sm:$0x3]  ;;  %v2784_v55 = vrot.slane %v8666_v1, 1  ;;  %v5612_v26 = vunpack.i.h.bf16 %v5610_v32 }
 0x33e   : > { %v5606_v28 = vunpack.i.l.bf16 %v8662_v13  ;;  %v4126_v31 = vrot.slane %v4013_v6, 1  ;;  %v3194_v47 = vld [vmem:[#allocation3 + $0x100] sm:$0x3]  ;;  %v5611_v15 = vunpack.i.l.bf16 %v5610_v32  ;;  %v8685_v51 = vrot.slane %v2666_v34, 2 }
 0x33f   : > { %v2523_v63 = vmul.f32 %v8570_v0, %v2487_v53  ;;  %v8679_v43 = vsel %vm530_vm3, %v2781_v18, %v2782_v41  ;;  %v2785_v21 = vsel %vm530_vm3, %v2782_v41, %v2784_v55  ;;  %v4302_v5 = vrot.slane %v4013_v6, 2 }
 0x340   : > { %v4468_v16 = vsel %vm916_vm5, %v4436_v12, %v5606_v28  ;;  %v4127_v54 = vsel %vm530_vm3, %v2782_v41, %v4126_v31  ;;  %v5823_v39 = vpack.i.bf16 %v2785_v21, %v8679_v43  ;;  %v3309_v49 = vrot.slane %v3194_v47, 1 }
 0x341   : > { %v2559_v37 = vadd.f32 %v8581_v46, %v2523_v63  ;;  %v4499_v14 = vpack.c.bf16 %v4468_v16, %v4467_v50  ;;  %v5828_v59 = vpack.i.bf16 %v4127_v54, %v8679_v43  ;;  %v5607_v9 = vunpack.i.h.bf16 %v8662_v13  ;;  %v8712_v63 = vld [vmem:[#allocation3 + $0x50] sm:$0xff]  ;;  %v6109_v16 = vld [vmem:[#allocation3 + $0x48] sm:$0xff] }
 0x342   : > { %v3485_v36 = vrot.slane %v3194_v47, 2  ;;  %v3615_v32 = vsel %vm312_vm0, %v6106_v17, %v5611_v15  ;;  %5824 = vrot.lane.b32.xlu1 %v5823_v39, %s6148_s26  ;;  %v8704_v56 = vsel %vm707_vm4, %v4299_v38, %v8685_v51  ;;  %v4303_v18 = vsel %vm707_vm4, %v8685_v51, %v4302_v5 }
 0x343   : > { %v2591_v23 = vmax.f32 %v2559_v37, 0.0  ;;  %5819 = vrot.lane.b32.xlu0 %v5818_v62, %s6149_s8  ;;  %5039 = vmatmul.msk.bf16.vlgmr.msrb.gmra.mxu1 %vm1503_vm6, %v4499_v14  ;;  %v2955_v17 = vrot.slane %v8593_v45, 2  ;;  %v3616_v12 = vsel %vm312_vm0, %v6107_v25, %v5612_v26  ;;  %v3310_v50 = vsel %vm530_vm3, %v2782_v41, %v3309_v49 }
 0x344   : > { %v2441_v27 = vpop.f32.mrf.mxu2  ;;  %v5620_v3 = vpop.permute.xlu1 %5619  ;;  %5829 = vrot.lane.b32.xlu2 %v5828_v59, %s6148_s26  ;;  %v3486_v31 = vsel %vm707_vm4, %v8685_v51, %v3485_v36  ;;  %v8720_v47 = vsel %vm916_vm5, %v3615_v32, %v5607_v9  ;;  %v5833_v25 = vpack.i.bf16 %v4303_v18, %v8704_v56  ;;  %v1767_v26 = vadd.f32 %v8605_v29, %v8106_v57  ;;  %v8728_v14 = vld [vmem:[#allocation3 + $0x108] sm:$0xff] }
 0x345   : > { %2624 = vst.msk [vmem:[#allocation3 + $0x111] sm:$0xff] %vm312_vm0, %v2591_v23  ;;  %v2488_v34 = vadd.f32 %v2441_v27, %v1765_v4  ;;  %v5622_v40 = vunpack.i.h.bf16 %v5620_v3  ;;  %v5621_v53 = vunpack.i.l.bf16 %v5620_v3  ;;  %v5615_v6 = vpop.permute.xlu0 %5614  ;;  %v8700_v20 = vpop.permute.xlu2 %5664  ;;  %v8731_v21 = vsel %vm916_vm5, %v3616_v12, %v5626_v10 }
 0x346   : > { %v5617_v13 = vunpack.i.h.bf16 %v5615_v6  ;;  %v5616_v28 = vunpack.i.l.bf16 %v5615_v6  ;;  %v5843_v5 = vpack.i.bf16 %v3310_v50, %v8679_v43  ;;  %v5848_v23 = vpack.i.bf16 %v3486_v31, %v8704_v56 }
 0x347   : > { %v2524_v4 = vmul.f32 %v8570_v0, %v2488_v34  ;;  %v3678_v39 = vpack.c.bf16 %v8731_v21, %v8720_v47  ;;  %v1770_v59 = vadd.f32 %v8645_v7, %v8109_v19  ;;  %v5627_v57 = vunpack.i.h.bf16 %v8598_v42 }
 0x348   : > { %v3090_v62 = vsel %vm312_vm0, %v8712_v63, %v5617_v13  ;;  %v3089_v55 = vsel %vm312_vm0, %v6109_v16, %v5616_v28  ;;  %v4128_v42 = vrot.slane %v8728_v14, 1  ;;  %v2956_v38 = vsel %vm707_vm4, %v8600_v61, %v2955_v17 }
 0x349   : > { %v2560_v45 = vadd.f32 %v8581_v46, %v2524_v4  ;;  %v3121_v41 = vsel %vm916_vm5, %v3089_v55, %v5621_v53  ;;  %v3122_v37 = vsel %vm916_vm5, %v3090_v62, %v5622_v40  ;;  %v5641_v36 = vunpack.i.l.bf16 %v8631_v44  ;;  %v8755_v53 = vpop.f32.mrf.mxu3 }
 0x34a   : > { %v3150_v15 = vpack.c.bf16 %v3122_v37, %v3121_v41  ;;  %5844 = vrot.lane.b32.xlu1 %v5843_v5, %s6148_s26  ;;  %v5838_v17 = vpack.i.bf16 %v2956_v38, %v8610_v11 }
 0x34b   : > { %v2592_v54 = vmax.f32 %v2560_v45, 0.0  ;;  %5834 = vrot.lane.b32.xlu0 %v5833_v25, %s6149_s8 }
 0x34c   : > { %5020 = vmatmul.msk.bf16.gmra.mxu0 %vm1503_vm6, %v3150_v15  ;;  %v2443_v29 = vpop.f32.mrf.mxu2  ;;  %v5635_v49 = vpop.permute.xlu1 %5634  ;;  %v4015_v10 = vld [vmem:[#allocation3 + $0x110] sm:$0xff]  ;;  %v8742_v9 = vld [vmem:[#allocation3 + $0x118] sm:$0x3]  ;;  %5849 = vrot.lane.b32.xlu2 %v5848_v23, %s6149_s8  ;;  %v3617_v15 = vsel %vm312_vm0, %v6109_v16, %v5641_v36 }
 0x34d   : > { %v8744_v43 = vld [vmem:[#allocation3 + $0x118] sm:$0x3]  ;;  %2625 = vst.msk [vmem:[#allocation3 + $0x121] sm:$0xff] %vm312_vm0, %v2592_v54  ;;  %v2489_v27 = vadd.f32 %v2443_v29, %v1767_v26  ;;  %v5630_v3 = vpop.permute.xlu0 %5629  ;;  %v8749_v19 = vpop.permute.xlu2 %5674  ;;  %v4129_v7 = vrot.slane %v4015_v10, 1  ;;  %v5636_v32 = vunpack.i.l.bf16 %v5635_v49  ;;  %v4131_v28 = vrot.slane %v8742_v9, 1 }
 0x34e   : > { %v5632_v34 = vunpack.i.h.bf16 %v5630_v3  ;;  %v5631_v40 = vunpack.i.l.bf16 %v5630_v3  ;;  %v2789_v18 = vrot.slane %v8744_v43, 1  ;;  %v5637_v12 = vunpack.i.h.bf16 %v5635_v49  ;;  %v3197_v50 = vld [vmem:[#allocation3 + $0x118] sm:$0x3] }
 0x34f   : > { %v2525_v6 = vmul.f32 %v8570_v0, %v2489_v27  ;;  %v4130_v13 = vsel %vm530_vm3, %v4128_v42, %v4129_v7  ;;  %v4132_v55 = vsel %vm530_vm3, %v4129_v7, %v4131_v28  ;;  %v8770_v26 = vrot.slane %v4015_v10, 2  ;;  %v8801_v28 = vld [vmem:[#allocation3 + $0x60] sm:$0xff] }
 0x350   : > { %v4438_v4 = vsel %vm312_vm0, %v8712_v63, %v5632_v34  ;;  %v4437_v61 = vsel %vm312_vm0, %v6109_v16, %v5631_v40  ;;  %v2790_v31 = vsel %vm530_vm3, %v4129_v7, %v2789_v18  ;;  %v5858_v25 = vpack.i.bf16 %v4132_v55, %v4130_v13  ;;  %v8797_v40 = vld [vmem:[#allocation3 + $0x68] sm:$0xff] }
 0x351   : > { %v2561_v62 = vadd.f32 %v8581_v46, %v2525_v6  ;;  %v4469_v45 = vsel %vm916_vm5, %v4437_v61, %v5627_v57  ;;  %v5853_v41 = vpack.i.bf16 %v2790_v31, %v4130_v13  ;;  %v4470_v37 = vsel %vm916_vm5, %v4438_v4, %v5636_v32 }
 0x352   : > { %v4500_v11 = vpack.c.bf16 %v4470_v37, %v4469_v45  ;;  %v3490_v5 = vrot.slane %v3197_v50, 2  ;;  %v3487_v49 = vrot.slane %v8728_v14, 2  ;;  %v3314_v27 = vrot.slane %v3197_v50, 1  ;;  %5859 = vrot.lane.b32.xlu1 %v5858_v25, %s6148_s26 }
 0x353   : > { %v2593_v54 = vmax.f32 %v2561_v62, 0.0  ;;  %5839 = vrot.lane.b32.xlu0 %v5838_v17, %s6149_s8  ;;  %v4307_v57 = vrot.slane %v8742_v9, 2  ;;  %v8777_v3 = vsel %vm916_vm5, %v3617_v15, %v5637_v12  ;;  %v5642_v10 = vunpack.i.h.bf16 %v8631_v44  ;;  %v1776_v17 = vpop.f32.mrf.mxu3 }
 0x354   : > { %v2446_v23 = vpop.f32.mrf.mxu2  ;;  %v5645_v29 = vpop.permute.xlu1 %5644  ;;  %5854 = vrot.lane.b32.xlu2 %v5853_v41, %s6148_s26  ;;  %v5651_v9 = vunpack.i.l.bf16 %v8664_v60  ;;  %5040 = vmatmul.msk.bf16.gmra.mxu1 %vm1503_vm6, %v4500_v11  ;;  %v8791_v44 = vsel %vm707_vm4, %v3487_v49, %v8770_v26  ;;  %v3491_v32 = vsel %vm707_vm4, %v8770_v26, %v3490_v5  ;;  %v2960_v34 = vrot.slane %v8666_v1, 2  ;;  %v8822_v37 = vld [vmem:[#allocation3 + $0x120] sm:$0xff] }
 0x355   : > { %2626 = vst.msk [vmem:[#allocation3 + $0x129] sm:$0xff] %vm312_vm0, %v2593_v54  ;;  %v2490_v16 = vadd.f32 %v2446_v23, %v1770_v59  ;;  %v5647_v42 = vunpack.i.h.bf16 %v5645_v29  ;;  %v5646_v38 = vunpack.i.l.bf16 %v5645_v29  ;;  %v8783_v36 = vpop.permute.xlu0 %5654  ;;  %v8785_v14 = vpop.permute.xlu2 %5689  ;;  %v5652_v4 = vunpack.i.h.bf16 %v8664_v60 }
 0x356   : > { %v5656_v12 = vunpack.i.l.bf16 %v8783_v36  ;;  %v3315_v61 = vsel %vm530_vm3, %v4129_v7, %v3314_v27  ;;  %v4308_v1 = vsel %vm707_vm4, %v8770_v26, %v4307_v57  ;;  %v1772_v50 = vadd.f32 %v8687_v52, %v8117_v2 }
 0x357   : > { %v2526_v59 = vmul.f32 %v8570_v0, %v2490_v16  ;;  %v3092_v6 = vsel %vm312_vm0, %v8797_v40, %v5647_v42  ;;  %v3091_v18 = vsel %vm312_vm0, %v8801_v28, %v5646_v38  ;;  %v5873_v55 = vpack.i.bf16 %v3315_v61, %v4130_v13 }
 0x358   : > { %v3123_v31 = vsel %vm916_vm5, %v3091_v18, %v5651_v9  ;;  %v3618_v45 = vsel %vm312_vm0, %v8712_v63, %v5642_v10  ;;  %v5878_v25 = vpack.i.bf16 %v3491_v32, %v8791_v44  ;;  %v3124_v60 = vsel %vm916_vm5, %v3092_v6, %v5652_v4 }
 0x359   : > { %v2562_v62 = vadd.f32 %v8581_v46, %v2526_v59  ;;  %v2961_v7 = vsel %vm707_vm4, %v8685_v51, %v2960_v34  ;;  %v5863_v2 = vpack.i.bf16 %v4308_v1, %v8791_v44  ;;  %v3151_v52 = vpack.c.bf16 %v3124_v60, %v3123_v31 }
 0x35a   : > { %v8825_v13 = vsel %vm916_vm5, %v3618_v45, %v5656_v12  ;;  %v1775_v63 = vadd.f32 %v8755_v53, %v8120_v33  ;;  %5879 = vrot.lane.b32.xlu1 %v5878_v25, %s6149_s8  ;;  %v8846_v57 = vadd.f32 %v1776_v17, %v8128_v8  ;;  %v5666_v10 = vunpack.i.l.bf16 %v8700_v20 }
 0x35b   : > { %v2594_v41 = vmax.f32 %v2562_v62, 0.0  ;;  %5874 = vrot.lane.b32.xlu0 %v5873_v55, %s6148_s26  ;;  %v3679_v51 = vpack.c.bf16 %v8825_v13, %v8777_v3  ;;  %v4309_v16 = vrot.slane %v8822_v37, 2  ;;  %v5868_v38 = vpack.i.bf16 %v2961_v7, %v8704_v56  ;;  %v1779_v31 = vpop.f32.mrf.mxu3 }
 0x35c   : > { %v2448_v15 = vpop.f32.mrf.mxu2  ;;  %v5660_v54 = vpop.permute.xlu1 %5659  ;;  %v8829_v11 = vld [vmem:[#allocation3 + $0x128] sm:$0xff]  ;;  %5864 = vrot.lane.b32.xlu2 %v5863_v2, %s6149_s8  ;;  %v8840_v33 = vld [vmem:[#allocation3 + $0x130] sm:$0x3]  ;;  %5021 = vmatmul.msk.bf16.gmra.mxu0 %vm1503_vm6, %v3151_v52  ;;  %v5657_v9 = vunpack.i.h.bf16 %v8783_v36  ;;  %v2791_v18 = vrot.slane %v8822_v37, 1  ;;  %v5677_v17 = vunpack.i.h.bf16 %v8749_v19  ;;  %v5676_v45 = vunpack.i.l.bf16 %v8749_v19 }
 0x35d   : > { %2627 = vst.msk [vmem:[#allocation3 + $0x139] sm:$0xff] %vm312_vm0, %v2594_v41  ;;  %v2491_v5 = vadd.f32 %v2448_v15, %v1772_v50  ;;  %v5662_v23 = vunpack.i.h.bf16 %v5660_v54  ;;  %v5661_v29 = vunpack.i.l.bf16 %v5660_v54  ;;  %v8836_v49 = vpop.permute.xlu0 %5669  ;;  %v8838_v27 = vpop.permute.xlu2 %5714  ;;  %v8843_v53 = vrot.slane %v8829_v11, 2  ;;  %v8851_v42 = vld [vmem:[#allocation3 + $0x130] sm:$0x3] }
 0x35e   : > { %v4312_v6 = vrot.slane %v8840_v33, 2  ;;  %v2792_v56 = vrot.slane %v8829_v11, 1  ;;  %v2794_v12 = vrot.slane %v8851_v42, 1  ;;  %v8871_v1 = vld [vmem:[#allocation3 + $0x130] sm:$0x3]  ;;  %v8883_v41 = vadd.f32 %v1779_v31, %v8131_v22 }
 0x35f   : > { %v2527_v32 = vmul.f32 %v8570_v0, %v2491_v5  ;;  %v4440_v34 = vsel %vm312_vm0, %v8797_v40, %v5662_v23  ;;  %v4439_v8 = vsel %vm312_vm0, %v8801_v28, %v5661_v29  ;;  %v8862_v59 = vsel %vm707_vm4, %v4309_v16, %v8843_v53 }
 0x360   : > { %v4471_v4 = vsel %vm916_vm5, %v4439_v8, %v5657_v9  ;;  %v4472_v61 = vsel %vm916_vm5, %v4440_v34, %v5666_v10  ;;  %v4313_v50 = vsel %vm707_vm4, %v8843_v53, %v4312_v6  ;;  %v8877_v62 = vsel %vm530_vm3, %v2791_v18, %v2792_v56  ;;  %v6112_v34 = vld [vmem:[#allocation3 + $0x80] sm:$0xff] }
 0x361   : > { %v2563_v36 = vadd.f32 %v8581_v46, %v2527_v32  ;;  %v4501_v55 = vpack.c.bf16 %v4472_v61, %v4471_v4  ;;  %v5893_v60 = vpack.i.bf16 %v4313_v50, %v8862_v59  ;;  %v2795_v7 = vsel %vm530_vm3, %v2792_v56, %v2794_v12  ;;  %v6114_v4 = vld [vmem:[#allocation3 + $0x20] sm:$0xff] }
 0x362   : > { %v5883_v2 = vpack.i.bf16 %v2795_v7, %v8877_v62  ;;  %v2965_v54 = vrot.slane %v8744_v43, 2  ;;  %v3319_v5 = vrot.slane %v8871_v1, 1  ;;  %v5582_v23 = vunpack.i.h.bf16 %v8595_v58 }
 0x363   : > { %v2595_v25 = vmax.f32 %v2563_v36, 0.0  ;;  %v5581_v19 = vunpack.i.l.bf16 %v8595_v58  ;;  %5894 = vrot.lane.b32.xlu1 %v5893_v60, %s6149_s8  ;;  %v4136_v16 = vrot.slane %v8840_v33, 1  ;;  %v5596_v43 = vunpack.i.l.bf16 %v8628_v30 }
 0x364   : > { %v2451_v52 = vpop.f32.mrf.mxu2  ;;  %v8886_v15 = vpop.permute.xlu1 %5684  ;;  %5869 = vrot.lane.b32.xlu2 %v5868_v38, %s6149_s8  ;;  %v5692_v9 = vunpack.i.h.bf16 %v8785_v14  ;;  %5884 = vrot.lane.b32.xlu0 %v5883_v2, %s6148_s26  ;;  %v3094_v8 = vsel %vm312_vm0, %v6112_v34, %v5677_v17  ;;  %v6113_v38 = vld [vmem:[#allocation3 + $0x78] sm:$0xff]  ;;  %v5691_v6 = vunpack.i.l.bf16 %v8785_v14  ;;  %v2966_v36 = vsel %vm707_vm4, %v8770_v26, %v2965_v54 }
 0x365   : > { %2628 = vst.msk [vmem:[#allocation3 + $0x141] sm:$0xff] %vm312_vm0, %v2595_v25  ;;  %v2492_v22 = vadd.f32 %v2451_v52, %v1775_v63  ;;  %v5680_v29 = vpop.permute.xlu0 %5679  ;;  %v8895_v10 = vpop.permute.xlu2 %5729  ;;  %5041 = vmatmul.msk.bf16.gmra.mxu1 %vm1503_vm6, %v4501_v55  ;;  %v3093_v63 = vsel %vm312_vm0, %v6113_v38, %v5676_v45  ;;  %v3320_v12 = vsel %vm530_vm3, %v2792_v56, %v3319_v5  ;;  %v6115_v17 = vld [vmem:[#allocation3 + $0x18] sm:$0xff]  ;;  %v3495_v26 = vrot.slane %v8871_v1, 2 }
 0x366   : > { %v5682_v58 = vunpack.i.h.bf16 %v5680_v29  ;;  %v5681_v32 = vunpack.i.l.bf16 %v5680_v29  ;;  %v3614_v61 = vsel %vm312_vm0, %v6114_v4, %v5582_v23  ;;  %v3613_v50 = vsel %vm312_vm0, %v6115_v17, %v5581_v19  ;;  %v8915_v31 = vld [vmem:[#allocation3 + $0x138] sm:$0xff] }
 0x367   : > { %v2528_v33 = vmul.f32 %v8570_v0, %v2492_v22  ;;  %v4137_v14 = vsel %vm530_vm3, %v2792_v56, %v4136_v16  ;;  %v3646_v45 = vsel %vm916_vm5, %v3614_v61, %v5596_v43  ;;  %v4442_v25 = vsel %vm312_vm0, %v6112_v34, %v5692_v9 }
 0x368   : > { %v3125_v30 = vsel %vm916_vm5, %v3093_v63, %v5681_v32  ;;  %v3126_v18 = vsel %vm916_vm5, %v3094_v8, %v5682_v58  ;;  %v4441_v7 = vsel %vm312_vm0, %v6113_v38, %v5691_v6  ;;  %v5898_v52 = vpack.i.bf16 %v2966_v36, %v8791_v44 }
 0x369   : > { %v2564_v55 = vadd.f32 %v8581_v46, %v2528_v33  ;;  %v3152_v60 = vpack.c.bf16 %v3126_v18, %v3125_v30  ;;  %v5903_v54 = vpack.i.bf16 %v3320_v12, %v8877_v62  ;;  %v5716_v5 = vunpack.i.l.bf16 %v8838_v27 }
 0x36a   : > { %v5687_v56 = vunpack.i.h.bf16 %v8886_v15  ;;  %v5888_v23 = vpack.i.bf16 %v4137_v14, %v8877_v62  ;;  %v2796_v16 = vrot.slane %v8915_v31, 1 }
 0x36b   : > { %v2596_v2 = vmax.f32 %v2564_v55, 0.0  ;;  %5899 = vrot.lane.b32.xlu1 %v5898_v52, %s6149_s8 }
 0x36c   : > { %v2453_v19 = vpop.f32.mrf.mxu2  ;;  %v5700_v22 = vpop.permute.xlu1 %5699  ;;  %v8926_v29 = vld [vmem:[#allocation3 + $0x140] sm:$0xff]  ;;  %5904 = vrot.lane.b32.xlu2 %v5903_v54, %s6148_s26  ;;  %v8935_v62 = vld [vmem:[#allocation3 + $0x148] sm:$0x3]  ;;  %5889 = vrot.lane.b32.xlu0 %v5888_v23, %s6148_s26  ;;  %v4473_v52 = vsel %vm916_vm5, %v4441_v7, %v5687_v56 }
 0x36d   : > { %2629 = vst.msk [vmem:[#allocation3 + $0x151] sm:$0xff] %vm312_vm0, %v2596_v2  ;;  %v2493_v44 = vadd.f32 %v2453_v19, %v8846_v57  ;;  %v5702_v1 = vunpack.i.h.bf16 %v5700_v22  ;;  %v5701_v43 = vunpack.i.l.bf16 %v5700_v22  ;;  %v5695_v9 = vpop.permute.xlu0 %5694  ;;  %v8933_v58 = vpop.permute.xlu2 %5739  ;;  %v2797_v32 = vrot.slane %v8926_v29, 1  ;;  %5022 = vmatmul.msk.bf16.gmra.mxu0 %vm1503_vm6, %v3152_v60  ;;  %v4022_v33 = vld [vmem:[#allocation3 + $0x148] sm:$0x3] }
 0x36e   : > { %v5697_v8 = vunpack.i.h.bf16 %v5695_v9  ;;  %v5696_v63 = vunpack.i.l.bf16 %v5695_v9  ;;  %v5742_v6 = vunpack.i.h.bf16 %v8933_v58  ;;  %v3496_v57 = vsel %vm707_vm4, %v8843_v53, %v3495_v26  ;;  %v3203_v4 = vld [vmem:[#allocation3 + $0x148] sm:$0x3] }
 0x36f   : > { %v2529_v30 = vmul.f32 %v8570_v0, %v2493_v44  ;;  %v3622_v18 = vsel %vm312_vm0, %v6112_v34, %v5702_v1  ;;  %v3621_v36 = vsel %vm312_vm0, %v6113_v38, %v5701_v43  ;;  %v8947_v12 = vsel %vm530_vm3, %v2796_v16, %v2797_v32 }
 0x370   : > { %v8950_v61 = vsel %vm916_vm5, %v3621_v36, %v5697_v8  ;;  %v8953_v17 = vsel %vm916_vm5, %v3622_v18, %v5716_v5  ;;  %v3645_v55 = vsel %vm916_vm5, %v3613_v50, %v5742_v6  ;;  %v2799_v14 = vrot.slane %v8935_v62, 1  ;;  %v1781_v5 = vpop.f32.mrf.mxu3 }
 0x371   : > { %v2565_v60 = vadd.f32 %v8581_v46, %v2529_v30  ;;  %v3681_v34 = vpack.c.bf16 %v8953_v17, %v8950_v61  ;;  %v3677_v38 = vpack.c.bf16 %v3646_v45, %v3645_v55  ;;  %v4141_v26 = vrot.slane %v4022_v33, 1 }
 0x372   : > { %v2800_v2 = vsel %vm530_vm3, %v2797_v32, %v2799_v14  ;;  %v4474_v54 = vsel %vm916_vm5, %v4442_v25, %v5696_v63  ;;  %v3324_v23 = vrot.slane %v3203_v4, 1  ;;  %v5908_v44 = vpack.i.bf16 %v3496_v57, %v8862_v59  ;;  %v8983_v14 = vld [vmem:[#allocation3 + $0x98] sm:$0xff] }
 0x373   : > { %v2597_v19 = vmax.f32 %v2565_v60, 0.0  ;;  %v5913_v50 = vpack.i.bf16 %v2800_v2, %v8947_v12  ;;  %v4142_v22 = vsel %vm530_vm3, %v2797_v32, %v4141_v26  ;;  %4997 = vmatmul.msk.bf16.vlgmr.msrb.gmra.mxu3 %vm1503_vm6, %v3677_v38  ;;  %v4502_v16 = vpack.c.bf16 %v4474_v54, %v4473_v52  ;;  %v6117_v38 = vld [vmem:[#allocation3 + $0x90] sm:$0xff] }
 0x374   : > { %v5918_v45 = vpack.i.bf16 %v4142_v22, %v8947_v12  ;;  %v2456_v1 = vpop.f32.mrf.mxu2  ;;  %v5710_v43 = vpop.permute.xlu1 %5709  ;;  %v8969_v7 = vrot.slane %v8926_v29, 2  ;;  %v4317_v25 = vrot.slane %v4022_v33, 2  ;;  %5909 = vrot.lane.b32.xlu0 %v5908_v44, %s6149_s8  ;;  %v4314_v18 = vrot.slane %v8915_v31, 2 }
 0x375   : > { %2630 = vst.msk [vmem:[#allocation3 + $0x159] sm:$0xff] %vm312_vm0, %v2597_v19  ;;  %5914 = vrot.lane.b32.xlu1 %v5913_v50, %s6148_s26  ;;  %v2494_v56 = vadd.f32 %v2456_v1, %v8883_v41  ;;  %v5712_v9 = vunpack.i.h.bf16 %v5710_v43  ;;  %v5711_v8 = vunpack.i.l.bf16 %v5710_v43  ;;  %v5705_v63 = vpop.permute.xlu0 %5704  ;;  %v8974_v6 = vpop.permute.xlu2 %5754  ;;  %v5731_v33 = vunpack.i.l.bf16 %v8895_v10  ;;  %5042 = vmatmul.msk.bf16.gmra.mxu1 %vm1503_vm6, %v4502_v16  ;;  %v8999_v19 = vld [vmem:[#allocation3 + $0x150] sm:$0xff] }
 0x376   : > { %5919 = vrot.lane.b32.xlu2 %v5918_v45, %s6148_s26  ;;  %v5707_v57 = vunpack.i.h.bf16 %v5705_v63  ;;  %v5706_v30 = vunpack.i.l.bf16 %v5705_v63  ;;  %v3325_v41 = vsel %vm530_vm3, %v2797_v32, %v3324_v23  ;;  %v3500_v55 = vrot.slane %v3203_v4, 2 }
 0x377   : > { %v2530_v36 = vmul.f32 %v8570_v0, %v2494_v56  ;;  %v8990_v2 = vsel %vm707_vm4, %v4314_v18, %v8969_v7  ;;  %v4318_v52 = vsel %vm707_vm4, %v8969_v7, %v4317_v25  ;;  %v1782_v50 = vadd.f32 %v1781_v5, %v8140_v35 }
 0x378   : > { %v3096_v60 = vsel %vm312_vm0, %v8983_v14, %v5707_v57  ;;  %v3095_v26 = vsel %vm312_vm0, %v6117_v38, %v5706_v30  ;;  %v3501_v32 = vsel %vm707_vm4, %v8969_v7, %v3500_v55  ;;  %v5933_v16 = vpack.i.bf16 %v3325_v41, %v8947_v12 }
 0x379   : > { %v2566_v54 = vadd.f32 %v8581_v46, %v2530_v36  ;;  %v3127_v4 = vsel %vm916_vm5, %v3095_v26, %v5711_v8  ;;  %v3128_v23 = vsel %vm916_vm5, %v3096_v60, %v5712_v9  ;;  %v2970_v45 = vrot.slane %v8851_v42, 2  ;;  %v1784_v26 = vpop.f32.mrf.mxu3 }
 0x37a   : > { %v3153_v44 = vpack.c.bf16 %v3128_v23, %v3127_v4  ;;  %v3623_v1 = vsel %vm312_vm0, %v6117_v38, %v5731_v33  ;;  %v5923_v43 = vpack.i.bf16 %v4318_v52, %v8990_v2  ;;  %v5938_v25 = vpack.i.bf16 %v3501_v32, %v8990_v2 }
 0x37b   : > { %v2598_v22 = vmax.f32 %v2566_v54, 0.0  ;;  %v4143_v35 = vrot.slane %v8999_v19, 1  ;;  %v5717_v52 = vunpack.i.h.bf16 %v8838_v27 }
 0x37c   : > { %v2458_v56 = vpop.f32.mrf.mxu2  ;;  %v5725_v8 = vpop.permute.xlu1 %5724  ;;  %v9007_v63 = vld [vmem:[#allocation3 + $0x158] sm:$0xff]  ;;  %v9009_v9 = vld [vmem:[#allocation3 + $0x160] sm:$0x3]  ;;  %5924 = vrot.lane.b32.xlu0 %v5923_v43, %s6149_s8 }
 0x37d   : > { %v9012_v5 = vld [vmem:[#allocation3 + $0x160] sm:$0x3]  ;;  %2631 = vst.msk [vmem:[#allocation3 + $0x169] sm:$0xff] %vm312_vm0, %v2598_v22  ;;  %5934 = vrot.lane.b32.xlu1 %v5933_v16, %s6148_s26  ;;  %v2495_v42 = vadd.f32 %v2458_v56, %v1782_v50  ;;  %v5727_v12 = vunpack.i.h.bf16 %v5725_v8  ;;  %v5726_v57 = vunpack.i.l.bf16 %v5725_v8  ;;  %v5720_v30 = vpop.permute.xlu0 %5719  ;;  %v4144_v18 = vrot.slane %v9007_v63, 1  ;;  %v9019_v41 = vpop.permute.xlu2 %5764  ;;  %5023 = vmatmul.msk.bf16.gmra.mxu0 %vm1503_vm6, %v3153_v44 }
 0x37e   : > { %5939 = vrot.lane.b32.xlu2 %v5938_v25, %s6149_s8  ;;  %v5722_v33 = vunpack.i.h.bf16 %v5720_v30  ;;  %v5721_v36 = vunpack.i.l.bf16 %v5720_v30  ;;  %v4146_v55 = vrot.slane %v9009_v9, 1  ;;  %v2804_v60 = vrot.slane %v9012_v5, 1  ;;  %v3206_v43 = vld [vmem:[#allocation3 + $0x160] sm:$0x3] }
 0x37f   : > { %v2531_v54 = vmul.f32 %v8570_v0, %v2495_v42  ;;  %v9027_v32 = vsel %vm916_vm5, %v3623_v1, %v5727_v12  ;;  %v9033_v50 = vsel %vm530_vm3, %v4143_v35, %v4144_v18  ;;  %v2971_v44 = vsel %vm707_vm4, %v8843_v53, %v2970_v45 }
 0x380   : > { %v4444_v4 = vsel %vm312_vm0, %v8983_v14, %v5722_v33  ;;  %v4443_v23 = vsel %vm312_vm0, %v6117_v38, %v5721_v36  ;;  %v4147_v22 = vsel %vm530_vm3, %v4144_v18, %v4146_v55  ;;  %v1785_v1 = vadd.f32 %v1784_v26, %v8148_v48 }
 0x381   : > { %v2567_v16 = vadd.f32 %v8581_v46, %v2531_v54  ;;  %v5948_v27 = vpack.i.bf16 %v4147_v22, %v9033_v50  ;;  %v2805_v25 = vsel %vm530_vm3, %v4144_v18, %v2804_v60  ;;  %v4475_v56 = vsel %vm916_vm5, %v4443_v23, %v5717_v52  ;;  %v1786_v23 = vpop.f32.mrf.mxu3 }
 0x382   : > { %v4476_v38 = vsel %vm916_vm5, %v4444_v4, %v5726_v57  ;;  %v5732_v8 = vunpack.i.h.bf16 %v8895_v10  ;;  %v5943_v42 = vpack.i.bf16 %v2805_v25, %v9033_v50  ;;  %v5928_v45 = vpack.i.bf16 %v2971_v44, %v8862_v59 }
 0x383   : > { %v2599_v35 = vmax.f32 %v2567_v16, 0.0  ;;  %4998 = vmatmul.msk.bf16.gmra.mxu3 %vm1503_vm6, %v3678_v39  ;;  %v4503_v53 = vpack.c.bf16 %v4476_v38, %v4475_v56  ;;  %v9054_v30 = vrot.slane %v9007_v63, 2  ;;  %v3505_v57 = vrot.slane %v3206_v43, 2  ;;  %v9274_v17 = vpop.f32.mrf.mxu0 }
 0x384   : > { %v2461_v48 = vpop.f32.mrf.mxu2  ;;  %v9051_v12 = vpop.permute.xlu1 %5734  ;;  %v3329_v47 = vrot.slane %v3206_v43, 1  ;;  %v4322_v21 = vrot.slane %v9009_v9, 2  ;;  %5929 = vrot.lane.b32.xlu0 %v5928_v45, %s6149_s8  ;;  %v3502_v36 = vrot.slane %v8999_v19, 2  ;;  %v3624_v55 = vsel %vm312_vm0, %v8983_v14, %v5732_v8  ;;  %v9092_v25 = vld [vmem:[#allocation3 + $0x168] sm:$0xff] }
 0x385   : > { %2632 = vst.msk [vmem:[#allocation3 + $0x171] sm:$0xff] %vm312_vm0, %v2599_v35  ;;  %5949 = vrot.lane.b32.xlu1 %v5948_v27, %s6148_s26  ;;  %v2496_v10 = vadd.f32 %v2461_v48, %v1785_v1  ;;  %v9058_v33 = vpop.permute.xlu0 %5744  ;;  %v9064_v59 = vpop.permute.xlu2 %5774  ;;  %5043 = vmatmul.msk.bf16.gmra.mxu1 %vm1503_vm6, %v4503_v53  ;;  %v2975_v26 = vrot.slane %v8935_v62, 2  ;;  %v5736_v9 = vunpack.i.l.bf16 %v9051_v12  ;;  %v3506_v4 = vsel %vm707_vm4, %v9054_v30, %v3505_v57 }
 0x386   : > { %5944 = vrot.lane.b32.xlu2 %v5943_v42, %s6148_s26  ;;  %v5746_v39 = vunpack.i.l.bf16 %v9058_v33  ;;  %v9078_v54 = vsel %vm707_vm4, %v3502_v36, %v9054_v30  ;;  %v3330_v62 = vsel %vm530_vm3, %v4144_v18, %v3329_v47  ;;  %v4323_v22 = vsel %vm707_vm4, %v9054_v30, %v4322_v21  ;;  %v9097_v18 = vld [vmem:[#allocation3 + $0xa8] sm:$0xff] }
 0x387   : > { %v2532_v60 = vmul.f32 %v8570_v0, %v2496_v10  ;;  %v1787_v16 = vadd.f32 %v1786_v23, %v8165_v24  ;;  %v5741_v27 = vunpack.i.l.bf16 %v8933_v58  ;;  %v5756_v44 = vunpack.i.l.bf16 %v8974_v6 }
 0x388   : > { %v9074_v52 = vsel %vm916_vm5, %v3624_v55, %v5746_v39  ;;  %v5968_v1 = vpack.i.bf16 %v3506_v4, %v9078_v54  ;;  %v5737_v56 = vunpack.i.h.bf16 %v9051_v12  ;;  %v3097_v38 = vsel %vm312_vm0, %v9097_v18, %v5736_v9  ;;  %v6119_v39 = vld [vmem:[%s9838_s3] ss:$0 sm:$0xff] }
 0x389   : > { %v2568_v14 = vadd.f32 %v8581_v46, %v2532_v60  ;;  %v3682_v0 = vpack.c.bf16 %v9074_v52, %v9027_v32  ;;  %v2976_v46 = vsel %vm707_vm4, %v8969_v7, %v2975_v26  ;;  %v5963_v24 = vpack.i.bf16 %v3330_v62, %v9033_v50  ;;  %v9126_v9 = vld [vmem:[#allocation3 + $0xb0] sm:$0xff] }
 0x38a   : > { %v5953_v58 = vpack.i.bf16 %v4323_v22, %v9078_v54  ;;  %v5747_v57 = vunpack.i.h.bf16 %v9058_v33  ;;  %v4324_v10 = vrot.slane %v9092_v25, 2  ;;  %v2806_v26 = vrot.slane %v9092_v25, 1  ;;  %v6121_v22 = vld [vmem:[%s9839_s4] ss:$0 sm:$0xff] }
 0x38b   : > { %v2600_v43 = vmax.f32 %v2568_v14, 0.0  ;;  %v3098_v4 = vsel %vm312_vm0, %v9126_v9, %v5737_v56  ;;  %v3129_v14 = vsel %vm916_vm5, %v3097_v38, %v5741_v27 }
 0x38c   : > { %v2463_v8 = vpop.f32.mrf.mxu2  ;;  %v5750_v35 = vpop.permute.xlu1 %5749  ;;  %v9103_v42 = vld [vmem:[#allocation3 + $0x170] sm:$0xff]  ;;  %v4028_v53 = vld [vmem:[#allocation3 + $0x178] sm:$0x3]  ;;  %5964 = vrot.lane.b32.xlu0 %v5963_v24, %s6148_s26 }
 0x38d   : > { %2633 = vst.msk [vmem:[#allocation3 + $0x181] sm:$0xff] %vm312_vm0, %v2600_v43  ;;  %5969 = vrot.lane.b32.xlu1 %v5968_v1, %s6149_s8  ;;  %v2497_v7 = vadd.f32 %v2463_v8, %v1787_v16  ;;  %v5752_v45 = vunpack.i.h.bf16 %v5750_v35  ;;  %v5751_v48 = vunpack.i.l.bf16 %v5750_v35  ;;  %v9108_v12 = vrot.slane %v9103_v42, 2  ;;  %v9113_v50 = vpop.permute.xlu2 %5789  ;;  %v9123_v60 = vld [vmem:[#allocation3 + $0x178] sm:$0x3]  ;;  %v9140_v43 = vpop.permute.xlu0 %5759 }
 0x38e   : > { %5954 = vrot.lane.b32.xlu2 %v5953_v58, %s6149_s8  ;;  %v4327_v47 = vrot.slane %v4028_v53, 2  ;;  %v2807_v21 = vrot.slane %v9103_v42, 1  ;;  %v5792_v33 = vunpack.i.h.bf16 %v9113_v50  ;;  %v2809_v38 = vrot.slane %v9123_v60, 1  ;;  %v9149_v35 = vld [vmem:[#allocation3 + $0x178] sm:$0x3] }
 0x38f   : > { %v2533_v36 = vmul.f32 %v6119_v39, %v2497_v7  ;;  %v4445_v55 = vsel %vm312_vm0, %v9097_v18, %v5751_v48  ;;  %v4446_v23 = vsel %vm312_vm0, %v9126_v9, %v5752_v45  ;;  %v9135_v62 = vsel %vm707_vm4, %v4324_v10, %v9108_v12 }
 0x390   : > { %v3130_v1 = vsel %vm916_vm5, %v3098_v4, %v5792_v33  ;;  %v4328_v56 = vsel %vm707_vm4, %v9108_v12, %v4327_v47  ;;  %v2808_v24 = vsel %vm530_vm3, %v2806_v26, %v2807_v21  ;;  %v4477_v8 = vsel %vm916_vm5, %v4445_v55, %v5747_v57 }
 0x391   : > { %v2569_v16 = vadd.f32 %v6121_v22, %v2533_v36  ;;  %v3154_v58 = vpack.c.bf16 %v3130_v1, %v3129_v14  ;;  %v5983_v27 = vpack.i.bf16 %v4328_v56, %v9135_v62  ;;  %v5671_v7 = vunpack.i.l.bf16 %v8836_v49 }
 0x392   : > { %v4478_v48 = vsel %vm916_vm5, %v4446_v23, %v5756_v44  ;;  %v2810_v10 = vsel %vm530_vm3, %v2807_v21, %v2809_v38  ;;  %v5958_v47 = vpack.i.bf16 %v2976_v46, %v8990_v2  ;;  %v2980_v36 = vrot.slane %v9012_v5, 2 }
 0x393   : > { %v2601_v45 = vmax.f32 %v2569_v16, 0.0  ;;  %4999 = vmatmul.msk.bf16.gmra.mxu3 %vm1503_vm6, %v3679_v51  ;;  %5024 = vmatmul.msk.bf16.gmra.mxu0 %vm1503_vm6, %v3154_v58  ;;  %v4504_v39 = vpack.c.bf16 %v4478_v48, %v4477_v8  ;;  %v5973_v3 = vpack.i.bf16 %v2810_v10, %v2808_v24  ;;  %v4151_v13 = vrot.slane %v4028_v53, 1 }
 0x394   : > { %v9160_v57 = vpop.permute.xlu1 %5769  ;;  %v3334_v51 = vrot.slane %v9149_v35, 1  ;;  %v5672_v44 = vunpack.i.h.bf16 %v8836_v49  ;;  %v5686_v46 = vunpack.i.l.bf16 %v8886_v15  ;;  %v3619_v5 = vsel %vm312_vm0, %v8801_v28, %v5671_v7  ;;  %v9180_v26 = vld [vmem:[#allocation3 + $0x180] sm:$0xff] }
 0x395   : > { %2634 = vst.msk [vmem:[#allocation3 + $0x189] sm:$0xff] %vm312_vm0, %v2601_v45  ;;  %5984 = vrot.lane.b32.xlu1 %v5983_v27, %s6149_s8  ;;  %v9168_v2 = vpop.permute.xlu2 %5814  ;;  %5974 = vrot.lane.b32.xlu0 %v5973_v3, %s6148_s26  ;;  %v2981_v53 = vsel %vm707_vm4, %v9054_v30, %v2980_v36  ;;  %v5667_v55 = vunpack.i.h.bf16 %v8700_v20  ;;  %v4152_v49 = vsel %vm530_vm3, %v2807_v21, %v4151_v13  ;;  %v5777_v4 = vunpack.i.h.bf16 %v9064_v59  ;;  %v5780_v23 = vpop.permute.xlu0 %5779  ;;  %v6122_v36 = vld [vmem:[#allocation3 + $0xc8] sm:$0xff] }
 0x396   : > { %5959 = vrot.lane.b32.xlu2 %v5958_v47, %s6149_s8  ;;  %5044 = vmatmul.msk.bf16.gmra.mxu1 %vm1503_vm6, %v4504_v39  ;;  %v3335_v33 = vsel %vm530_vm3, %v2807_v21, %v3334_v51  ;;  %v3620_v15 = vsel %vm312_vm0, %v8797_v40, %v5672_v44  ;;  %v5988_v14 = vpack.i.bf16 %v2981_v53, %v9078_v54  ;;  %v5776_v20 = vunpack.i.l.bf16 %v9064_v59  ;;  %v6123_v51 = vld [vmem:[#allocation3 + $0xc0] sm:$0xff] }
 0x397   : > { %v3651_v28 = vsel %vm916_vm5, %v3619_v5, %v5667_v55  ;;  %v3652_v30 = vsel %vm916_vm5, %v3620_v15, %v5686_v46  ;;  %v5978_v22 = vpack.i.bf16 %v4152_v49, %v2808_v24  ;;  %v5993_v16 = vpack.i.bf16 %v3335_v33, %v2808_v24 }
 0x398   : > { %v3336_v58 = vrot.slane %v9180_v26, 1  ;;  %v5772_v7 = vunpack.i.h.bf16 %v9160_v57  ;;  %v5781_v45 = vunpack.i.l.bf16 %v5780_v23  ;;  %v3510_v59 = vrot.slane %v9149_v35, 2 }
 0x399   : > { %v3680_v39 = vpack.c.bf16 %v3652_v30, %v3651_v28  ;;  %v4448_v3 = vsel %vm312_vm0, %v6122_v36, %v5777_v4  ;;  %v4447_v46 = vsel %vm312_vm0, %v6123_v51, %v5776_v20  ;;  %v5791_v5 = vunpack.i.l.bf16 %v9113_v50 }
 0x39a   : > { %v5782_v53 = vunpack.i.h.bf16 %v5780_v23  ;;  %v4479_v49 = vsel %vm916_vm5, %v4447_v46, %v5772_v7  ;;  %v4480_v33 = vsel %vm916_vm5, %v4448_v3, %v5781_v45  ;;  %v3511_v15 = vsel %vm707_vm4, %v9108_v12, %v3510_v59 }
 0x39b   : > { %v4505_v23 = vpack.c.bf16 %v4480_v33, %v4479_v49  ;;  %v5998_v20 = vpack.i.bf16 %v3511_v15, %v9135_v62  ;;  %v5766_v45 = vunpack.i.l.bf16 %v9019_v41  ;;  %v2985_v46 = vrot.slane %v9123_v60, 2  ;;  %v9244_v49 = vld [vmem:[#allocation3 + $0xe0] sm:$0xff]  ;;  %v9248_v33 = vld [vmem:[#allocation3 + $0xd8] sm:$0xff] }
 0x39c   : > { %v5785_v1 = vpop.permute.xlu1 %5784  ;;  %v9189_v21 = vld [vmem:[#allocation3 + $0x188] sm:$0xff]  ;;  %v3212_v56 = vld [vmem:[#allocation3 + $0x190] sm:$0x3] }
 0x39d   : > { %v4031_v40 = vld [vmem:[#allocation3 + $0x190] sm:$0x3]  ;;  %5989 = vrot.lane.b32.xlu1 %v5988_v14, %s6149_s8  ;;  %v5787_v27 = vunpack.i.h.bf16 %v5785_v1  ;;  %v5786_v38 = vunpack.i.l.bf16 %v5785_v1  ;;  %v3337_v54 = vrot.slane %v9189_v21, 1  ;;  %v3339_v8 = vrot.slane %v3212_v56, 1  ;;  %5979 = vrot.lane.b32.xlu0 %v5978_v22, %s6148_s26 }
 0x39e   : > { %5994 = vrot.lane.b32.xlu2 %v5993_v16, %s6148_s26  ;;  %v4156_v24 = vrot.slane %v4031_v40, 1  ;;  %v9198_v48 = vpop.permute.xlu2 %5829  ;;  %v4330_v16 = vrot.slane %v9189_v21, 2  ;;  %v3515_v1 = vrot.slane %v3212_v56, 2 }
 0x39f   : > { %v3338_v10 = vsel %vm530_vm3, %v3336_v58, %v3337_v54  ;;  %v3340_v47 = vsel %vm530_vm3, %v3337_v54, %v3339_v8  ;;  %v3628_v13 = vsel %vm312_vm0, %v6122_v36, %v5787_v27  ;;  %v3627_v44 = vsel %vm312_vm0, %v6123_v51, %v5786_v38 }
 0x3a0   : > { %v4157_v35 = vsel %vm530_vm3, %v3337_v54, %v4156_v24  ;;  %v6013_v55 = vpack.i.bf16 %v3340_v47, %v3338_v10  ;;  %v9214_v14 = vsel %vm916_vm5, %v3627_v44, %v5782_v53  ;;  %v9217_v28 = vsel %vm916_vm5, %v3628_v13, %v5791_v5 }
 0x3a1   : > { %v6003_v4 = vpack.i.bf16 %v4157_v35, %v3338_v10  ;;  %v3684_v50 = vpack.c.bf16 %v9217_v28, %v9214_v14  ;;  %v4332_v58 = vrot.slane %v4031_v40, 2  ;;  %v4329_v38 = vrot.slane %v9180_v26, 2 }
 0x3a2   : > { %v5767_v54 = vunpack.i.h.bf16 %v9019_v41  ;;  %v3516_v7 = vsel %vm707_vm4, %v4330_v16, %v3515_v1  ;;  %v3099_v13 = vsel %vm312_vm0, %v6123_v51, %v5766_v45  ;;  %v9280_v45 = vld [vmem:[#allocation3 + $0xf0] sm:$0xff]  ;;  %v5817_v28 = vunpack.i.h.bf16 %v9168_v2 }
 0x3a3   : > { %5000 = vmatmul.msk.bf16.gmra.mxu3 %vm1503_vm6, %v3680_v39  ;;  %v4331_v8 = vsel %vm707_vm4, %v4329_v38, %v4330_v16  ;;  %v4333_v56 = vsel %vm707_vm4, %v4330_v16, %v4332_v58  ;;  %v5831_v38 = vunpack.i.l.bf16 %v9198_v48 }
 0x3a4   : > { %v5805_v30 = vpop.permute.xlu1 %5804  ;;  %v6018_v59 = vpack.i.bf16 %v3516_v7, %v4331_v8  ;;  %v3100_v24 = vsel %vm312_vm0, %v6122_v36, %v5767_v54  ;;  %v6008_v10 = vpack.i.bf16 %v4333_v56, %v4331_v8 }
 0x3a5   : > { %6014 = vrot.lane.b32.xlu1 %v6013_v55, %s6148_s26  ;;  %v9223_v22 = vpop.permute.xlu0 %5794  ;;  %5999 = vrot.lane.b32.xlu0 %v5998_v20, %s6149_s8  ;;  %v5807_v5 = vunpack.i.h.bf16 %v5805_v30  ;;  %v5806_v41 = vunpack.i.l.bf16 %v5805_v30  ;;  %v4451_v56 = vsel %vm312_vm0, %v9280_v45, %v5831_v38 }
 0x3a6   : > { %6004 = vrot.lane.b32.xlu2 %v6003_v4, %s6148_s26  ;;  %5045 = vmatmul.msk.bf16.gmra.mxu1 %vm1503_vm6, %v4505_v23  ;;  %v9229_v27 = vpop.permute.xlu2 %5849  ;;  %v2986_v23 = vsel %vm707_vm4, %v9108_v12, %v2985_v46  ;;  %v5832_v12 = vunpack.i.h.bf16 %v9198_v48 }
 0x3a7   : > { %v6023_v16 = vpack.i.bf16 %v2986_v23, %v9135_v62  ;;  %v9276_v62 = vld [vmem:[#allocation3 + $0xf8] sm:$0xff] }
 0x3a8   : > { %v4452_v7 = vsel %vm312_vm0, %v9276_v62, %v5832_v12  ;;  %v9313_v23 = vld [vmem:[#allocation3 + $0x198] sm:$0xff] }
 0x3a9   : > { %v4158_v12 = vrot.slane %v9313_v23, 1 }
 0x3ac   : > { %v5810_v40 = vpop.permute.xlu1 %5809 }
 0x3ad   : > { %v5812_v47 = vunpack.i.h.bf16 %v5810_v40  ;;  %v5811_v39 = vunpack.i.l.bf16 %v5810_v40  ;;  %v5800_v3 = vpop.permute.xlu0 %5799  ;;  %6009 = vrot.lane.b32.xlu0 %v6008_v10, %s6149_s8  ;;  %v5797_v10 = vunpack.i.h.bf16 %v9223_v22 }
 0x3ae   : > { %6019 = vrot.lane.b32.xlu2 %v6018_v59, %s6149_s8  ;;  %v5802_v44 = vunpack.i.h.bf16 %v5800_v3  ;;  %v5801_v35 = vunpack.i.l.bf16 %v5800_v3  ;;  %v9252_v60 = vpop.permute.xlu2 %5854 }
 0x3af   : > { %v3131_v53 = vsel %vm916_vm5, %v3099_v13, %v5811_v39  ;;  %v3132_v36 = vsel %vm916_vm5, %v3100_v24, %v5812_v47  ;;  %v5796_v47 = vunpack.i.l.bf16 %v9223_v22  ;;  %v3102_v46 = vsel %vm312_vm0, %v9244_v49, %v5797_v10 }
 0x3b0   : > { %v3155_v55 = vpack.c.bf16 %v3132_v36, %v3131_v53  ;;  %v4450_v51 = vsel %vm312_vm0, %v9244_v49, %v5802_v44  ;;  %v4449_v15 = vsel %vm312_vm0, %v9248_v33, %v5801_v35  ;;  %v5762_v22 = vunpack.i.h.bf16 %v9140_v43  ;;  %v9302_v53 = vpop.f32.mrf.mxu0 }
 0x3b1   : > { %v4481_v4 = vsel %vm916_vm5, %v4449_v15, %v5806_v41  ;;  %v4482_v30 = vsel %vm916_vm5, %v4450_v51, %v5807_v5  ;;  %v3101_v5 = vsel %vm312_vm0, %v9248_v33, %v5796_v47  ;;  %v5771_v51 = vunpack.i.l.bf16 %v9160_v57 }
 0x3b2   : > { %5025 = vmatmul.msk.bf16.gmra.mxu0 %vm1503_vm6, %v3155_v55  ;;  %v4506_v20 = vpack.c.bf16 %v4482_v30, %v4481_v4  ;;  %v3626_v30 = vsel %vm312_vm0, %v9126_v9, %v5762_v22 }
 0x3b3   : > { %5001 = vmatmul.msk.bf16.gmra.mxu3 %vm1503_vm6, %v3681_v34 }
 0x3b4   : > { %v9268_v58 = vpop.permute.xlu1 %5824 }
 0x3b5   : > { %v9264_v1 = vpop.permute.xlu0 %5819  ;;  %6024 = vrot.lane.b32.xlu0 %v6023_v16, %s6149_s8  ;;  %v9317_v16 = vld [vmem:[#allocation3 + $0x1a8] sm:$0x3] }
 0x3b6   : > { %5046 = vmatmul.msk.bf16.gmra.mxu1 %vm1503_vm6, %v4506_v20  ;;  %v9272_v54 = vpop.permute.xlu2 %5864  ;;  %v9315_v20 = vld [vmem:[#allocation3 + $0x1a0] sm:$0xff]  ;;  %v4161_v38 = vrot.slane %v9317_v16, 1 }
 0x3b7   : > { %v4159_v57 = vrot.slane %v9315_v20, 1 }
 0x3b9   : > { %v4162_v10 = vsel %vm530_vm3, %v4159_v57, %v4161_v38 }
 0x3bc   : > { %v9284_v59 = vpop.permute.xlu1 %5844 }
 0x3bd   : > { %v5835_v61 = vpop.permute.xlu0 %5834 }
 0x3be   : > { %v5837_v34 = vunpack.i.h.bf16 %v5835_v61  ;;  %v5836_v8 = vunpack.i.l.bf16 %v5835_v61  ;;  %v5870_v3 = vpop.permute.xlu2 %5869  ;;  %v5757_v61 = vunpack.i.h.bf16 %v8974_v6  ;;  %v4160_v6 = vsel %vm530_vm3, %v4158_v12, %v4159_v57 }
 0x3bf   : > { %v5872_v22 = vunpack.i.h.bf16 %v5870_v3 }
 0x3c0   : > { %v4483_v48 = vsel %vm916_vm5, %v4451_v56, %v5836_v8  ;;  %v4484_v40 = vsel %vm916_vm5, %v4452_v7, %v5837_v34  ;;  %v9288_v24 = vpop.f32.mrf.mxu1  ;;  %v3658_v34 = vsel %vm916_vm5, %v3626_v30, %v5771_v51  ;;  %v9328_v8 = vld [vmem:[#allocation3 + $0x110] sm:$0xff]  ;;  %v9332_v56 = vld [vmem:[#allocation3 + $0x108] sm:$0xff] }
 0x3c1   : > { %v4507_v39 = vpack.c.bf16 %v4484_v40, %v4483_v48 }
 0x3c3   : > { %5002 = vmatmul.msk.bf16.gmra.mxu3 %vm1503_vm6, %v3682_v0  ;;  %v5761_v0 = vunpack.i.l.bf16 %v9140_v43 }
 0x3c4   : > { %v5860_v41 = vpop.permute.xlu1 %5859 }
 0x3c5   : > { %v5840_v13 = vpop.permute.xlu0 %5839  ;;  %v5862_v15 = vunpack.i.h.bf16 %v5860_v41  ;;  %v5861_v4 = vunpack.i.l.bf16 %v5860_v41  ;;  %v3625_v43 = vsel %vm312_vm0, %v9097_v18, %v5761_v0  ;;  %v9347_v41 = vpop.f32.mrf.mxu0 }
 0x3c6   : > { %v5842_v44 = vunpack.i.h.bf16 %v5840_v13  ;;  %v5841_v35 = vunpack.i.l.bf16 %v5840_v13  ;;  %5047 = vmatmul.msk.bf16.gmra.mxu1 %vm1503_vm6, %v4507_v39  ;;  %v9336_v48 = vpop.permute.xlu2 %5904  ;;  %v3657_v47 = vsel %vm916_vm5, %v3625_v43, %v5757_v61  ;;  %v5867_v39 = vunpack.i.h.bf16 %v9272_v54 }
 0x3c7   : > { %v4454_v7 = vsel %vm312_vm0, %v9328_v8, %v5862_v15  ;;  %v4453_v18 = vsel %vm312_vm0, %v9332_v56, %v5861_v4  ;;  %v5866_v13 = vunpack.i.l.bf16 %v9272_v54 }
 0x3c8   : > { %v3133_v32 = vsel %vm916_vm5, %v3101_v5, %v5841_v35  ;;  %v3134_v52 = vsel %vm916_vm5, %v3102_v46, %v5842_v44  ;;  %v9307_v55 = vpop.f32.mrf.mxu1  ;;  %v3683_v44 = vpack.c.bf16 %v3658_v34, %v3657_v47  ;;  %v5827_v35 = vunpack.i.h.bf16 %v9268_v58 }
 0x3c9   : > { %v3156_v36 = vpack.c.bf16 %v3134_v52, %v3133_v32  ;;  %v5826_v46 = vunpack.i.l.bf16 %v9268_v58  ;;  %v6028_v5 = vpack.i.bf16 %v4162_v10, %v4160_v6  ;;  %v5871_v32 = vunpack.i.l.bf16 %v5870_v3 }
 0x3ca   : > { %v4485_v52 = vsel %vm916_vm5, %v4453_v18, %v5866_v13  ;;  %v4486_v0 = vsel %vm916_vm5, %v4454_v7, %v5867_v39  ;;  %v3104_v54 = vsel %vm312_vm0, %v9276_v62, %v5827_v35  ;;  %v5857_v7 = vunpack.i.h.bf16 %v9252_v60 }
 0x3cb   : > { %5026 = vmatmul.msk.bf16.gmra.mxu0 %vm1503_vm6, %v3156_v36  ;;  %6029 = vrot.lane.b32.xlu1 %v6028_v5, %s6148_s26  ;;  %v3103_v58 = vsel %vm312_vm0, %v9280_v45, %v5826_v46  ;;  %v4508_v51 = vpack.c.bf16 %v4486_v0, %v4485_v52  ;;  %v3136_v15 = vsel %vm916_vm5, %v3104_v54, %v5872_v22  ;;  %v5856_v18 = vunpack.i.l.bf16 %v9252_v60 }
 0x3cc   : > { %v9338_v40 = vpop.permute.xlu1 %5879  ;;  %v3135_v3 = vsel %vm916_vm5, %v3103_v58, %v5871_v32  ;;  %v3106_v52 = vsel %vm312_vm0, %v9328_v8, %v5857_v7  ;;  %v5816_v58 = vunpack.i.l.bf16 %v9168_v2  ;;  %v4335_v7 = vrot.slane %v9315_v20, 2 }
 0x3cd   : > { %v9326_v9 = vpop.permute.xlu0 %5874  ;;  %v3157_v43 = vpack.c.bf16 %v3136_v15, %v3135_v3  ;;  %v9367_v38 = vpop.f32.mrf.mxu0  ;;  %v5822_v15 = vunpack.i.h.bf16 %v9264_v1  ;;  %v5821_v3 = vunpack.i.l.bf16 %v9264_v1  ;;  %v4337_v2 = vrot.slane %v9317_v16, 2 }
 0x3d0   : > { %v5920_v12 = vpop.permute.xlu2 %5919 }
 0x3d1   : > { %v9351_v36 = vpop.f32.mrf.mxu1 }
 0x3d3   : > { %5003 = vmatmul.msk.bf16.gmra.mxu3 %vm1503_vm6, %v3683_v44 }
 0x3d5   : > { %v5895_v4 = vpop.permute.xlu1 %5894  ;;  %v9389_v54 = vpop.f32.mrf.mxu0 }
 0x3d6   : > { %5048 = vmatmul.msk.bf16.gmra.mxu1 %vm1503_vm6, %v4508_v51  ;;  %v9362_v30 = vpop.permute.xlu0 %5884  ;;  %v5897_v47 = vunpack.i.h.bf16 %v5895_v4  ;;  %v5896_v39 = vunpack.i.l.bf16 %v5895_v4 }
 0x3d8   : > { %v9371_v35 = vpop.permute.xlu2 %5939 }
 0x3d9   : > { %v9364_v57 = vpop.f32.mrf.mxu1 }
 0x3db   : > { %5027 = vmatmul.msk.bf16.gmra.mxu0 %vm1503_vm6, %v3157_v43  ;;  %v3630_v43 = vsel %vm312_vm0, %v9244_v49, %v5817_v28  ;;  %v5846_v28 = vunpack.i.l.bf16 %v9284_v59 }
 0x3dd   : > { %v5900_v61 = vpop.permute.xlu1 %5899 }
 0x3de   : > { %v5890_v34 = vpop.permute.xlu0 %5889  ;;  %v5902_v13 = vunpack.i.h.bf16 %v5900_v61  ;;  %v5901_v44 = vunpack.i.l.bf16 %v5900_v61  ;;  %v3629_v61 = vsel %vm312_vm0, %v9248_v33, %v5816_v58  ;;  %v4338_v33 = vsel %vm707_vm4, %v4335_v7, %v4337_v2 }
 0x3df   : > { %v5892_v6 = vunpack.i.h.bf16 %v5890_v34  ;;  %v5891_v10 = vunpack.i.l.bf16 %v5890_v34  ;;  %v4334_v34 = vrot.slane %v9313_v23, 2  ;;  %v5887_v58 = vunpack.i.h.bf16 %v9362_v30 }
 0x3e0   : > { %v3138_v14 = vsel %vm916_vm5, %v3106_v52, %v5902_v13  ;;  %v9412_v1 = vpop.permute.xlu2 %5944  ;;  %v3631_v2 = vsel %vm312_vm0, %v9280_v45, %v5846_v28 }
 0x3e1   : > { %v4456_v46 = vsel %vm312_vm0, %v8829_v11, %v5892_v6  ;;  %v4455_v5 = vsel %vm312_vm0, %v8822_v37, %v5891_v10  ;;  %v3105_v11 = vsel %vm312_vm0, %v9332_v56, %v5856_v18  ;;  %v3661_v18 = vsel %vm916_vm5, %v3629_v61, %v5821_v3 }
 0x3e2   : > { %v9381_v60 = vpop.f32.mrf.mxu1  ;;  %v4487_v22 = vsel %vm916_vm5, %v4455_v5, %v5896_v39  ;;  %v4488_v32 = vsel %vm916_vm5, %v4456_v46, %v5897_v47  ;;  %v3137_v37 = vsel %vm916_vm5, %v3105_v11, %v5901_v44  ;;  %v3662_v6 = vsel %vm916_vm5, %v3630_v43, %v5822_v15  ;;  %v9420_v46 = vpop.f32.mrf.mxu0 }
 0x3e3   : > { %5004 = vmatmul.msk.bf16.gmra.mxu3 %vm1503_vm6, %v3684_v50  ;;  %v4509_v0 = vpack.c.bf16 %v4488_v32, %v4487_v22  ;;  %v3158_v4 = vpack.c.bf16 %v3138_v14, %v3137_v37  ;;  %v5922_v10 = vunpack.i.h.bf16 %v5920_v12  ;;  %v5921_v47 = vunpack.i.l.bf16 %v5920_v12 }
 0x3e4   : > { %v4336_v39 = vsel %vm707_vm4, %v4334_v34, %v4335_v7  ;;  %v3685_v5 = vpack.c.bf16 %v3662_v6, %v3661_v18  ;;  %v5847_v14 = vunpack.i.h.bf16 %v9284_v59  ;;  %v5886_v15 = vunpack.i.l.bf16 %v9362_v30  ;;  %v9441_v34 = vld [vmem:[%s9840_s5] ss:$0 sm:$0xff]  ;;  %v9449_v6 = vld [vmem:[#allocation3 + $0x128] sm:$0xff] }
 0x3e5   : > { %v6033_v44 = vpack.i.bf16 %v4338_v33, %v4336_v39  ;;  %v4458_v12 = vsel %vm312_vm0, %v8926_v29, %v5922_v10  ;;  %v4457_v52 = vsel %vm312_vm0, %v8915_v31, %v5921_v47  ;;  %v9453_v10 = vld [vmem:[#allocation3 + $0x120] sm:$0xff] }
 0x3e6   : > { %5049 = vmatmul.msk.bf16.gmra.mxu1 %vm1503_vm6, %v4509_v0  ;;  %v9398_v51 = vpop.permute.xlu0 %5909  ;;  %v3632_v59 = vsel %vm312_vm0, %v9276_v62, %v5847_v14  ;;  %v3107_v47 = vsel %vm312_vm0, %v9453_v10, %v5886_v15  ;;  %v9461_v62 = vld [vmem:[%s9841_s6] ss:$0 sm:$0xff] }
 0x3e7   : > { %v9395_v50 = vpop.permute.xlu1 %5914  ;;  %6034 = vrot.lane.b32.xlu2 %v6033_v44, %s6149_s8 }
 0x3e8   : > { %v5955_v29 = vpop.permute.xlu2 %5954 }
 0x3e9   : > { %v5956_v15 = vunpack.i.l.bf16 %v5955_v29 }
 0x3ea   : > { %v9414_v49 = vpop.f32.mrf.mxu1  ;;  %v9447_v18 = vpop.f32.mrf.mxu0 }
 0x3eb   : > { %5028 = vmatmul.msk.bf16.gmra.mxu0 %vm1503_vm6, %v3158_v4 }
 0x3ee   : > { %v5925_v16 = vpop.permute.xlu0 %5924 }
 0x3ef   : > { %v9418_v13 = vpop.permute.xlu1 %5934  ;;  %v5927_v22 = vunpack.i.h.bf16 %v5925_v16  ;;  %v5926_v32 = vunpack.i.l.bf16 %v5925_v16 }
 0x3f1   : > { %v4489_v11 = vsel %vm916_vm5, %v4457_v52, %v5926_v32  ;;  %v4490_v0 = vsel %vm916_vm5, %v4458_v12, %v5927_v22  ;;  %v5851_v22 = vunpack.i.l.bf16 %v9229_v27 }
 0x3f2   : > { %v4510_v37 = vpack.c.bf16 %v4490_v0, %v4489_v11  ;;  %v9436_v43 = vpop.f32.mrf.mxu1 }
 0x3f3   : > { %5005 = vmatmul.msk.bf16.gmra.mxu3 %vm1503_vm6, %v3685_v5  ;;  %v5852_v5 = vunpack.i.h.bf16 %v9229_v27  ;;  %v3663_v11 = vsel %vm916_vm5, %v3631_v2, %v5851_v22  ;;  %v5877_v22 = vunpack.i.h.bf16 %v9326_v9 }
 0x3f5   : > { %v3664_v0 = vsel %vm916_vm5, %v3632_v59, %v5852_v5  ;;  %v5960_v59 = vpop.permute.xlu2 %5959 }
 0x3f6   : > { %v3761_v3 = vpop.f32.mrf.mxu3  ;;  %5050 = vmatmul.msk.bf16.gmra.mxu1 %vm1503_vm6, %v4510_v37  ;;  %v5930_v61 = vpop.permute.xlu0 %5929 }
 0x3f7   : > { %v5950_v31 = vpop.permute.xlu1 %5949  ;;  %v3907_v4 = vadd.f32 %v9274_v17, %v3761_v3  ;;  %v5932_v7 = vunpack.i.h.bf16 %v5930_v61  ;;  %v5931_v30 = vunpack.i.l.bf16 %v5930_v61  ;;  %v3108_v17 = vsel %vm312_vm0, %v9449_v6, %v5887_v58  ;;  %v10157_v3 = vld [vmem:[#allocation8_spill] sm:$0xff] }
 0x3f8   : > { %v5952_v45 = vunpack.i.h.bf16 %v5950_v31  ;;  %v5951_v33 = vunpack.i.l.bf16 %v5950_v31  ;;  %v5957_v58 = vunpack.i.h.bf16 %v5955_v29  ;;  %v3686_v61 = vpack.c.bf16 %v3664_v0, %v3663_v11  ;;  %v9511_v11 = vld [vmem:[#allocation3 + $0x138] sm:$0xff] }
 0x3f9   : > { %v4663_v39 = vadd.f32 %v9288_v24, %v3907_v4  ;;  %v3139_v44 = vsel %vm916_vm5, %v3107_v47, %v5931_v30  ;;  %v3140_v16 = vsel %vm916_vm5, %v3108_v17, %v5932_v7  ;;  %v9495_v17 = vpop.f32.mrf.mxu0  ;;  %v5917_v47 = vunpack.i.h.bf16 %v9395_v50 }
 0x3fa   : > { %v3159_v32 = vpack.c.bf16 %v3140_v16, %v3139_v44  ;;  %v4460_v37 = vsel %vm312_vm0, %v9007_v63, %v5952_v45  ;;  %v4459_v14 = vsel %vm312_vm0, %v8999_v19, %v5951_v33  ;;  %v9489_v30 = vpop.f32.mrf.mxu1  ;;  %v5962_v33 = vunpack.i.h.bf16 %v5960_v59 }
 0x3fb   : > { %v4699_v12 = vmul.f32 %v9441_v34, %v4663_v39  ;;  %v4491_v29 = vsel %vm916_vm5, %v4459_v14, %v5956_v15  ;;  %v4492_v2 = vsel %vm916_vm5, %v4460_v37, %v5957_v58  ;;  %v5916_v39 = vunpack.i.l.bf16 %v9395_v50  ;;  %v9507_v50 = vld [vmem:[#allocation3 + $0x140] sm:$0xff]  ;;  %v10158_v37 = vld [vmem:[#allocation9_spill] sm:$0xff] }
 0x3fc   : > { %5029 = vmatmul.msk.bf16.gmra.mxu0 %vm1503_vm6, %v3159_v32  ;;  %v5961_v44 = vunpack.i.l.bf16 %v5960_v59  ;;  %v4511_v16 = vpack.c.bf16 %v4492_v2, %v4491_v29  ;;  %v5876_v32 = vunpack.i.l.bf16 %v9326_v9  ;;  %v5882_v15 = vunpack.i.h.bf16 %v9338_v40 }
 0x3fd   : > { %v4735_v24 = vadd.f32 %v9461_v62, %v4699_v12  ;;  %v3109_v0 = vsel %vm312_vm0, %v9511_v11, %v5916_v39 }
 0x3fe   : > { %v3763_v52 = vpop.f32.mrf.mxu3  ;;  %v9480_v4 = vpop.permute.xlu0 %5964  ;;  %v3633_v59 = vsel %vm312_vm0, %v9332_v56, %v5876_v32  ;;  %v10159_v56 = vld [vmem:[#allocation6_spill] sm:$0xff] }
 0x3ff   : > { %v9476_v27 = vpop.permute.xlu1 %5969  ;;  %v3909_v28 = vadd.f32 %v9302_v53, %v3763_v52  ;;  %v4767_v31 = vadd.f32 %v4735_v24, %v10157_v3  ;;  %v3110_v52 = vsel %vm312_vm0, %v9507_v50, %v5917_v47  ;;  %v5881_v3 = vunpack.i.l.bf16 %v9338_v40 }
 0x400   : > { %v3142_v9 = vsel %vm916_vm5, %v3110_v52, %v5962_v33  ;;  %v5947_v52 = vunpack.i.h.bf16 %v9412_v1 }
 0x401   : > { %v4799_v7 = vmax.f32 %v4767_v31, 0.0  ;;  %v4664_v53 = vadd.f32 %v9307_v55, %v3909_v28  ;;  %v3141_v28 = vsel %vm916_vm5, %v3109_v0, %v5961_v44  ;;  %v9533_v2 = vpop.f32.mrf.mxu0 }
 0x402   : > { %v9530_v29 = vpop.f32.mrf.mxu1 }
 0x403   : > { %5006 = vmatmul.msk.bf16.gmra.mxu3 %vm1503_vm6, %v3686_v61  ;;  %4831 = vst.msk [vmem:[%s9487_s13] sm:$0xff] %vm312_vm0, %v4799_v7  ;;  %v4700_v45 = vmul.f32 %v9441_v34, %v4664_v53  ;;  %v3634_v61 = vsel %vm312_vm0, %v9328_v8, %v5877_v22  ;;  %v3160_v53 = vpack.c.bf16 %v3142_v9, %v3141_v28  ;;  %v9541_v22 = vpop.permute.xlu2 %5994 }
 0x404   : > { %v3665_v8 = vsel %vm916_vm5, %v3633_v59, %v5881_v3  ;;  %v3666_v47 = vsel %vm916_vm5, %v3634_v61, %v5882_v15 }
 0x405   : > { %v4736_v55 = vadd.f32 %v9461_v62, %v4700_v45 }
 0x406   : > { %v3766_v5 = vpop.f32.mrf.mxu3  ;;  %5051 = vmatmul.msk.bf16.gmra.mxu1 %vm1503_vm6, %v4511_v16 }
 0x407   : > { %v5985_v12 = vpop.permute.xlu1 %5984  ;;  %v3912_v24 = vadd.f32 %v9347_v41, %v3766_v5  ;;  %v4768_v14 = vadd.f32 %v4736_v55, %v10158_v37  ;;  %v9518_v58 = vpop.permute.xlu0 %5974  ;;  %v3687_v5 = vpack.c.bf16 %v3666_v47, %v3665_v8  ;;  %v3112_v8 = vsel %vm312_vm0, %v9007_v63, %v5947_v52 }
 0x408   : > { %v5987_v0 = vunpack.i.h.bf16 %v5985_v12  ;;  %v5986_v37 = vunpack.i.l.bf16 %v5985_v12  ;;  %v5911_v63 = vunpack.i.l.bf16 %v9398_v51 }
 0x409   : > { %v4665_v41 = vadd.f32 %v9351_v36, %v3912_v24  ;;  %v4800_v31 = vmax.f32 %v4768_v14, 0.0 }
 0x40b   : > { %v4701_v7 = vmul.f32 %v9441_v34, %v4665_v41  ;;  %4832 = vst.msk [vmem:[%s9487_s13 + $0x8] sm:$0xff] %vm312_vm0, %v4800_v31  ;;  %v9556_v31 = vpop.f32.mrf.mxu1 }
 0x40c   : > { %5030 = vmatmul.msk.bf16.gmra.mxu0 %vm1503_vm6, %v3160_v53 }
 0x40d   : > { %v4737_v36 = vadd.f32 %v9461_v62, %v4701_v7  ;;  %v10160_v7 = vld [vmem:[#allocation7_spill] sm:$0xff] }
 0x40e   : > { %v3768_v40 = vpop.f32.mrf.mxu3 }
 0x40f   : > { %v4769_v39 = vadd.f32 %v4737_v36, %v10159_v56  ;;  %v3914_v45 = vadd.f32 %v9367_v38, %v3768_v40  ;;  %v5990_v44 = vpop.permute.xlu1 %5989  ;;  %v5980_v16 = vpop.permute.xlu0 %5979  ;;  %v5946_v38 = vunpack.i.l.bf16 %v9412_v1  ;;  %v5907_v36 = vunpack.i.h.bf16 %v9336_v48 }
 0x410   : > { %v5982_v32 = vunpack.i.h.bf16 %v5980_v16  ;;  %v5981_v24 = vunpack.i.l.bf16 %v5980_v16  ;;  %v5992_v9 = vunpack.i.h.bf16 %v5990_v44  ;;  %v5991_v41 = vunpack.i.l.bf16 %v5990_v44  ;;  %v9566_v56 = vpop.f32.mrf.mxu0  ;;  %v6005_v16 = vpop.permute.xlu2 %6004 }
 0x411   : > { %v4801_v33 = vmax.f32 %v4769_v39, 0.0  ;;  %v4666_v55 = vadd.f32 %v9364_v57, %v3914_v45  ;;  %v5906_v40 = vunpack.i.l.bf16 %v9336_v48  ;;  %v3111_v47 = vsel %vm312_vm0, %v8999_v19, %v5946_v38 }
 0x412   : > { %v4462_v57 = vsel %vm312_vm0, %v9103_v42, %v5982_v32  ;;  %v4461_v28 = vsel %vm312_vm0, %v9092_v25, %v5981_v24  ;;  %v3143_v39 = vsel %vm916_vm5, %v3111_v47, %v5991_v41  ;;  %v3144_v45 = vsel %vm916_vm5, %v3112_v8, %v5992_v9 }
 0x413   : > { %4833 = vst.msk [vmem:[%s9487_s13 + $0x10] sm:$0xff] %vm312_vm0, %v4801_v33  ;;  %v4702_v14 = vmul.f32 %v9441_v34, %v4666_v55  ;;  %5007 = vmatmul.msk.bf16.gmra.mxu3 %vm1503_vm6, %v3687_v5  ;;  %v4493_v12 = vsel %vm916_vm5, %v4461_v28, %v5986_v37  ;;  %v4494_v3 = vsel %vm916_vm5, %v4462_v57, %v5987_v0  ;;  %v5912_v48 = vunpack.i.h.bf16 %v9398_v51 }
 0x414   : > { %v4512_v61 = vpack.c.bf16 %v4494_v3, %v4493_v12  ;;  %v3161_v55 = vpack.c.bf16 %v3144_v45, %v3143_v39  ;;  %v3636_v5 = vsel %vm312_vm0, %v9449_v6, %v5907_v36  ;;  %v3635_v32 = vsel %vm312_vm0, %v9453_v10, %v5906_v40  ;;  %v9589_v6 = vpop.f32.mrf.mxu1  ;;  %v10162_v39 = vld [vmem:[#allocation13_spill] sm:$0xff] }
 0x415   : > { %v4738_v15 = vadd.f32 %v9461_v62, %v4702_v14  ;;  %v3668_v52 = vsel %vm916_vm5, %v3636_v5, %v5912_v48  ;;  %v6007_v0 = vunpack.i.h.bf16 %v6005_v16  ;;  %v6006_v37 = vunpack.i.l.bf16 %v6005_v16  ;;  %v10161_v14 = vld [vmem:[#allocation12_spill] sm:$0xff] }
 0x416   : > { %v3771_v59 = vpop.f32.mrf.mxu3  ;;  %5052 = vmatmul.msk.bf16.gmra.mxu1 %vm1503_vm6, %v4512_v61  ;;  %v5937_v36 = vunpack.i.h.bf16 %v9418_v13  ;;  %v5936_v40 = vunpack.i.l.bf16 %v9418_v13  ;;  %v5976_v47 = vunpack.i.l.bf16 %v9518_v58 }
 0x417   : > { %v4770_v1 = vadd.f32 %v4738_v15, %v10160_v7  ;;  %v3917_v53 = vadd.f32 %v9389_v54, %v3771_v59  ;;  %v9571_v54 = vpop.permute.xlu0 %5999  ;;  %v4464_v61 = vsel %vm312_vm0, %v9189_v21, %v6007_v0  ;;  %v4463_v59 = vsel %vm312_vm0, %v9180_v26, %v6006_v37  ;;  %v10163_v37 = vld [vmem:[#allocation4_spill] sm:$0xff] }
 0x418   : > { %v9592_v15 = vpop.f32.mrf.mxu0  ;;  %v5977_v26 = vunpack.i.h.bf16 %v9518_v58  ;;  %v3637_v58 = vsel %vm312_vm0, %v9511_v11, %v5936_v40 }
 0x419   : > { %v4802_v33 = vmax.f32 %v4770_v1, 0.0  ;;  %v4667_v44 = vadd.f32 %v9381_v60, %v3917_v53  ;;  %v3667_v60 = vsel %vm916_vm5, %v3635_v32, %v5911_v63  ;;  %v5942_v32 = vunpack.i.h.bf16 %v9371_v35 }
 0x41a   : > { %v3688_v57 = vpack.c.bf16 %v3668_v52, %v3667_v60  ;;  %v3114_v5 = vsel %vm312_vm0, %v9103_v42, %v5977_v26 }
 0x41b   : > { %4834 = vst.msk [vmem:[%s9487_s13 + $0x18] sm:$0xff] %vm312_vm0, %v4802_v33  ;;  %v4703_v19 = vmul.f32 %v9441_v34, %v4667_v44 }
 0x41c   : > { %5031 = vmatmul.msk.bf16.gmra.mxu0 %vm1503_vm6, %v3161_v55  ;;  %v9615_v13 = vpop.f32.mrf.mxu1 }
 0x41d   : > { %v4739_v24 = vadd.f32 %v9461_v62, %v4703_v19  ;;  %v3638_v19 = vsel %vm312_vm0, %v9507_v50, %v5937_v36  ;;  %v5941_v50 = vunpack.i.l.bf16 %v9371_v35  ;;  %v6134_v36 = vld [vmem:[#allocation3 + $0x158] sm:$0xff] }
 0x41e   : > { %v3773_v51 = vpop.f32.mrf.mxu3  ;;  %v3670_v0 = vsel %vm916_vm5, %v3638_v19, %v5942_v32 }
 0x41f   : > { %v4771_v38 = vadd.f32 %v4739_v24, %v10161_v14  ;;  %v3919_v9 = vadd.f32 %v9420_v46, %v3773_v51  ;;  %v6010_v28 = vpop.permute.xlu0 %6009 }
 0x420   : > { %v6012_v12 = vunpack.i.h.bf16 %v6010_v28  ;;  %v6011_v3 = vunpack.i.l.bf16 %v6010_v28  ;;  %v9628_v24 = vpop.f32.mrf.mxu0 }
 0x421   : > { %v4803_v10 = vmax.f32 %v4771_v38, 0.0  ;;  %v4668_v41 = vadd.f32 %v9414_v49, %v3919_v9 }
 0x422   : > { %v4495_v7 = vsel %vm916_vm5, %v4463_v59, %v6011_v3  ;;  %v4496_v49 = vsel %vm916_vm5, %v4464_v61, %v6012_v12  ;;  %v5966_v61 = vunpack.i.l.bf16 %v9480_v4 }
 0x423   : > { %4835 = vst.msk [vmem:[%s9487_s13 + $0x20] sm:$0xff] %vm312_vm0, %v4803_v10  ;;  %v4704_v46 = vmul.f32 %v9441_v34, %v4668_v41  ;;  %5008 = vmatmul.msk.bf16.gmra.mxu3 %vm1503_vm6, %v3688_v57  ;;  %v4513_v1 = vpack.c.bf16 %v4496_v49, %v4495_v7 }
 0x424   : > { %v9643_v28 = vpop.f32.mrf.mxu1 }
 0x425   : > { %v4740_v53 = vadd.f32 %v9461_v62, %v4704_v46 }
 0x426   : > { %v3776_v8 = vpop.f32.mrf.mxu3  ;;  %5053 = vmatmul.msk.bf16.gmra.mxu1 %vm1503_vm6, %v4513_v1  ;;  %v5972_v1 = vunpack.i.h.bf16 %v9476_v27 }
 0x427   : > { %v4772_v45 = vadd.f32 %v4740_v53, %v10162_v39  ;;  %v3922_v33 = vadd.f32 %v9447_v18, %v3776_v8  ;;  %v6025_v48 = vpop.permute.xlu0 %6024  ;;  %v3113_v18 = vsel %vm312_vm0, %v9092_v25, %v5976_v47  ;;  %v3669_v25 = vsel %vm916_vm5, %v3637_v58, %v5941_v50  ;;  %v6135_v8 = vld [vmem:[#allocation3 + $0x150] sm:$0xff]  ;;  %v9660_v47 = vpop.permute.xlu1 %6014 }
 0x428   : > { %v6027_v16 = vunpack.i.h.bf16 %v6025_v48  ;;  %v6026_v55 = vunpack.i.l.bf16 %v6025_v48  ;;  %v3689_v57 = vpack.c.bf16 %v3670_v0, %v3669_v25  ;;  %v9646_v12 = vpop.f32.mrf.mxu0  ;;  %v5971_v53 = vunpack.i.l.bf16 %v9476_v27  ;;  %v9672_v58 = vpop.permute.xlu2 %6019 }
 0x429   : > { %v4804_v44 = vmax.f32 %v4772_v45, 0.0  ;;  %v4669_v63 = vadd.f32 %v9436_v43, %v3922_v33  ;;  %v3639_v26 = vsel %vm312_vm0, %v6135_v8, %v5966_v61  ;;  %v10165_v33 = vld [vmem:[#allocation10_spill] sm:$0xff]  ;;  %v5996_v25 = vunpack.i.l.bf16 %v9541_v22 }
 0x42a   : > { %v3145_v60 = vsel %vm916_vm5, %v3113_v18, %v6026_v55  ;;  %v3146_v11 = vsel %vm916_vm5, %v3114_v5, %v6027_v16  ;;  %v3671_v27 = vsel %vm916_vm5, %v3639_v26, %v5971_v53 }
 0x42b   : > { %4836 = vst.msk [vmem:[%s9487_s13 + $0x28] sm:$0xff] %vm312_vm0, %v4804_v44  ;;  %v4705_v43 = vmul.f32 %v9441_v34, %v4669_v63  ;;  %v3162_v52 = vpack.c.bf16 %v3146_v11, %v3145_v60 }
 0x42d   : > { %v4741_v42 = vadd.f32 %v9461_v62, %v4705_v43  ;;  %5032 = vmatmul.msk.bf16.gmra.mxu0 %vm1503_vm6, %v3162_v52 }
 0x42e   : > { %v3778_v51 = vpop.f32.mrf.mxu3 }
 0x42f   : > { %v4773_v14 = vadd.f32 %v4741_v42, %v10163_v37  ;;  %v3924_v35 = vadd.f32 %v9495_v17, %v3778_v51  ;;  %v5967_v17 = vunpack.i.h.bf16 %v9480_v4  ;;  %v5997_v51 = vunpack.i.h.bf16 %v9541_v22 }
 0x430   : > { %v9669_v63 = vpop.f32.mrf.mxu0 }
 0x431   : > { %v4805_v38 = vmax.f32 %v4773_v14, 0.0  ;;  %v4670_v9 = vadd.f32 %v9489_v30, %v3924_v35  ;;  %v10164_v30 = vld [vmem:[#allocation5_spill] sm:$0xff]  ;;  %v3640_v40 = vsel %vm312_vm0, %v6134_v36, %v5967_v17  ;;  %v6002_v14 = vunpack.i.h.bf16 %v9571_v54 }
 0x432   : > { %v3672_v45 = vsel %vm916_vm5, %v3640_v40, %v5972_v1  ;;  %v6001_v35 = vunpack.i.l.bf16 %v9571_v54 }
 0x433   : > { %4837 = vst.msk [vmem:[%s9487_s13 + $0x30] sm:$0xff] %vm312_vm0, %v4805_v38  ;;  %v4706_v10 = vmul.f32 %v9441_v34, %v4670_v9  ;;  %5009 = vmatmul.msk.bf16.gmra.mxu3 %vm1503_vm6, %v3689_v57  ;;  %v3690_v55 = vpack.c.bf16 %v3672_v45, %v3671_v27  ;;  %v6016_v27 = vunpack.i.l.bf16 %v9660_v47  ;;  %v10168_v45 = vld [vmem:[#allocation15_spill] sm:$0xff] }
 0x435   : > { %v4742_v41 = vadd.f32 %v9461_v62, %v4706_v10 }
 0x436   : > { %v3781_v3 = vpop.f32.mrf.mxu3 }
 0x437   : > { %v4774_v59 = vadd.f32 %v4742_v41, %v10164_v30  ;;  %v3927_v46 = vadd.f32 %v9533_v2, %v3781_v3  ;;  %v6136_v41 = vld [vmem:[#allocation3 + $0x170] sm:$0xff]  ;;  %v6137_v3 = vld [vmem:[#allocation3 + $0x168] sm:$0xff] }
 0x438   : > { %v9681_v52 = vpop.f32.mrf.mxu0  ;;  %v3641_v17 = vsel %vm312_vm0, %v6137_v3, %v5996_v25 }
 0x439   : > { %v4806_v7 = vmax.f32 %v4774_v59, 0.0  ;;  %v4671_v49 = vadd.f32 %v9530_v29, %v3927_v46  ;;  %v9663_v29 = vpop.f32.mrf.mxu1  ;;  %v3673_v61 = vsel %vm916_vm5, %v3641_v17, %v6001_v35  ;;  %v10167_v46 = vld [vmem:[#allocation14_spill] sm:$0xff] }
 0x43b   : > { %4838 = vst.msk [vmem:[%s9487_s13 + $0x38] sm:$0xff] %vm312_vm0, %v4806_v7  ;;  %v4707_v4 = vmul.f32 %v9441_v34, %v4671_v49 }
 0x43d   : > { %v4743_v2 = vadd.f32 %v9461_v62, %v4707_v4  ;;  %v6030_v43 = vpop.permute.xlu1 %6029 }
 0x43e   : > { %v3783_v39 = vpop.f32.mrf.mxu3  ;;  %v6032_v11 = vunpack.i.h.bf16 %v6030_v43 }
 0x43f   : > { %v4775_v44 = vadd.f32 %v4743_v2, %v10165_v33  ;;  %v3929_v48 = vadd.f32 %v9566_v56, %v3783_v39  ;;  %v10166_v56 = vld [vmem:[#allocation11_spill] sm:$0xff] }
 0x440   : > { %v4466_v38 = vsel %vm312_vm0, %v9315_v20, %v6032_v11  ;;  %v3943_v8 = vpop.f32.mrf.mxu0 }
 0x441   : > { %v4807_v19 = vmax.f32 %v4775_v44, 0.0  ;;  %v4672_v16 = vadd.f32 %v9556_v31, %v3929_v48  ;;  %v6031_v31 = vunpack.i.l.bf16 %v6030_v43  ;;  %v9683_v42 = vpop.f32.mrf.mxu1  ;;  %v6035_v57 = vpop.permute.xlu2 %6034  ;;  %v6021_v43 = vunpack.i.l.bf16 %v9672_v58 }
 0x442   : > { %v6037_v10 = vunpack.i.h.bf16 %v6035_v57  ;;  %v6036_v22 = vunpack.i.l.bf16 %v6035_v57 }
 0x443   : > { %4839 = vst.msk [vmem:[%s9487_s13 + $0x40] sm:$0xff] %vm312_vm0, %v4807_v19  ;;  %v4708_v5 = vmul.f32 %v9441_v34, %v4672_v16  ;;  %5010 = vmatmul.msk.bf16.gmra.mxu3 %vm1503_vm6, %v3690_v55  ;;  %v4465_v9 = vsel %vm312_vm0, %v9313_v23, %v6031_v31  ;;  %v6138_v55 = vld [vmem:[#allocation3 + $0x180] sm:$0xff] }
 0x444   : > { %v4498_v59 = vsel %vm916_vm5, %v4466_v38, %v6037_v10  ;;  %v4497_v23 = vsel %vm916_vm5, %v4465_v9, %v6036_v22 }
 0x445   : > { %v4744_v18 = vadd.f32 %v9461_v62, %v4708_v5  ;;  %v4514_v1 = vpack.c.bf16 %v4498_v59, %v4497_v23  ;;  %v3643_v5 = vsel %vm312_vm0, %v6138_v55, %v6016_v27  ;;  %v10172_v23 = vld [vmem:[#allocation17_spill] sm:$0xff] }
 0x446   : > { %v3786_v32 = vpop.f32.mrf.mxu3 }
 0x447   : > { %v4776_v50 = vadd.f32 %v4744_v18, %v10166_v56  ;;  %v3932_v60 = vadd.f32 %v9592_v15, %v3786_v32  ;;  %5054 = vmatmul.msk.bf16.gmra.mxu1 %vm1503_vm6, %v4514_v1  ;;  %v3675_v56 = vsel %vm916_vm5, %v3643_v5, %v6021_v43 }
 0x448   : > { %v3946_v19 = vpop.f32.mrf.mxu0 }
 0x449   : > { %v4808_v0 = vmax.f32 %v4776_v50, 0.0  ;;  %v4673_v37 = vadd.f32 %v9589_v6, %v3932_v60  ;;  %v3642_v6 = vsel %vm312_vm0, %v6136_v41, %v5997_v51  ;;  %v4620_v26 = vpop.f32.mrf.mxu1  ;;  %v10169_v50 = vld [vmem:[#allocation18_spill] sm:$0xff] }
 0x44a   : > { %v3674_v30 = vsel %vm916_vm5, %v3642_v6, %v6002_v14  ;;  %v10171_v6 = vld [vmem:[#allocation16_spill] sm:$0xff] }
 0x44b   : > { %4840 = vst.msk [vmem:[%s9487_s13 + $0x48] sm:$0xff] %vm312_vm0, %v4808_v0  ;;  %v4709_v15 = vmul.f32 %v9441_v34, %v4673_v37  ;;  %v3691_v53 = vpack.c.bf16 %v3674_v30, %v3673_v61 }
 0x44d   : > { %v4745_v54 = vadd.f32 %v9461_v62, %v4709_v15  ;;  %v10170_v15 = vld [vmem:[#allocation19_spill] sm:$0xff] }
 0x44e   : > { %v3788_v20 = vpop.f32.mrf.mxu3 }
 0x44f   : > { %v4777_v7 = vadd.f32 %v4745_v54, %v10167_v46  ;;  %v3934_v49 = vadd.f32 %v9628_v24, %v3788_v20  ;;  %v6017_v24 = vunpack.i.h.bf16 %v9660_v47  ;;  %v6022_v47 = vunpack.i.h.bf16 %v9672_v58 }
 0x450   : > { %v3948_v0 = vpop.f32.mrf.mxu0 }
 0x451   : > { %v4809_v36 = vmax.f32 %v4777_v7, 0.0  ;;  %v4674_v40 = vadd.f32 %v9615_v13, %v3934_v49  ;;  %v3644_v16 = vsel %vm312_vm0, %v9189_v21, %v6017_v24 }
 0x452   : > { %v3676_v21 = vsel %vm916_vm5, %v3644_v16, %v6022_v47 }
 0x453   : > { %4841 = vst.msk [vmem:[%s9487_s13 + $0x50] sm:$0xff] %vm312_vm0, %v4809_v36  ;;  %v4710_v4 = vmul.f32 %v9441_v34, %v4674_v40  ;;  %5011 = vmatmul.msk.bf16.gmra.mxu3 %vm1503_vm6, %v3691_v53  ;;  %v3692_v25 = vpack.c.bf16 %v3676_v21, %v3675_v56 }
 0x455   : > { %v4746_v2 = vadd.f32 %v9461_v62, %v4710_v4 }
 0x456   : > { %v3791_v39 = vpop.f32.mrf.mxu3 }
 0x457   : > { %v4778_v13 = vadd.f32 %v4746_v2, %v10168_v45  ;;  %v3937_v33 = vadd.f32 %v9646_v12, %v3791_v39  ;;  %v4623_v12 = vpop.f32.mrf.mxu1 }
 0x458   : > { %v3951_v10 = vpop.f32.mrf.mxu0 }
 0x459   : > { %v4810_v44 = vmax.f32 %v4778_v13, 0.0  ;;  %v4675_v48 = vadd.f32 %v9643_v28, %v3937_v33 }
 0x45b   : > { %4842 = vst.msk [vmem:[%s9487_s13 + $0x58] sm:$0xff] %vm312_vm0, %v4810_v44  ;;  %v4711_v18 = vmul.f32 %v9441_v34, %v4675_v48  ;;  %v10174_v48 = vld [vmem:[#allocation21_spill] sm:$0xff] }
 0x45d   : > { %v4747_v32 = vadd.f32 %v9461_v62, %v4711_v18 }
 0x45e   : > { %v3793_v28 = vpop.f32.mrf.mxu3 }
 0x45f   : > { %v4779_v60 = vadd.f32 %v4747_v32, %v10169_v50  ;;  %v3939_v11 = vadd.f32 %v9669_v63, %v3793_v28  ;;  %v4625_v14 = vpop.f32.mrf.mxu1  ;;  %v10175_v28 = vld [vmem:[#allocation26_spill] sm:$0xff] }
 0x460   : > { %v3953_v20 = vpop.f32.mrf.mxu0 }
 0x461   : > { %v4811_v31 = vmax.f32 %v4779_v60, 0.0  ;;  %v4676_v51 = vadd.f32 %v9663_v29, %v3939_v11 }
 0x463   : > { %4843 = vst.msk [vmem:[%s9487_s13 + $0x60] sm:$0xff] %vm312_vm0, %v4811_v31  ;;  %v4712_v58 = vmul.f32 %v9441_v34, %v4676_v51  ;;  %5012 = vmatmul.msk.bf16.gmra.mxu3 %vm1503_vm6, %v3692_v25 }
 0x465   : > { %v4748_v37 = vadd.f32 %v9461_v62, %v4712_v58  ;;  %v10176_v58 = vld [vmem:[#allocation27_spill] sm:$0xff] }
 0x466   : > { %v3796_v35 = vpop.f32.mrf.mxu3 }
 0x467   : > { %v4780_v38 = vadd.f32 %v4748_v37, %v10170_v15  ;;  %v3942_v63 = vadd.f32 %v9681_v52, %v3796_v35  ;;  %v4628_v54 = vpop.f32.mrf.mxu1 }
 0x468   : > { %v3956_v39 = vpop.f32.mrf.mxu0 }
 0x469   : > { %v4812_v9 = vmax.f32 %v4780_v38, 0.0  ;;  %v4677_v29 = vadd.f32 %v9683_v42, %v3942_v63 }
 0x46b   : > { %4844 = vst.msk [vmem:[%s9487_s13 + $0x68] sm:$0xff] %vm312_vm0, %v4812_v9  ;;  %v4713_v57 = vmul.f32 %v9441_v34, %v4677_v29 }
 0x46d   : > { %v4749_v22 = vadd.f32 %v9461_v62, %v4713_v57  ;;  %v10177_v57 = vld [vmem:[#allocation23_spill] sm:$0xff] }
 0x46e   : > { %v3798_v41 = vpop.f32.mrf.mxu3 }
 0x46f   : > { %v4781_v3 = vadd.f32 %v4749_v22, %v10171_v6  ;;  %v3944_v17 = vadd.f32 %v3943_v8, %v3798_v41  ;;  %v4630_v53 = vpop.f32.mrf.mxu1 }
 0x470   : > { %v3958_v18 = vpop.f32.mrf.mxu0 }
 0x471   : > { %v4813_v61 = vmax.f32 %v4781_v3, 0.0  ;;  %v4678_v30 = vadd.f32 %v4620_v26, %v3944_v17  ;;  %v10173_v26 = vld [vmem:[#allocation20_spill] sm:$0xff] }
 0x473   : > { %4845 = vst.msk [vmem:[%s9487_s13 + $0x70] sm:$0xff] %vm312_vm0, %v4813_v61  ;;  %v4714_v52 = vmul.f32 %v9441_v34, %v4678_v30  ;;  %v10178_v30 = vld [vmem:[#allocation24_spill] sm:$0xff] }
 0x475   : > { %v4750_v42 = vadd.f32 %v9461_v62, %v4714_v52 }
 0x476   : > { %v3801_v59 = vpop.f32.mrf.mxu3 }
 0x477   : > { %v4782_v46 = vadd.f32 %v4750_v42, %v10172_v23  ;;  %v3947_v7 = vadd.f32 %v3946_v19, %v3801_v59  ;;  %v4633_v13 = vpop.f32.mrf.mxu1 }
 0x478   : > { %v3961_v31 = vpop.f32.mrf.mxu0 }
 0x479   : > { %v4814_v49 = vmax.f32 %v4782_v46, 0.0  ;;  %v4679_v1 = vadd.f32 %v4623_v12, %v3947_v7 }
 0x47b   : > { %4846 = vst.msk [vmem:[%s9487_s13 + $0x78] sm:$0xff] %vm312_vm0, %v4814_v49  ;;  %v4715_v36 = vmul.f32 %v9441_v34, %v4679_v1 }
 0x47d   : > { %v4751_v40 = vadd.f32 %v9461_v62, %v4715_v36 }
 0x47e   : > { %v3803_v8 = vpop.f32.mrf.mxu3 }
 0x47f   : > { %v4783_v4 = vadd.f32 %v4751_v40, %v10173_v26  ;;  %v3949_v2 = vadd.f32 %v3948_v0, %v3803_v8  ;;  %v4635_v12 = vpop.f32.mrf.mxu1 }
 0x480   : > { %v3963_v9 = vpop.f32.mrf.mxu0 }
 0x481   : > { %v4815_v24 = vmax.f32 %v4783_v4, 0.0  ;;  %v4680_v27 = vadd.f32 %v4625_v14, %v3949_v2 }
 0x483   : > { %4847 = vst.msk [vmem:[%s9487_s13 + $0x80] sm:$0xff] %vm312_vm0, %v4815_v24  ;;  %v4716_v45 = vmul.f32 %v9441_v34, %v4680_v27 }
 0x485   : > { %v4752_v33 = vadd.f32 %v9461_v62, %v4716_v45  ;;  %v10180_v45 = vld [vmem:[#allocation32_spill] sm:$0xff] }
 0x486   : > { %v3806_v44 = vpop.f32.mrf.mxu3 }
 0x487   : > { %v4784_v19 = vadd.f32 %v4752_v33, %v10174_v48  ;;  %v3952_v16 = vadd.f32 %v3951_v10, %v3806_v44  ;;  %v4638_v14 = vpop.f32.mrf.mxu1 }
 0x489   : > { %v4816_v55 = vmax.f32 %v4784_v19, 0.0  ;;  %v4681_v5 = vadd.f32 %v4628_v54, %v3952_v16 }
 0x48b   : > { %4848 = vst.msk [vmem:[%s9487_s13 + $0x88] sm:$0xff] %vm312_vm0, %v4816_v55  ;;  %v4717_v47 = vmul.f32 %v9441_v34, %v4681_v5 }
 0x48d   : > { %v4753_v43 = vadd.f32 %v9461_v62, %v4717_v47 }
 0x48e   : > { %v3808_v32 = vpop.f32.mrf.mxu3 }
 0x48f   : > { %v4785_v56 = vadd.f32 %v4753_v43, %v10175_v28  ;;  %v3954_v21 = vadd.f32 %v3953_v20, %v3808_v32  ;;  %v4640_v3 = vpop.f32.mrf.mxu1  ;;  %v3966_v20 = vpop.f32.mrf.mxu0 }
 0x491   : > { %v4817_v50 = vmax.f32 %v4785_v56, 0.0  ;;  %v4682_v60 = vadd.f32 %v4630_v53, %v3954_v21  ;;  %v10179_v53 = vld [vmem:[#allocation30_spill] sm:$0xff] }
 0x493   : > { %4849 = vst.msk [vmem:[%s9487_s13 + $0x90] sm:$0xff] %vm312_vm0, %v4817_v50  ;;  %v4718_v11 = vmul.f32 %v9441_v34, %v4682_v60 }
 0x495   : > { %v4754_v51 = vadd.f32 %v9461_v62, %v4718_v11  ;;  %v10182_v11 = vld [vmem:[#allocation40_spill] sm:$0xff] }
 0x496   : > { %v3811_v25 = vpop.f32.mrf.mxu3 }
 0x497   : > { %v4786_v0 = vadd.f32 %v4754_v51, %v10176_v58  ;;  %v3957_v37 = vadd.f32 %v3956_v39, %v3811_v25  ;;  %v4643_v7 = vpop.f32.mrf.mxu1  ;;  %v3968_v4 = vpop.f32.mrf.mxu0 }
 0x499   : > { %v4818_v35 = vmax.f32 %v4786_v0, 0.0  ;;  %v4683_v15 = vadd.f32 %v4633_v13, %v3957_v37 }
 0x49b   : > { %4850 = vst.msk [vmem:[%s9487_s13 + $0x98] sm:$0xff] %vm312_vm0, %v4818_v35  ;;  %v4719_v38 = vmul.f32 %v9441_v34, %v4683_v15  ;;  %v10183_v15 = vld [vmem:[#allocation35_spill] sm:$0xff] }
 0x49d   : > { %v4755_v63 = vadd.f32 %v9461_v62, %v4719_v38 }
 0x49e   : > { %v3813_v29 = vpop.f32.mrf.mxu3 }
 0x49f   : > { %v4787_v10 = vadd.f32 %v4755_v63, %v10177_v57  ;;  %v3959_v22 = vadd.f32 %v3958_v18, %v3813_v29  ;;  %v4645_v24 = vpop.f32.mrf.mxu1  ;;  %v3971_v16 = vpop.f32.mrf.mxu0  ;;  %v10181_v18 = vld [vmem:[#allocation39_spill] sm:$0xff] }
 0x4a1   : > { %v4819_v41 = vmax.f32 %v4787_v10, 0.0  ;;  %v4684_v6 = vadd.f32 %v4635_v12, %v3959_v22 }
 0x4a3   : > { %4851 = vst.msk [vmem:[%s9487_s13 + $0xa0] sm:$0xff] %vm312_vm0, %v4819_v41  ;;  %v4720_v17 = vmul.f32 %v9441_v34, %v4684_v6 }
 0x4a5   : > { %v4756_v54 = vadd.f32 %v9461_v62, %v4720_v17 }
 0x4a6   : > { %v3816_v61 = vpop.f32.mrf.mxu3 }
 0x4a7   : > { %v4788_v52 = vadd.f32 %v4756_v54, %v10178_v30  ;;  %v3962_v42 = vadd.f32 %v3961_v31, %v3816_v61  ;;  %v4648_v12 = vpop.f32.mrf.mxu1  ;;  %v3973_v50 = vpop.f32.mrf.mxu0 }
 0x4a9   : > { %v4820_v59 = vmax.f32 %v4788_v52, 0.0  ;;  %v4685_v23 = vadd.f32 %v4638_v14, %v3962_v42 }
 0x4ab   : > { %4852 = vst.msk [vmem:[%s9487_s13 + $0xa8] sm:$0xff] %vm312_vm0, %v4820_v59  ;;  %v4721_v46 = vmul.f32 %v9441_v34, %v4685_v23 }
 0x4ad   : > { %v4757_v49 = vadd.f32 %v9461_v62, %v4721_v46  ;;  %v10185_v46 = vld [vmem:[#allocation43_spill] sm:$0xff] }
 0x4ae   : > { %v3818_v1 = vpop.f32.mrf.mxu3 }
 0x4af   : > { %v4789_v36 = vadd.f32 %v4757_v49, %v10179_v53  ;;  %v3964_v40 = vadd.f32 %v3963_v9, %v3818_v1  ;;  %v4650_v0 = vpop.f32.mrf.mxu1  ;;  %v3976_v9 = vpop.f32.mrf.mxu0 }
 0x4b1   : > { %v4821_v8 = vmax.f32 %v4789_v36, 0.0  ;;  %v4686_v26 = vadd.f32 %v4640_v3, %v3964_v40  ;;  %v10184_v3 = vld [vmem:[#allocation36_spill] sm:$0xff] }
 0x4b3   : > { %4853 = vst.msk [vmem:[%s9487_s13 + $0xb0] sm:$0xff] %vm312_vm0, %v4821_v8  ;;  %v4722_v2 = vmul.f32 %v9441_v34, %v4686_v26 }
 0x4b5   : > { %v4758_v39 = vadd.f32 %v9461_v62, %v4722_v2  ;;  %v10186_v2 = vld [vmem:[#allocation44_spill] sm:$0xff] }
 0x4b6   : > { %v3821_v27 = vpop.f32.mrf.mxu3 }
 0x4b7   : > { %v4790_v13 = vadd.f32 %v4758_v39, %v10180_v45  ;;  %v3967_v33 = vadd.f32 %v3966_v20, %v3821_v27  ;;  %v4653_v22 = vpop.f32.mrf.mxu1  ;;  %v3978_v52 = vpop.f32.mrf.mxu0 }
 0x4b9   : > { %v4822_v44 = vmax.f32 %v4790_v13, 0.0  ;;  %v4687_v48 = vadd.f32 %v4643_v7, %v3967_v33 }
 0x4bb   : > { %4854 = vst.msk [vmem:[%s9487_s13 + $0xb8] sm:$0xff] %vm312_vm0, %v4822_v44  ;;  %v4723_v19 = vmul.f32 %v9441_v34, %v4687_v48 }
 0x4bd   : > { %v4759_v55 = vadd.f32 %v9461_v62, %v4723_v19  ;;  %v10187_v19 = vld [vmem:[#allocation33_spill] sm:$0xff] }
 0x4be   : > { %v3823_v5 = vpop.f32.mrf.mxu3 }
 0x4bf   : > { %v4791_v47 = vadd.f32 %v4759_v55, %v10181_v18  ;;  %v3969_v43 = vadd.f32 %v3968_v4, %v3823_v5  ;;  %v4655_v59 = vpop.f32.mrf.mxu1  ;;  %v3981_v40 = vpop.f32.mrf.mxu0 }
 0x4c1   : > { %v4823_v32 = vmax.f32 %v4791_v47, 0.0  ;;  %v4688_v28 = vadd.f32 %v4645_v24, %v3969_v43 }
 0x4c3   : > { %4855 = vst.msk [vmem:[%s9487_s13 + $0xc0] sm:$0xff] %vm312_vm0, %v4823_v32  ;;  %v4724_v56 = vmul.f32 %v9441_v34, %v4688_v28  ;;  %v10188_v32 = vld [vmem:[#allocation41_spill] sm:$0xff] }
 0x4c5   : > { %v4760_v21 = vadd.f32 %v9461_v62, %v4724_v56 }
 0x4c6   : > { %v3826_v60 = vpop.f32.mrf.mxu3 }
 0x4c7   : > { %v4792_v31 = vadd.f32 %v4760_v21, %v10182_v11  ;;  %v3972_v51 = vadd.f32 %v3971_v16, %v3826_v60  ;;  %v4658_v26 = vpop.f32.mrf.mxu1  ;;  %v3983_v44 = vpop.f32.mrf.mxu0 }
 0x4c9   : > { %v4824_v25 = vmax.f32 %v4792_v31, 0.0  ;;  %v4689_v58 = vadd.f32 %v4648_v12, %v3972_v51 }
 0x4cb   : > { %4856 = vst.msk [vmem:[%s9487_s13 + $0xc8] sm:$0xff] %vm312_vm0, %v4824_v25  ;;  %v4725_v37 = vmul.f32 %v9441_v34, %v4689_v58 }
 0x4cd   : > { %v4761_v14 = vadd.f32 %v9461_v62, %v4725_v37 }
 0x4ce   : > { %v3828_v35 = vpop.f32.mrf.mxu3 }
 0x4cf   : > { %v4793_v38 = vadd.f32 %v4761_v14, %v10183_v15  ;;  %v3974_v63 = vadd.f32 %v3973_v50, %v3828_v35  ;;  %v4660_v5 = vpop.f32.mrf.mxu1 }
 0x4d1   : > { %v4825_v29 = vmax.f32 %v4793_v38, 0.0  ;;  %v4690_v57 = vadd.f32 %v4650_v0, %v3974_v63 }
 0x4d3   : > { %4857 = vst.msk [vmem:[%s9487_s13 + $0xd0] sm:$0xff] %vm312_vm0, %v4825_v29  ;;  %v4726_v10 = vmul.f32 %v9441_v34, %v4690_v57 }
 0x4d5   : > { %v4762_v41 = vadd.f32 %v9461_v62, %v4726_v10 }
 0x4d6   : > { %v3831_v6 = vpop.f32.mrf.mxu3 }
 0x4d7   : > { %v4794_v17 = vadd.f32 %v4762_v41, %v10184_v3  ;;  %v3977_v54 = vadd.f32 %v3976_v9, %v3831_v6 }
 0x4d9   : > { %v4826_v61 = vmax.f32 %v4794_v17, 0.0  ;;  %v4691_v30 = vadd.f32 %v4653_v22, %v3977_v54 }
 0x4db   : > { %4858 = vst.msk [vmem:[%s9487_s13 + $0xd8] sm:$0xff] %vm312_vm0, %v4826_v61  ;;  %v4727_v42 = vmul.f32 %v9441_v34, %v4691_v30 }
 0x4dd   : > { %v4763_v20 = vadd.f32 %v9461_v62, %v4727_v42 }
 0x4de   : > { %v3833_v23 = vpop.f32.mrf.mxu3 }
 0x4df   : > { %v4795_v7 = vadd.f32 %v4763_v20, %v10185_v46  ;;  %v3979_v49 = vadd.f32 %v3978_v52, %v3833_v23 }
 0x4e1   : > { %v4827_v1 = vmax.f32 %v4795_v7, 0.0  ;;  %v4692_v53 = vadd.f32 %v4655_v59, %v3979_v49 }
 0x4e3   : > { %4859 = vst.msk [vmem:[%s9487_s13 + $0xe0] sm:$0xff] %vm312_vm0, %v4827_v1  ;;  %v4728_v36 = vmul.f32 %v9441_v34, %v4692_v53 }
 0x4e5   : > { %v4764_v8 = vadd.f32 %v9461_v62, %v4728_v36 }
 0x4e6   : > { %v3836_v4 = vpop.f32.mrf.mxu3 }
 0x4e7   : > { %v4796_v39 = vadd.f32 %v4764_v8, %v10186_v2  ;;  %v3982_v24 = vadd.f32 %v3981_v40, %v3836_v4 }
 0x4e9   : > { %v4828_v27 = vmax.f32 %v4796_v39, 0.0  ;;  %v4693_v45 = vadd.f32 %v4658_v26, %v3982_v24 }
 0x4eb   : > { %4860 = vst.msk [vmem:[%s9487_s13 + $0xe8] sm:$0xff] %vm312_vm0, %v4828_v27  ;;  %v4729_v13 = vmul.f32 %v9441_v34, %v4693_v45 }
 0x4ed   : > { %v4765_v33 = vadd.f32 %v9461_v62, %v4729_v13 }
 0x4ee   : > { %v3838_v48 = vpop.f32.mrf.mxu3 }
 0x4ef   : > { %v4797_v16 = vadd.f32 %v4765_v33, %v10187_v19  ;;  %v3984_v55 = vadd.f32 %v3983_v44, %v3838_v48 }
 0x4f1   : > { %v4829_v18 = vmax.f32 %v4797_v16, 0.0  ;;  %v4694_v47 = vadd.f32 %v4660_v5, %v3984_v55 }
 0x4f3   : > { %4861 = vst.msk [vmem:[%s9487_s13 + $0xf0] sm:$0xff] %vm312_vm0, %v4829_v18  ;;  %v4730_v43 = vmul.f32 %v9441_v34, %v4694_v47 }
 0x4f5   : > { %v4766_v12 = vadd.f32 %v9461_v62, %v4730_v43 }
 0x4f7   : > { %v4798_v28 = vadd.f32 %v4766_v12, %v10188_v32 }
 0x4f9   : > { %v4830_v56 = vmax.f32 %v4798_v28, 0.0 }
 0x4fb   : > { %4862 = vst.msk [vmem:[%s9487_s13 + $0xf8] sm:$0xff] %vm312_vm0, %v4830_v56 }
 0x4fc PF: > { %s17_s24 = sadd.s32 1, %s6145_s24  }
 0x4fd   : > { %p14_p4 = scmp.ge.s32.totalorder %s17_s24, 4  }
 0x4ff   :  { %16 = sbr.rel (!%p14_p4) target bundleno = 1 (0x1), region = 88 }

</bundles_post_ra>
